<compile_context>
chip_gen: v5e
topology: v5e:2x2
jax: 0.10.0
libtpu: 0.0.40
codegen_flags: <defaults>
</compile_context>

<pallas_src>
import functools

import jax
import jax.numpy as jnp
from jax import lax
from jax.experimental import pallas as pl
from jax.experimental.pallas import tpu as pltpu


C1P = 128  # layer-1 out-channels padded to a full lane width
C2P = 128  # layer-2 out-channels padded to a full lane width


# ----------------------------------------------------------------------------
# Fused kernel (per NT-block grid step):
#   conv1-GEMM + BN + ReLU -> bf16 phase-split scratch -> in-VMEM 3x3/s2 im2col
#   -> single long-K GEMM + BN + ReLU -> bf16 lane-dense output.
# ----------------------------------------------------------------------------
def fused_projection_kernel(p1_ref, w1_ref, s1_ref, b1_ref,
                            w2_ref, s2_ref, b2_ref, o_ref,
                            y1pad_ref, im2_ref):
    PP, QHP, QWP, NTB, _ = y1pad_ref.shape          # (4, Ho2+1, Wo2+1, NTb, C1P)
    HO2, WO2 = QHP - 1, QWP - 1
    NOUTB = o_ref.shape[0]                          # NTb * Ho2 * Wo2

    # ---- layer 1: bf16 MXU GEMM, f32 accumulate, f32 BN+ReLU epilogue ----
    acc1 = jnp.dot(p1_ref[...], w1_ref[...], preferred_element_type=jnp.float32)
    y1 = jnp.maximum(acc1 * s1_ref[...] + b1_ref[...], 0.0)     # (M1b, C1P) f32

    # ---- scatter layer-1 activation into the phase-split, zero-padded bf16 scratch ----
    # rows of y1 are ordered (ph, pw, qh, qw, nt_inner); only the leading q-slabs need
    # zeros (the spatial low-side padding read by the i==0 / j==0 taps).
    y1pad_ref[:, 0:1, :, :, :] = jnp.zeros((PP, 1, QWP, NTB, C1P), jnp.bfloat16)
    y1pad_ref[:, :, 0:1, :, :] = jnp.zeros((PP, QHP, 1, NTB, C1P), jnp.bfloat16)
    y1pad_ref[:, 1:QHP, 1:QWP, :, :] = (
        y1.astype(jnp.bfloat16).reshape(PP, HO2, WO2, NTB, C1P))

    # ---- layer-2 3x3 stride-2 im2col: each tap is a contiguous outer-dim slice of the
    # phase-split scratch, copied to lane offset k*128 of the (NOUTB, 9*128) bf16 buffer.
    # tap t reads layer-1 row r = 2*q_out - 1 + t; in phase-split coords (r = 2q + p) the
    # (phase, padded-q slice start) for t = 0,1,2 is:
    tap_slices = ((1, 0), (0, 1), (1, 1))
    for i in range(3):
        p_i, si = tap_slices[i]
        for j in range(3):
            p_j, sj = tap_slices[j]
            k = i * 3 + j
            tap = y1pad_ref[p_i * 2 + p_j, si:si + HO2, sj:sj + WO2, :, :]
            im2_ref[:, k * C1P:(k + 1) * C1P] = tap.reshape(NOUTB, C1P)

    # ---- layer 2: ONE long-K MXU GEMM (no intermediate accumulation passes) ----
    acc2 = jnp.dot(im2_ref[...], w2_ref[...], preferred_element_type=jnp.float32)
    y2 = jnp.maximum(acc2 * s2_ref[...] + b2_ref[...], 0.0)     # f32 epilogue
    o_ref[...] = y2.astype(o_ref.dtype)                         # lane-dense bf16 (NOUTB,128)


# ----------------------------------------------------------------------------
# Wrapper-side helpers (XLA ops fused into the surrounding jit).
# ----------------------------------------------------------------------------
def _im2col_rows(x_nhwc, kh, kw, stride, pad):
    """(NT, H, W, Cin) -> (NT, Ho, Wo, kh*kw*Cin)."""
    NT, H, W, Cin = x_nhwc.shape
    xp = jnp.pad(x_nhwc, ((0, 0), (pad, pad), (pad, pad), (0, 0)))
    Ho = (H + 2 * pad - kh) // stride + 1
    Wo = (W + 2 * pad - kw) // stride + 1
    taps = []
    for a in range(kh):
        for b in range(kw):
            taps.append(xp[:, a:a + stride * Ho:stride, b:b + stride * Wo:stride, :])
    p = jnp.stack(taps, axis=-2).reshape(NT, Ho, Wo, kh * kw * Cin)
    return p, Ho, Wo


def _fold_bn(gamma, beta, mean, var, eps, cpad):
    scale = gamma / jnp.sqrt(var + eps)
    shift = beta - mean * scale
    scale = jnp.pad(scale, (0, cpad - scale.shape[0]))
    shift = jnp.pad(shift, (0, cpad - shift.shape[0]))
    return (scale.reshape(1, cpad).astype(jnp.float32),
            shift.reshape(1, cpad).astype(jnp.float32))


def skeleton_embedding_forward(x, params, nt_block=16):
    """x: (n, c, t, v, m) exactly like the PyTorch module (t must be 16)."""
    n, c, t, v, m = x.shape
    NT = n * t
    NTB = nt_block
    assert NT % NTB == 0 and NTB % 16 == 0, (NT, NTB)   # bf16 scratch => 16-row tiles
    NB = NT // NTB

    # channels-last per-frame slices: (n*t, H=v, W=m, Cin)
    x_nhwc = jnp.transpose(x, (0, 2, 3, 4, 1)).reshape(NT, v, m, c)

    # --- layer-1 im2col; rows reordered per NT-block to (ph, pw, qh, qw, nt_inner) ---
    p1, Ho1, Wo1 = _im2col_rows(x_nhwc, 7, 7, 2, 3)
    K1 = p1.shape[-1]
    assert Ho1 % 2 == 0 and Wo1 % 2 == 0, (Ho1, Wo1)
    Ho2, Wo2 = Ho1 // 2, Wo1 // 2
    p1 = p1.reshape(NB, NTB, Ho2, 2, Wo2, 2, K1)        # (blk, nti, qh, ph, qw, pw, K)
    p1 = jnp.transpose(p1, (0, 3, 5, 2, 4, 1, 6))       # (blk, ph, pw, qh, qw, nti, K)
    M1B = 4 * Ho2 * Wo2 * NTB
    p1 = p1.reshape(NB * M1B, K1)
    K1P = ((K1 + 127) // 128) * 128
    p1 = jnp.pad(p1, ((0, 0), (0, K1P - K1))).astype(jnp.bfloat16)

    # --- weights / folded BN, zero-padded to lane-dense shapes ---
    w1 = params["w1"]                                   # (C1, Cin, 1, 7, 7)
    C1 = w1.shape[0]
    w1m = jnp.transpose(w1[:, :, 0], (2, 3, 1, 0)).reshape(K1, C1)
    w1m = jnp.pad(w1m, ((0, K1P - K1), (0, C1P - C1))).astype(jnp.bfloat16)
    s1, b1 = _fold_bn(*params["bn1"], C1P)

    w2 = params["w2"]                                   # (C2, C1, 1, 3, 3)
    C2 = w2.shape[0]
    w2m = jnp.transpose(w2[:, :, 0], (2, 3, 1, 0)).reshape(9, C1, C2)
    w2m = jnp.pad(w2m, ((0, 0), (0, C1P - C1), (0, C2P - C2)))
    w2m = w2m.reshape(9 * C1P, C2P).astype(jnp.bfloat16)  # matches im2col lane blocks
    s2, b2 = _fold_bn(*params["bn2"], C2P)

    NOUTB = NTB * Ho2 * Wo2
    out = pl.pallas_call(
        fused_projection_kernel,
        out_shape=jax.ShapeDtypeStruct((NB * NOUTB, C2P), jnp.bfloat16),
        grid_spec=pltpu.PrefetchScalarGridSpec(
            num_scalar_prefetch=0,
            grid=(NB,),
            in_specs=[
                pl.BlockSpec((M1B, K1P), lambda b: (b, 0)),        # p1 block
                pl.BlockSpec((K1P, C1P), lambda b: (0, 0)),        # w1
                pl.BlockSpec((1, C1P), lambda b: (0, 0)),          # bn1 scale
                pl.BlockSpec((1, C1P), lambda b: (0, 0)),          # bn1 shift
                pl.BlockSpec((9 * C1P, C2P), lambda b: (0, 0)),    # w2 (long-K)
                pl.BlockSpec((1, C2P), lambda b: (0, 0)),          # bn2 scale
                pl.BlockSpec((1, C2P), lambda b: (0, 0)),          # bn2 shift
            ],
            out_specs=pl.BlockSpec((NOUTB, C2P), lambda b: (b, 0)),
            scratch_shapes=[
                pltpu.VMEM((4, Ho2 + 1, Wo2 + 1, NTB, C1P), jnp.bfloat16),  # phase-split y1
                pltpu.VMEM((NOUTB, 9 * C1P), jnp.bfloat16),                 # layer-2 im2col
            ]),
        compiler_params=pltpu.CompilerParams(
            dimension_semantics=("parallel",),      # megacore split on v7x
            vmem_limit_bytes=32 * 1024 * 1024),
    )(p1, w1m, s1, b1, w2m, s2, b2)

    # kernel rows are (blk, ho2, wo2, nt_inner); lanes are padded channels.
    out = out.reshape(NB, Ho2, Wo2, NTB, C2P)[..., :C2]
    out = jnp.transpose(out, (0, 3, 4, 1, 2))           # (blk, nti, c2, ho2, wo2)
    out = out.reshape(n, t, C2, Ho2, Wo2)               # (n, t, c2, ho2, wo2)
    # == PyTorch: y.permute(0, 2, 1, 3, 4).contiguous().view(n, 16, -1)
    return out.reshape(n, 16, -1)


def init_params(key, c_in, base_ch, embed_dim):
    k1, k2 = jax.random.split(key, 2)
    w1 = 0.05 * jax.random.normal(k1, (base_ch, c_in, 1, 7, 7), jnp.float32)
    w2 = 0.05 * jax.random.normal(k2, (embed_dim, base_ch, 1, 3, 3), jnp.float32)
    bn1 = (jnp.ones((base_ch,), jnp.float32), jnp.zeros((base_ch,), jnp.float32),
           jnp.zeros((base_ch,), jnp.float32), jnp.ones((base_ch,), jnp.float32), 1e-5)
    bn2 = (jnp.ones((embed_dim,), jnp.float32), jnp.zeros((embed_dim,), jnp.float32),
           jnp.zeros((embed_dim,), jnp.float32), jnp.ones((embed_dim,), jnp.float32), 1e-5)
    return {"w1": w1, "bn1": bn1, "w2": w2, "bn2": bn2}


# ----------------------------------------------------------------------------
# Pure-JAX (f32, lax.conv) reference for a semantics check.
# ----------------------------------------------------------------------------
def ref_forward(x, params):
    def conv_bn_relu(x_ncthw, w, bn, stride, pad):
        gamma, beta, mean, var, eps = bn
        N, Cin, T, H, W = x_ncthw.shape
        Cout = w.shape[0]
        xs = jnp.transpose(x_ncthw, (0, 2, 3, 4, 1)).reshape(N * T, H, W, Cin)
        wk = jnp.transpose(w[:, :, 0, :, :], (2, 3, 1, 0))  # HWIO
        y = lax.conv_general_dilated(
            xs, wk, window_strides=(stride, stride),
            padding=[(pad, pad), (pad, pad)],
            dimension_numbers=("NHWC", "HWIO", "NHWC"))
        scale = gamma / jnp.sqrt(var + eps)
        y = jnp.maximum(y * scale + (beta - mean * scale), 0.0)
        Ho, Wo = y.shape[1], y.shape[2]
        return jnp.transpose(y.reshape(N, T, Ho, Wo, Cout), (0, 4, 1, 2, 3))

    n = x.shape[0]
    y = conv_bn_relu(x, params["w1"], params["bn1"], 2, 3)
    y = conv_bn_relu(y, params["w2"], params["bn2"], 2, 1)
    y = jnp.transpose(y, (0, 2, 1, 3, 4))
    return y.reshape(n, 16, -1)


if __name__ == "__main__":
    # (n, c, t, v, m); t must be 16 so view(n, 16, -1) holds (no temporal downsampling).
    n, c, t, v, m = 2, 4, 16, 16, 16
    base_ch, embed_dim = 8, 32

    key = jax.random.PRNGKey(0)
    kx, kp = jax.random.split(key)
    x = jax.random.normal(kx, (n, c, t, v, m), jnp.float32)
    params = init_params(kp, c, base_ch, embed_dim)

    fwd = jax.jit(functools.partial(skeleton_embedding_forward, params=params))
    y = jax.block_until_ready(fwd(x))
    assert y.shape == (n, 16, embed_dim * (v // 4) * (m // 4)), y.shape

    y_ref = jax.block_until_ready(ref_forward(x, params))
    # bf16 MXU inputs / bf16 output with f32 accumulation -> compare at 3e-2.
    y_f32 = y.astype(jnp.float32)
    max_err = float(jnp.max(jnp.abs(y_f32 - y_ref)))
    assert jnp.allclose(y_f32, y_ref, atol=3e-2, rtol=3e-2), max_err

    print("KERNEL_OK")
</pallas_src>

<mosaic_0001>
module attributes {stable_mosaic.version = 11 : i64} {
  func.func @fused_projection_kernel(%arg0: i32, %arg1: memref<1024x256xbf16, #tpu.memory_space<vmem>>, %arg2: memref<256x128xbf16, #tpu.memory_space<vmem>>, %arg3: memref<1x128xf32, #tpu.memory_space<vmem>>, %arg4: memref<1x128xf32, #tpu.memory_space<vmem>>, %arg5: memref<1152x128xbf16, #tpu.memory_space<vmem>>, %arg6: memref<1x128xf32, #tpu.memory_space<vmem>>, %arg7: memref<1x128xf32, #tpu.memory_space<vmem>>, %arg8: memref<256x128xbf16, #tpu.memory_space<vmem>>, %arg9: memref<4x5x5x16x128xbf16, #tpu.memory_space<vmem>>, %arg10: memref<256x1152xbf16, #tpu.memory_space<vmem>>) attributes {dimension_semantics = [#tpu.dimension_semantics<parallel>], iteration_bounds = array<i64: 2>, scalar_prefetch = 0 : i64, scratch_operands = 2 : i64, tpu.core_type = #tpu.core_type<tc>, window_params = [{transform_indices = @transform_0, window_bounds = array<i64: 1024, 256>}, {pipeline_mode = #tpu.pipeline_mode<synchronous>, transform_indices = @transform_1, window_bounds = array<i64: 256, 128>}, {pipeline_mode = #tpu.pipeline_mode<synchronous>, transform_indices = @transform_2, window_bounds = array<i64: 1, 128>}, {pipeline_mode = #tpu.pipeline_mode<synchronous>, transform_indices = @transform_3, window_bounds = array<i64: 1, 128>}, {pipeline_mode = #tpu.pipeline_mode<synchronous>, transform_indices = @transform_4, window_bounds = array<i64: 1152, 128>}, {pipeline_mode = #tpu.pipeline_mode<synchronous>, transform_indices = @transform_5, window_bounds = array<i64: 1, 128>}, {pipeline_mode = #tpu.pipeline_mode<synchronous>, transform_indices = @transform_6, window_bounds = array<i64: 1, 128>}, {transform_indices = @transform_7, window_bounds = array<i64: 256, 128>}]} {
    %c0 = arith.constant 0 : index
    %c0_0 = arith.constant 0 : index
    %0 = vector.load %arg1[%c0, %c0_0] : memref<1024x256xbf16, #tpu.memory_space<vmem>>, vector<1024x256xbf16>
    %c0_1 = arith.constant 0 : index
    %c0_2 = arith.constant 0 : index
    %1 = vector.load %arg2[%c0_1, %c0_2] : memref<256x128xbf16, #tpu.memory_space<vmem>>, vector<256x128xbf16>
    %cst = arith.constant dense<0.000000e+00> : vector<1024x128xf32>
    %2 = tpu.matmul %0, %1, %cst {dimension_numbers = #tpu.dot_dimension_numbers<[1], [0], [0], [1], [0, 0, 1, 1], [], []>} : vector<1024x256xbf16>, vector<256x128xbf16>, vector<1024x128xf32> -> vector<1024x128xf32>
    %c0_3 = arith.constant 0 : index
    %c0_4 = arith.constant 0 : index
    %3 = vector.load %arg3[%c0_3, %c0_4] : memref<1x128xf32, #tpu.memory_space<vmem>>, vector<1x128xf32>
    %4 = vector.broadcast %3 : vector<1x128xf32> to vector<1024x128xf32>
    %5 = arith.mulf %2, %4 : vector<1024x128xf32>
    %c0_5 = arith.constant 0 : index
    %c0_6 = arith.constant 0 : index
    %6 = vector.load %arg4[%c0_5, %c0_6] : memref<1x128xf32, #tpu.memory_space<vmem>>, vector<1x128xf32>
    %7 = vector.broadcast %6 : vector<1x128xf32> to vector<1024x128xf32>
    %8 = arith.addf %5, %7 : vector<1024x128xf32>
    %cst_7 = arith.constant 0.000000e+00 : f32
    %9 = vector.broadcast %cst_7 : f32 to vector<1024x128xf32>
    %10 = arith.maximumf %8, %9 : vector<1024x128xf32>
    %cst_8 = arith.constant 0.000000e+00 : bf16
    %11 = vector.broadcast %cst_8 : bf16 to vector<4x1x5x16x128xbf16>
    %c0_9 = arith.constant 0 : index
    %c0_10 = arith.constant 0 : index
    %c0_11 = arith.constant 0 : index
    %c0_12 = arith.constant 0 : index
    %c0_13 = arith.constant 0 : index
    %12 = vector.load %arg9[%c0_9, %c0_10, %c0_11, %c0_12, %c0_13] : memref<4x5x5x16x128xbf16, #tpu.memory_space<vmem>>, vector<4x1x5x16x128xbf16>
    tpu.vector_store %arg9[%c0_9, %c0_10, %c0_11, %c0_12, %c0_13], %11 {strides = array<i32>} : memref<4x5x5x16x128xbf16, #tpu.memory_space<vmem>>, vector<4x1x5x16x128xbf16>,
    %cst_14 = arith.constant 0.000000e+00 : bf16
    %13 = vector.broadcast %cst_14 : bf16 to vector<4x5x1x16x128xbf16>
    %c0_15 = arith.constant 0 : index
    %c0_16 = arith.constant 0 : index
    %c0_17 = arith.constant 0 : index
    %c0_18 = arith.constant 0 : index
    %c0_19 = arith.constant 0 : index
    %14 = vector.load %arg9[%c0_15, %c0_16, %c0_17, %c0_18, %c0_19] : memref<4x5x5x16x128xbf16, #tpu.memory_space<vmem>>, vector<4x5x1x16x128xbf16>
    tpu.vector_store %arg9[%c0_15, %c0_16, %c0_17, %c0_18, %c0_19], %13 {strides = array<i32>} : memref<4x5x5x16x128xbf16, #tpu.memory_space<vmem>>, vector<4x5x1x16x128xbf16>,
    %15 = arith.truncf %10 : vector<1024x128xf32> to vector<1024x128xbf16>
    %16 = vector.shape_cast %15 : vector<1024x128xbf16> to vector<4x4x4x16x128xbf16>
    %c0_20 = arith.constant 0 : index
    %c1 = arith.constant 1 : index
    %c1_21 = arith.constant 1 : index
    %c0_22 = arith.constant 0 : index
    %c0_23 = arith.constant 0 : index
    %17 = vector.load %arg9[%c0_20, %c1, %c1_21, %c0_22, %c0_23] : memref<4x5x5x16x128xbf16, #tpu.memory_space<vmem>>, vector<4x4x4x16x128xbf16>
    tpu.vector_store %arg9[%c0_20, %c1, %c1_21, %c0_22, %c0_23], %16 {strides = array<i32>} : memref<4x5x5x16x128xbf16, #tpu.memory_space<vmem>>, vector<4x4x4x16x128xbf16>,
    %c3 = arith.constant 3 : index
    %c0_24 = arith.constant 0 : index
    %c0_25 = arith.constant 0 : index
    %c0_26 = arith.constant 0 : index
    %c0_27 = arith.constant 0 : index
    %18 = vector.load %arg9[%c3, %c0_24, %c0_25, %c0_26, %c0_27] : memref<4x5x5x16x128xbf16, #tpu.memory_space<vmem>>, vector<1x4x4x16x128xbf16>
    %19 = vector.shape_cast %18 : vector<1x4x4x16x128xbf16> to vector<4x4x16x128xbf16>
    %20 = vector.shape_cast %19 : vector<4x4x16x128xbf16> to vector<256x128xbf16>
    %c0_28 = arith.constant 0 : index
    %c0_29 = arith.constant 0 : index
    %21 = vector.load %arg10[%c0_28, %c0_29] : memref<256x1152xbf16, #tpu.memory_space<vmem>>, vector<256x128xbf16>
    tpu.vector_store %arg10[%c0_28, %c0_29], %20 {strides = array<i32>} : memref<256x1152xbf16, #tpu.memory_space<vmem>>, vector<256x128xbf16>,
    %c2 = arith.constant 2 : index
    %c0_30 = arith.constant 0 : index
    %c1_31 = arith.constant 1 : index
    %c0_32 = arith.constant 0 : index
    %c0_33 = arith.constant 0 : index
    %22 = vector.load %arg9[%c2, %c0_30, %c1_31, %c0_32, %c0_33] : memref<4x5x5x16x128xbf16, #tpu.memory_space<vmem>>, vector<1x4x4x16x128xbf16>
    %23 = vector.shape_cast %22 : vector<1x4x4x16x128xbf16> to vector<4x4x16x128xbf16>
    %24 = vector.shape_cast %23 : vector<4x4x16x128xbf16> to vector<256x128xbf16>
    %c0_34 = arith.constant 0 : index
    %c128 = arith.constant 128 : index
    %25 = vector.load %arg10[%c0_34, %c128] : memref<256x1152xbf16, #tpu.memory_space<vmem>>, vector<256x128xbf16>
    tpu.vector_store %arg10[%c0_34, %c128], %24 {strides = array<i32>} : memref<256x1152xbf16, #tpu.memory_space<vmem>>, vector<256x128xbf16>,
    %c3_35 = arith.constant 3 : index
    %c0_36 = arith.constant 0 : index
    %c1_37 = arith.constant 1 : index
    %c0_38 = arith.constant 0 : index
    %c0_39 = arith.constant 0 : index
    %26 = vector.load %arg9[%c3_35, %c0_36, %c1_37, %c0_38, %c0_39] : memref<4x5x5x16x128xbf16, #tpu.memory_space<vmem>>, vector<1x4x4x16x128xbf16>
    %27 = vector.shape_cast %26 : vector<1x4x4x16x128xbf16> to vector<4x4x16x128xbf16>
    %28 = vector.shape_cast %27 : vector<4x4x16x128xbf16> to vector<256x128xbf16>
    %c0_40 = arith.constant 0 : index
    %c256 = arith.constant 256 : index
    %29 = vector.load %arg10[%c0_40, %c256] : memref<256x1152xbf16, #tpu.memory_space<vmem>>, vector<256x128xbf16>
    tpu.vector_store %arg10[%c0_40, %c256], %28 {strides = array<i32>} : memref<256x1152xbf16, #tpu.memory_space<vmem>>, vector<256x128xbf16>,
    %c1_41 = arith.constant 1 : index
    %c1_42 = arith.constant 1 : index
    %c0_43 = arith.constant 0 : index
    %c0_44 = arith.constant 0 : index
    %c0_45 = arith.constant 0 : index
    %30 = vector.load %arg9[%c1_41, %c1_42, %c0_43, %c0_44, %c0_45] : memref<4x5x5x16x128xbf16, #tpu.memory_space<vmem>>, vector<1x4x4x16x128xbf16>
    %31 = vector.shape_cast %30 : vector<1x4x4x16x128xbf16> to vector<4x4x16x128xbf16>
    %32 = vector.shape_cast %31 : vector<4x4x16x128xbf16> to vector<256x128xbf16>
    %c0_46 = arith.constant 0 : index
    %c384 = arith.constant 384 : index
    %33 = vector.load %arg10[%c0_46, %c384] : memref<256x1152xbf16, #tpu.memory_space<vmem>>, vector<256x128xbf16>
    tpu.vector_store %arg10[%c0_46, %c384], %32 {strides = array<i32>} : memref<256x1152xbf16, #tpu.memory_space<vmem>>, vector<256x128xbf16>,
    %c0_47 = arith.constant 0 : index
    %c1_48 = arith.constant 1 : index
    %c1_49 = arith.constant 1 : index
    %c0_50 = arith.constant 0 : index
    %c0_51 = arith.constant 0 : index
    %34 = vector.load %arg9[%c0_47, %c1_48, %c1_49, %c0_50, %c0_51] : memref<4x5x5x16x128xbf16, #tpu.memory_space<vmem>>, vector<1x4x4x16x128xbf16>
    %35 = vector.shape_cast %34 : vector<1x4x4x16x128xbf16> to vector<4x4x16x128xbf16>
    %36 = vector.shape_cast %35 : vector<4x4x16x128xbf16> to vector<256x128xbf16>
    %c0_52 = arith.constant 0 : index
    %c512 = arith.constant 512 : index
    %37 = vector.load %arg10[%c0_52, %c512] : memref<256x1152xbf16, #tpu.memory_space<vmem>>, vector<256x128xbf16>
    tpu.vector_store %arg10[%c0_52, %c512], %36 {strides = array<i32>} : memref<256x1152xbf16, #tpu.memory_space<vmem>>, vector<256x128xbf16>,
    %c1_53 = arith.constant 1 : index
    %c1_54 = arith.constant 1 : index
    %c1_55 = arith.constant 1 : index
    %c0_56 = arith.constant 0 : index
    %c0_57 = arith.constant 0 : index
    %38 = vector.load %arg9[%c1_53, %c1_54, %c1_55, %c0_56, %c0_57] : memref<4x5x5x16x128xbf16, #tpu.memory_space<vmem>>, vector<1x4x4x16x128xbf16>
    %39 = vector.shape_cast %38 : vector<1x4x4x16x128xbf16> to vector<4x4x16x128xbf16>
    %40 = vector.shape_cast %39 : vector<4x4x16x128xbf16> to vector<256x128xbf16>
    %c0_58 = arith.constant 0 : index
    %c640 = arith.constant 640 : index
    %41 = vector.load %arg10[%c0_58, %c640] : memref<256x1152xbf16, #tpu.memory_space<vmem>>, vector<256x128xbf16>
    tpu.vector_store %arg10[%c0_58, %c640], %40 {strides = array<i32>} : memref<256x1152xbf16, #tpu.memory_space<vmem>>, vector<256x128xbf16>,
    %c3_59 = arith.constant 3 : index
    %c1_60 = arith.constant 1 : index
    %c0_61 = arith.constant 0 : index
    %c0_62 = arith.constant 0 : index
    %c0_63 = arith.constant 0 : index
    %42 = vector.load %arg9[%c3_59, %c1_60, %c0_61, %c0_62, %c0_63] : memref<4x5x5x16x128xbf16, #tpu.memory_space<vmem>>, vector<1x4x4x16x128xbf16>
    %43 = vector.shape_cast %42 : vector<1x4x4x16x128xbf16> to vector<4x4x16x128xbf16>
    %44 = vector.shape_cast %43 : vector<4x4x16x128xbf16> to vector<256x128xbf16>
    %c0_64 = arith.constant 0 : index
    %c768 = arith.constant 768 : index
    %45 = vector.load %arg10[%c0_64, %c768] : memref<256x1152xbf16, #tpu.memory_space<vmem>>, vector<256x128xbf16>
    tpu.vector_store %arg10[%c0_64, %c768], %44 {strides = array<i32>} : memref<256x1152xbf16, #tpu.memory_space<vmem>>, vector<256x128xbf16>,
    %c2_65 = arith.constant 2 : index
    %c1_66 = arith.constant 1 : index
    %c1_67 = arith.constant 1 : index
    %c0_68 = arith.constant 0 : index
    %c0_69 = arith.constant 0 : index
    %46 = vector.load %arg9[%c2_65, %c1_66, %c1_67, %c0_68, %c0_69] : memref<4x5x5x16x128xbf16, #tpu.memory_space<vmem>>, vector<1x4x4x16x128xbf16>
    %47 = vector.shape_cast %46 : vector<1x4x4x16x128xbf16> to vector<4x4x16x128xbf16>
    %48 = vector.shape_cast %47 : vector<4x4x16x128xbf16> to vector<256x128xbf16>
    %c0_70 = arith.constant 0 : index
    %c896 = arith.constant 896 : index
    %49 = vector.load %arg10[%c0_70, %c896] : memref<256x1152xbf16, #tpu.memory_space<vmem>>, vector<256x128xbf16>
    tpu.vector_store %arg10[%c0_70, %c896], %48 {strides = array<i32>} : memref<256x1152xbf16, #tpu.memory_space<vmem>>, vector<256x128xbf16>,
    %c3_71 = arith.constant 3 : index
    %c1_72 = arith.constant 1 : index
    %c1_73 = arith.constant 1 : index
    %c0_74 = arith.constant 0 : index
    %c0_75 = arith.constant 0 : index
    %50 = vector.load %arg9[%c3_71, %c1_72, %c1_73, %c0_74, %c0_75] : memref<4x5x5x16x128xbf16, #tpu.memory_space<vmem>>, vector<1x4x4x16x128xbf16>
    %51 = vector.shape_cast %50 : vector<1x4x4x16x128xbf16> to vector<4x4x16x128xbf16>
    %52 = vector.shape_cast %51 : vector<4x4x16x128xbf16> to vector<256x128xbf16>
    %c0_76 = arith.constant 0 : index
    %c1024 = arith.constant 1024 : index
    %53 = vector.load %arg10[%c0_76, %c1024] : memref<256x1152xbf16, #tpu.memory_space<vmem>>, vector<256x128xbf16>
    tpu.vector_store %arg10[%c0_76, %c1024], %52 {strides = array<i32>} : memref<256x1152xbf16, #tpu.memory_space<vmem>>, vector<256x128xbf16>,
    %c0_77 = arith.constant 0 : index
    %c0_78 = arith.constant 0 : index
    %54 = vector.load %arg10[%c0_77, %c0_78] : memref<256x1152xbf16, #tpu.memory_space<vmem>>, vector<256x1152xbf16>
    %c0_79 = arith.constant 0 : index
    %c0_80 = arith.constant 0 : index
    %55 = vector.load %arg5[%c0_79, %c0_80] : memref<1152x128xbf16, #tpu.memory_space<vmem>>, vector<1152x128xbf16>
    %cst_81 = arith.constant dense<0.000000e+00> : vector<256x128xf32>
    %56 = tpu.matmul %54, %55, %cst_81 {dimension_numbers = #tpu.dot_dimension_numbers<[1], [0], [0], [1], [0, 0, 1, 1], [], []>} : vector<256x1152xbf16>, vector<1152x128xbf16>, vector<256x128xf32> -> vector<256x128xf32>
    %c0_82 = arith.constant 0 : index
    %c0_83 = arith.constant 0 : index
    %57 = vector.load %arg6[%c0_82, %c0_83] : memref<1x128xf32, #tpu.memory_space<vmem>>, vector<1x128xf32>
    %58 = vector.broadcast %57 : vector<1x128xf32> to vector<256x128xf32>
    %59 = arith.mulf %56, %58 : vector<256x128xf32>
    %c0_84 = arith.constant 0 : index
    %c0_85 = arith.constant 0 : index
    %60 = vector.load %arg7[%c0_84, %c0_85] : memref<1x128xf32, #tpu.memory_space<vmem>>, vector<1x128xf32>
    %61 = vector.broadcast %60 : vector<1x128xf32> to vector<256x128xf32>
    %62 = arith.addf %59, %61 : vector<256x128xf32>
    %cst_86 = arith.constant 0.000000e+00 : f32
    %63 = vector.broadcast %cst_86 : f32 to vector<256x128xf32>
    %64 = arith.maximumf %62, %63 : vector<256x128xf32>
    %65 = arith.truncf %64 : vector<256x128xf32> to vector<256x128xbf16>
    %c0_87 = arith.constant 0 : index
    %c0_88 = arith.constant 0 : index
    %66 = vector.load %arg8[%c0_87, %c0_88] : memref<256x128xbf16, #tpu.memory_space<vmem>>, vector<256x128xbf16>
    tpu.vector_store %arg8[%c0_87, %c0_88], %65 {strides = array<i32>} : memref<256x128xbf16, #tpu.memory_space<vmem>>, vector<256x128xbf16>,
    return
  }
  func.func @transform_0(%arg0: i32) -> (i32, i32) {
    %c0_i32 = arith.constant 0 : i32
    %c0_i32_0 = arith.constant 0 : i32
    return %arg0, %c0_i32 : i32, i32
  }
  func.func @transform_1(%arg0: i32) -> (i32, i32) {
    %c0_i32 = arith.constant 0 : i32
    %c0_i32_0 = arith.constant 0 : i32
    %c0_i32_1 = arith.constant 0 : i32
    return %c0_i32, %c0_i32_0 : i32, i32
  }
  func.func @transform_2(%arg0: i32) -> (i32, i32) {
    %c0_i32 = arith.constant 0 : i32
    %c0_i32_0 = arith.constant 0 : i32
    %c0_i32_1 = arith.constant 0 : i32
    return %c0_i32, %c0_i32_0 : i32, i32
  }
  func.func @transform_3(%arg0: i32) -> (i32, i32) {
    %c0_i32 = arith.constant 0 : i32
    %c0_i32_0 = arith.constant 0 : i32
    %c0_i32_1 = arith.constant 0 : i32
    return %c0_i32, %c0_i32_0 : i32, i32
  }
  func.func @transform_4(%arg0: i32) -> (i32, i32) {
    %c0_i32 = arith.constant 0 : i32
    %c0_i32_0 = arith.constant 0 : i32
    %c0_i32_1 = arith.constant 0 : i32
    return %c0_i32, %c0_i32_0 : i32, i32
  }
  func.func @transform_5(%arg0: i32) -> (i32, i32) {
    %c0_i32 = arith.constant 0 : i32
    %c0_i32_0 = arith.constant 0 : i32
    %c0_i32_1 = arith.constant 0 : i32
    return %c0_i32, %c0_i32_0 : i32, i32
  }
  func.func @transform_6(%arg0: i32) -> (i32, i32) {
    %c0_i32 = arith.constant 0 : i32
    %c0_i32_0 = arith.constant 0 : i32
    %c0_i32_1 = arith.constant 0 : i32
    return %c0_i32, %c0_i32_0 : i32, i32
  }
  func.func @transform_7(%arg0: i32) -> (i32, i32) {
    %c0_i32 = arith.constant 0 : i32
    %c0_i32_0 = arith.constant 0 : i32
    return %arg0, %c0_i32 : i32, i32
  }
}

</mosaic_0001>

<bundles_post_ra>
// kernel: sub.1
= control target key start
LH: loop header
LB: loop body
LE: loop exit
PB: predicated region body
PF: predicated region fallthrough
CT: control target
= control target key end

     0   :  { %s20_s0 = inlined_call_operand.<no memory space> [shape: f32[], index: 0, kind: input, shape index: {}]   ;;  %s21_s1 = inlined_call_operand.vmem [shape: f32[32], index: 1, kind: output, shape index: {}]  }
   0x1   :  { %v2_v0 = vstv %s20_s0 }
   0x2   :  { %3 = vst [vmem:[%s21_s1] sm:$0x1] %v2_v0 }

// kernel: skeleton_embedding_forward.1
= control target key start
LH: loop header
LB: loop body
LE: loop exit
PB: predicated region body
PF: predicated region fallthrough
CT: control target
= control target key end

     0   :  { %s8035_s24 = smov 0   ;;  %s9771_s0 = inlined_call_operand.vmem [shape: bf16[2048,256], index: 0, kind: input, shape index: {}]   ;;  %s9772_s1 = inlined_call_operand.vmem [shape: bf16[256,128], index: 1, kind: input, shape index: {}]   ;;  %s9773_s2 = inlined_call_operand.vmem [shape: f32[1,128], index: 2, kind: input, shape index: {}]   ;;  %s9774_s3 = inlined_call_operand.vmem [shape: f32[1,128], index: 3, kind: input, shape index: {}]   ;;  %s9775_s4 = inlined_call_operand.vmem [shape: bf16[1152,128], index: 4, kind: input, shape index: {}]   ;;  %s9776_s5 = inlined_call_operand.vmem [shape: f32[1,128], index: 5, kind: input, shape index: {}]   ;;  %s9777_s6 = inlined_call_operand.vmem [shape: f32[1,128], index: 6, kind: input, shape index: {}]   ;;  %s9778_s7 = inlined_call_operand.vmem [shape: bf16[512,128], index: 7, kind: output, shape index: {}]  }
   0x1 LB: > { %s5650_s25 = sadd.s32 4294967295, %s7992_s24   ;;  %p5654_p0 = scmp.ge.s32.totalorder %s7992_s24, 1  ;;  %s7992_s24 = sphi %s8035_s24, %s17_s24  }
   0x2   : > { %p239_p1 = scmp.lt.s32.totalorder %s7992_s24, 3 }
   0x4   : > { %p240_p2 = pnand %p5654_p0, %p239_p1 }
   0x6   : > { %243 = sbr.rel (%p240_p2) target bundleno = 2122 (0x84a), region = 48 }
   0xb   : > { %v7238_v0 = vld [vmem:[%s9772_s1 + $0x38] sm:$0xff]  ;;  %v7237_v1 = vld [vmem:[%s9772_s1 + $0x30] sm:$0xff]  ;;  %v7236_v2 = vld [vmem:[%s9772_s1 + $0x28] sm:$0xff]  ;;  %s5655_s9 = sshll.u32 %s5650_s25, 7  ;;  %s5658_s19 = sshll.u32 %s5650_s25, 5 }
   0xc   : > { %7941 = vmatpush.bf16.msra.mxu1 %v7238_v0  ;;  %1182 = vmatpush.bf16.msra.mxu0 %v7238_v0  ;;  %v7235_v3 = vld [vmem:[%s9772_s1 + $0x20] sm:$0xff]  ;;  %p273_p3 = scmp.lt.s32.totalorder %s5655_s9, 255  ;;  %v7234_v4 = vld [vmem:[%s9772_s1 + $0x18] sm:$0xff]  ;;  %v7233_v5 = vld [vmem:[%s9772_s1 + $0x10] sm:$0xff]  ;;  %p280_p4 = scmp.lt.s32.totalorder %s5658_s19, 63 }
   0xd   : > { %7942 = vmatpush.bf16.msra.mxu2 %v7238_v0  ;;  %7943 = vmatpush.bf16.msra.mxu3 %v7238_v0  ;;  %v7232_v6 = vld [vmem:[%s9772_s1 + $0x8] sm:$0xff]  ;;  %v7231_v7 = vld [vmem:[%s9772_s1] sm:$0xff]  ;;  %v7246_v10 = vld [vmem:[%s9772_s1 + $0x78] sm:$0xff] }
   0xe   : > { %s9928_s9 = smov (!%p273_p3, %s5655_s9), 255  ;;  %v7245_v12 = vld [vmem:[%s9772_s1 + $0x70] sm:$0xff]  ;;  %v7244_v13 = vld [vmem:[%s9772_s1 + $0x68] sm:$0xff]  ;;  %v7243_v14 = vld [vmem:[%s9772_s1 + $0x60] sm:$0xff]  ;;  %s9930_s19 = smov (!%p280_p4, %s5658_s19), 63 }
   0xf   : > { %s7102_s16 = sshll.u32 %s9928_s9, 3  ;;  %v7242_v17 = vld [vmem:[%s9772_s1 + $0x58] sm:$0xff]  ;;  %v7241_v19 = vld [vmem:[%s9772_s1 + $0x50] sm:$0xff]  ;;  %v7240_v23 = vld [vmem:[%s9772_s1 + $0x48] sm:$0xff]  ;;  %s5659_s25 = sshll.u32 %s9930_s19, 2 }
  0x10   : > { %7944 = vmatpush.bf16.msra.mxu1 %v7237_v1  ;;  %1183 = vmatpush.bf16.msra.mxu0 %v7237_v1  ;;  %s8069_s21 = scalar_lea.vmem %s9771_s0, %s7102_s16  ;;  %v7239_v24 = vld [vmem:[%s9772_s1 + $0x40] sm:$0xff]  ;;  %s9596_s29 = scalar_lea.vmem %s9778_s7, %s5659_s25 }
  0x11   : > { %7945 = vmatpush.bf16.msra.mxu2 %v7237_v1  ;;  %7946 = vmatpush.bf16.msra.mxu3 %v7237_v1  ;;  %v6078_v8 = vld [vmem:[%s8069_s21 + $0x340] sm:$0xf]  ;;  %v7208_v9 = vld [vmem:[%s8069_s21 + $0x344] sm:$0xf0]  ;;  %v6086_v15 = vld [vmem:[%s8069_s21 + $0x350] sm:$0xf] }
  0x12   : > { %v6079_v11 = vor.u32 %v7208_v9, %v6078_v8  ;;  %v7210_v16 = vld [vmem:[%s8069_s21 + $0x354] sm:$0xf0]  ;;  %v5662_v20 = vld [vmem:[%s8069_s21] sm:$0xf]  ;;  %v7104_v21 = vld [vmem:[%s8069_s21 + $0x4] sm:$0xf0] }
  0x13   : > { %v6087_v18 = vor.u32 %v7210_v16, %v6086_v15  ;;  %v5663_v22 = vor.u32 %v7104_v21, %v5662_v20  ;;  %v6094_v25 = vld [vmem:[%s8069_s21 + $0x360] sm:$0xf]  ;;  %v7212_v26 = vld [vmem:[%s8069_s21 + $0x364] sm:$0xf0]  ;;  %v5670_v28 = vld [vmem:[%s8069_s21 + $0x10] sm:$0xf] }
  0x14   : > { %7947 = vmatpush.bf16.msra.mxu1 %v7236_v2  ;;  %1184 = vmatpush.bf16.msra.mxu0 %v7236_v2  ;;  %v6095_v27 = vor.u32 %v7212_v26, %v6094_v25  ;;  %v7106_v29 = vld [vmem:[%s8069_s21 + $0x14] sm:$0xf0]  ;;  %v6102_v31 = vld [vmem:[%s8069_s21 + $0x370] sm:$0xf]  ;;  %v5678_v34 = vld [vmem:[%s8069_s21 + $0x20] sm:$0xf] }
  0x15   : > { %7948 = vmatpush.bf16.msra.mxu2 %v7236_v2  ;;  %7949 = vmatpush.bf16.msra.mxu3 %v7236_v2  ;;  %v5671_v30 = vor.u32 %v7106_v29, %v5670_v28  ;;  %v7214_v32 = vld [vmem:[%s8069_s21 + $0x374] sm:$0xf0]  ;;  %v7108_v35 = vld [vmem:[%s8069_s21 + $0x24] sm:$0xf0]  ;;  %v7103_v37 = vld [vmem:[%s8069_s21 + $0x4] sm:$0xf] }
  0x16   : > { %v6103_v33 = vor.u32 %v7214_v32, %v6102_v31  ;;  %v5679_v36 = vor.u32 %v7108_v35, %v5678_v34  ;;  %v5664_v38 = vld [vmem:[%s8069_s21 + $0x8] sm:$0xf0]  ;;  %v5686_v40 = vld [vmem:[%s8069_s21 + $0x30] sm:$0xf]  ;;  %v7110_v41 = vld [vmem:[%s8069_s21 + $0x34] sm:$0xf0] }
  0x17   : > { %v5667_v39 = vor.u32 %v7103_v37, %v5664_v38  ;;  %v5687_v42 = vor.u32 %v7110_v41, %v5686_v40  ;;  %v7105_v43 = vld [vmem:[%s8069_s21 + $0x14] sm:$0xf]  ;;  %v5672_v44 = vld [vmem:[%s8069_s21 + $0x18] sm:$0xf0]  ;;  %v5694_v46 = vld [vmem:[%s8069_s21 + $0x40] sm:$0xf] }
  0x18   : > { %7950 = vmatpush.bf16.msra.mxu1 %v7235_v3  ;;  %1185 = vmatpush.bf16.msra.mxu0 %v7235_v3  ;;  %v5675_v45 = vor.u32 %v7105_v43, %v5672_v44  ;;  %v7112_v47 = vld [vmem:[%s8069_s21 + $0x44] sm:$0xf0]  ;;  %v7107_v49 = vld [vmem:[%s8069_s21 + $0x24] sm:$0xf]  ;;  %v5680_v50 = vld [vmem:[%s8069_s21 + $0x28] sm:$0xf0] }
  0x19   : > { %7951 = vmatpush.bf16.msra.mxu2 %v7235_v3  ;;  %7952 = vmatpush.bf16.msra.mxu3 %v7235_v3  ;;  %v5695_v48 = vor.u32 %v7112_v47, %v5694_v46  ;;  %v5683_v51 = vor.u32 %v7107_v49, %v5680_v50  ;;  %v5702_v52 = vld [vmem:[%s8069_s21 + $0x50] sm:$0xf]  ;;  %v7114_v53 = vld [vmem:[%s8069_s21 + $0x54] sm:$0xf0]  ;;  %v7109_v55 = vld [vmem:[%s8069_s21 + $0x34] sm:$0xf] }
  0x1a   : > { %v5703_v54 = vor.u32 %v7114_v53, %v5702_v52  ;;  %v5688_v56 = vld [vmem:[%s8069_s21 + $0x38] sm:$0xf0]  ;;  %v5710_v58 = vld [vmem:[%s8069_s21 + $0x60] sm:$0xf]  ;;  %v7116_v59 = vld [vmem:[%s8069_s21 + $0x64] sm:$0xf0] }
  0x1b   : > { %v5691_v57 = vor.u32 %v7109_v55, %v5688_v56  ;;  %v5711_v60 = vor.u32 %v7116_v59, %v5710_v58  ;;  %v7111_v61 = vld [vmem:[%s8069_s21 + $0x44] sm:$0xf]  ;;  %v5696_v62 = vld [vmem:[%s8069_s21 + $0x48] sm:$0xf0]  ;;  %v5718_v2 = vld [vmem:[%s8069_s21 + $0x70] sm:$0xf] }
  0x1c   : > { %7953 = vmatpush.bf16.msra.mxu1 %v7234_v4  ;;  %1186 = vmatpush.bf16.msra.mxu0 %v7234_v4  ;;  %v5699_v63 = vor.u32 %v7111_v61, %v5696_v62  ;;  %v7118_v3 = vld [vmem:[%s8069_s21 + $0x74] sm:$0xf0]  ;;  %v5712_v15 = vld [vmem:[%s8069_s21 + $0x68] sm:$0xf0]  ;;  %v5734_v21 = vld [vmem:[%s8069_s21 + $0x90] sm:$0xf] }
  0x1d   : > { %7954 = vmatpush.bf16.msra.mxu2 %v7234_v4  ;;  %7955 = vmatpush.bf16.msra.mxu3 %v7234_v4  ;;  %v5719_v4 = vor.u32 %v7118_v3, %v5718_v2  ;;  %v5720_v25 = vld [vmem:[%s8069_s21 + $0x78] sm:$0xf0]  ;;  %v5742_v31 = vld [vmem:[%s8069_s21 + $0xa0] sm:$0xf]  ;;  %v7124_v32 = vld [vmem:[%s8069_s21 + $0xa4] sm:$0xf0] }
  0x1e   : > { %v7119_v34 = vld [vmem:[%s8069_s21 + $0x84] sm:$0xf]  ;;  %v5728_v35 = vld [vmem:[%s8069_s21 + $0x88] sm:$0xf0]  ;;  %v8165_v40 = vld [vmem:[%s9773_s2] ss:$0 sm:$0xff] }
  0x1f   : > { %v5750_v46 = vld [vmem:[%s8069_s21 + $0xb0] sm:$0xf]  ;;  %v7126_v47 = vld [vmem:[%s8069_s21 + $0xb4] sm:$0xf0]  ;;  %v5736_v52 = vld [vmem:[%s8069_s21 + $0x98] sm:$0xf0] }
  0x20   : > { %7956 = vmatpush.bf16.msra.mxu1 %v7233_v5  ;;  %1187 = vmatpush.bf16.msra.mxu0 %v7233_v5  ;;  %v5758_v3 = vld [vmem:[%s8069_s21 + $0xc0] sm:$0xf] }
  0x21   : > { %7957 = vmatpush.bf16.msra.mxu2 %v7233_v5  ;;  %7958 = vmatpush.bf16.msra.mxu3 %v7233_v5  ;;  %v7113_v5 = vld [vmem:[%s8069_s21 + $0x54] sm:$0xf] }
  0x24   : > { %7959 = vmatpush.bf16.msra.mxu1 %v7232_v6  ;;  %1188 = vmatpush.bf16.msra.mxu0 %v7232_v6 }
  0x25   : > { %7960 = vmatpush.bf16.msra.mxu2 %v7232_v6  ;;  %7961 = vmatpush.bf16.msra.mxu3 %v7232_v6  ;;  %v5704_v6 = vld [vmem:[%s8069_s21 + $0x58] sm:$0xf0] }
  0x28   : > { %7962 = vmatpush.bf16.msra.mxu1 %v7231_v7  ;;  %1189 = vmatpush.bf16.msra.mxu0 %v7231_v7 }
  0x29   : > { %7963 = vmatpush.bf16.msra.mxu2 %v7231_v7  ;;  %7964 = vmatpush.bf16.msra.mxu3 %v7231_v7  ;;  %v5707_v7 = vor.u32 %v7113_v5, %v5704_v6 }
  0x2b   : > { %1450 = vmatmul.bf16.vlgmr.msra.gmra.mxu1 %v6079_v11  ;;  %1190 = vmatmul.bf16.vlgmr.msra.gmra.mxu0 %v5663_v22  ;;  %v5726_v11 = vld [vmem:[%s8069_s21 + $0x80] sm:$0xf]  ;;  %v7122_v22 = vld [vmem:[%s8069_s21 + $0x94] sm:$0xf0] }
  0x2c   : > { %1511 = vmatpush.bf16.msrb.mxu1 %v7246_v10 }
  0x30   : > { %1512 = vmatpush.bf16.msrb.mxu1 %v7245_v12  ;;  %v7120_v12 = vld [vmem:[%s8069_s21 + $0x84] sm:$0xf0] }
  0x34   : > { %1513 = vmatpush.bf16.msrb.mxu1 %v7244_v13  ;;  %v5727_v13 = vor.u32 %v7120_v12, %v5726_v11  ;;  %v7123_v12 = vld [vmem:[%s8069_s21 + $0xa4] sm:$0xf] }
  0x38   : > { %1514 = vmatpush.bf16.msrb.mxu1 %v7243_v14  ;;  %v7115_v14 = vld [vmem:[%s8069_s21 + $0x64] sm:$0xf] }
  0x3b   : > { %1455 = vmatmul.bf16.gmra.mxu1 %v6087_v18  ;;  %1195 = vmatmul.bf16.gmra.mxu0 %v5671_v30 }
  0x3c   : > { %1515 = vmatpush.bf16.msrb.mxu1 %v7242_v17  ;;  %v5715_v17 = vor.u32 %v7115_v14, %v5712_v15 }
  0x40   : > { %1516 = vmatpush.bf16.msrb.mxu1 %v7241_v19 }
  0x44   : > { %1517 = vmatpush.bf16.msrb.mxu1 %v7240_v23  ;;  %v5735_v23 = vor.u32 %v7122_v22, %v5734_v21 }
  0x48   : > { %1518 = vmatpush.bf16.msrb.mxu1 %v7239_v24  ;;  %v7117_v24 = vld [vmem:[%s8069_s21 + $0x74] sm:$0xf] }
  0x49   : > { %v5723_v26 = vor.u32 %v7117_v24, %v5720_v25 }
  0x4b   : > { %1460 = vmatmul.bf16.gmra.mxu1 %v6095_v27  ;;  %1200 = vmatmul.bf16.gmra.mxu0 %v5679_v36  ;;  %v5731_v36 = vor.u32 %v7119_v34, %v5728_v35 }
  0x5b   : > { %1465 = vmatmul.bf16.gmra.mxu1 %v6103_v33  ;;  %1205 = vmatmul.bf16.gmra.mxu0 %v5687_v42  ;;  %v5743_v33 = vor.u32 %v7124_v32, %v5742_v31  ;;  %v8171_v42 = vld [vmem:[%s9774_s3] ss:$0 sm:$0xff]  ;;  %v5766_v31 = vld [vmem:[%s8069_s21 + $0xd0] sm:$0xf]  ;;  %v7130_v32 = vld [vmem:[%s8069_s21 + $0xd4] sm:$0xf0] }
  0x6b   : > { %1519 = vmatmul.bf16.vlgmr.msrb.gmra.mxu1 %v5667_v39  ;;  %1210 = vmatmul.bf16.gmra.mxu0 %v5695_v48  ;;  %v5751_v48 = vor.u32 %v7126_v47, %v5750_v46 }
  0x7b   : > { %1524 = vmatmul.bf16.gmra.mxu1 %v5675_v45  ;;  %1215 = vmatmul.bf16.gmra.mxu0 %v5703_v54 }
  0x8b   : > { %1529 = vmatmul.bf16.gmra.mxu1 %v5683_v51  ;;  %1220 = vmatmul.bf16.gmra.mxu0 %v5711_v60  ;;  %v7121_v51 = vld [vmem:[%s8069_s21 + $0x94] sm:$0xf] }
  0x8c   : > { %v5739_v56 = vor.u32 %v7121_v51, %v5736_v52  ;;  %v5774_v52 = vld [vmem:[%s8069_s21 + $0xe0] sm:$0xf] }
  0x9b   : > { %1534 = vmatmul.bf16.gmra.mxu1 %v5691_v57  ;;  %1225 = vmatmul.bf16.gmra.mxu0 %v5719_v4  ;;  %v7128_v4 = vld [vmem:[%s8069_s21 + $0xc4] sm:$0xf0] }
  0xa8   : > { %v8130_v0 = vpop.f32.mrf.mxu1  ;;  %v1191_v9 = vpop.f32.mrf.mxu0 }
  0xab   : > { %1539 = vmatmul.bf16.gmra.mxu1 %v5699_v63  ;;  %1230 = vmatmul.bf16.gmra.mxu0 %v5727_v13  ;;  %v5744_v13 = vld [vmem:[%s8069_s21 + $0xa8] sm:$0xf0] }
  0xb0   : > { %v8132_v1 = vpop.f32.mrf.mxu1  ;;  %v1193_v16 = vpop.f32.mrf.mxu0 }
  0xb8   : > { %v8138_v8 = vpop.f32.mrf.mxu1  ;;  %v1196_v19 = vpop.f32.mrf.mxu0 }
  0xbb   : > { %1544 = vmatmul.bf16.gmra.mxu1 %v5707_v7  ;;  %1235 = vmatmul.bf16.gmra.mxu0 %v5735_v23  ;;  %v5759_v7 = vor.u32 %v7128_v4, %v5758_v3 }
  0xc0   : > { %v8140_v10 = vpop.f32.mrf.mxu1  ;;  %v1198_v28 = vpop.f32.mrf.mxu0 }
  0xc8   : > { %v8146_v18 = vpop.f32.mrf.mxu1  ;;  %v1201_v30 = vpop.f32.mrf.mxu0 }
  0xcb   : > { %1549 = vmatmul.bf16.gmra.mxu1 %v5715_v17  ;;  %1240 = vmatmul.bf16.gmra.mxu0 %v5743_v33  ;;  %v5747_v17 = vor.u32 %v7123_v12, %v5744_v13  ;;  %v5767_v33 = vor.u32 %v7130_v32, %v5766_v31  ;;  %v7134_v12 = vld [vmem:[%s8069_s21 + $0xf4] sm:$0xf0] }
  0xd0   : > { %v8148_v20 = vpop.f32.mrf.mxu1  ;;  %v1203_v38 = vpop.f32.mrf.mxu0 }
  0xd8   : > { %v8154_v27 = vpop.f32.mrf.mxu1  ;;  %v8173_v45 = vpop.f32.mrf.mxu0 }
  0xdb   : > { %1554 = vmatmul.bf16.gmra.mxu1 %v5723_v26  ;;  %1245 = vmatmul.bf16.gmra.mxu0 %v5751_v48 }
  0xe0   : > { %v8156_v29 = vpop.f32.mrf.mxu1  ;;  %v1208_v59 = vpop.f32.mrf.mxu0 }
  0xe8   : > { %v1520_v37 = vpop.f32.mrf.mxu1  ;;  %v8183_v2 = vpop.f32.mrf.mxu0 }
  0xe9   : > { %v1521_v39 = vadd.f32 %v1520_v37, %v1191_v9  ;;  %v5752_v37 = vld [vmem:[%s8069_s21 + $0xb8] sm:$0xf0] }
  0xeb   : > { %1559 = vmatmul.bf16.gmra.mxu1 %v5731_v36  ;;  %v1844_v41 = vmul.f32 %v8165_v40, %v1521_v39  ;;  %1250 = vmatmul.bf16.gmra.mxu0 %v5759_v7  ;;  %v7125_v36 = vld [vmem:[%s8069_s21 + $0xb4] sm:$0xf] }
  0xed   : > { %v1976_v49 = vadd.f32 %v8171_v42, %v1844_v41 }
  0xef   : > { %v2104_v54 = vmax.f32 %v1976_v49, 0.0 }
  0xf0   : > { %v1522_v43 = vpop.f32.mrf.mxu1  ;;  %v1213_v22 = vpop.f32.mrf.mxu0 }
  0xf1   : > { %v1523_v44 = vadd.f32 %v1522_v43, %v1193_v16  ;;  %v5755_v43 = vor.u32 %v7125_v36, %v5752_v37  ;;  %v7136_v36 = vld [vmem:[%s8069_s21 + $0x104] sm:$0xf0] }
  0xf3   : > { %v1845_v50 = vmul.f32 %v8165_v40, %v1523_v44 }
  0xf5   : > { %v1977_v53 = vadd.f32 %v8171_v42, %v1845_v50 }
  0xf7   : > { %v2105_v55 = vmax.f32 %v1977_v53, 0.0  ;;  %v7132_v53 = vld [vmem:[%s8069_s21 + $0xe4] sm:$0xf0] }
  0xf8   : > { %v1525_v57 = vpop.f32.mrf.mxu1 }
  0xf9   : > { %v7466_v58 = vpack.c.bf16 %v2105_v55, %v2104_v54  ;;  %v1526_v60 = vadd.f32 %v1525_v57, %v1196_v19  ;;  %v5775_v54 = vor.u32 %v7132_v53, %v5774_v52  ;;  %v7127_v57 = vld [vmem:[%s8069_s21 + $0xc4] sm:$0xf] }
  0xfb   : > { %7467 = vst [vmem:[#allocation2 + $0x30] sm:$0xff] %v7466_v58   ;;  %1564 = vmatmul.bf16.gmra.mxu1 %v5739_v56  ;;  %v1846_v61 = vmul.f32 %v8165_v40, %v1526_v60  ;;  %1255 = vmatmul.bf16.gmra.mxu0 %v5767_v33  ;;  %v5760_v58 = vld [vmem:[%s8069_s21 + $0xc8] sm:$0xf0] }
  0xfd   : > { %v1978_v9 = vadd.f32 %v8171_v42, %v1846_v61 }
  0xff   : > { %v2106_v15 = vmax.f32 %v1978_v9, 0.0 }
 0x100   : > { %v1527_v62 = vpop.f32.mrf.mxu1 }
 0x101   : > { %v1528_v63 = vadd.f32 %v1527_v62, %v1198_v28  ;;  %v1216_v28 = vpop.f32.mrf.mxu0  ;;  %v5763_v62 = vor.u32 %v7127_v57, %v5760_v58  ;;  %v7138_v57 = vld [vmem:[%s8069_s21 + $0x114] sm:$0xf0] }
 0x102   : > { %v2829_v5 = vld [vmem:[#allocation2 + $0x30] sm:$0xf]  ;;  %v2830_v6 = vld [vmem:[#allocation2 + $0x34] sm:$0xf] }
 0x103   : > { %2861 = vst [vmem:[#allocation3 + $0x10] sm:$0xf] %v2829_v5  ;;  %v1847_v11 = vmul.f32 %v8165_v40, %v1528_v63 }
 0x104   : > { %2862 = vst [vmem:[#allocation3 + $0x34] sm:$0xf] %v2830_v6 }
 0x105   : > { %v1979_v14 = vadd.f32 %v8171_v42, %v1847_v11  ;;  %v5782_v11 = vld [vmem:[%s8069_s21 + $0xf0] sm:$0xf] }
 0x106   : > { %v5783_v13 = vor.u32 %v7134_v12, %v5782_v11 }
 0x107   : > { %v2107_v16 = vmax.f32 %v1979_v14, 0.0 }
 0x108   : > { %v1530_v19 = vpop.f32.mrf.mxu1 }
 0x109   : > { %v7471_v21 = vpack.c.bf16 %v2107_v16, %v2106_v15  ;;  %v1531_v23 = vadd.f32 %v1530_v19, %v1201_v30  ;;  %v1218_v46 = vpop.f32.mrf.mxu0  ;;  %v7129_v16 = vld [vmem:[%s8069_s21 + $0xd4] sm:$0xf] }
 0x10b   : > { %7863 = vst [vmem:[#allocation2 + $0x38] sm:$0xff] %v7471_v21   ;;  %1569 = vmatmul.bf16.gmra.mxu1 %v5747_v17  ;;  %v1848_v24 = vmul.f32 %v8165_v40, %v1531_v23  ;;  %1260 = vmatmul.bf16.gmra.mxu0 %v5775_v54  ;;  %v5768_v17 = vld [vmem:[%s8069_s21 + $0xd8] sm:$0xf0] }
 0x10c   : > { %v5771_v23 = vor.u32 %v7129_v16, %v5768_v17  ;;  %v7140_v16 = vld [vmem:[%s8069_s21 + $0x124] sm:$0xf0] }
 0x10d   : > { %v1980_v34 = vadd.f32 %v8171_v42, %v1848_v24 }
 0x10f   : > { %v2108_v39 = vmax.f32 %v1980_v34, 0.0 }
 0x110   : > { %v1532_v25 = vpop.f32.mrf.mxu1 }
 0x111   : > { %v1533_v26 = vadd.f32 %v1532_v25, %v1203_v38  ;;  %v1221_v51 = vpop.f32.mrf.mxu0 }
 0x113   : > { %v1849_v35 = vmul.f32 %v8165_v40, %v1533_v26 }
 0x115   : > { %v1981_v30 = vadd.f32 %v8171_v42, %v1849_v35  ;;  %v5790_v35 = vld [vmem:[%s8069_s21 + $0x100] sm:$0xf] }
 0x116   : > { %v5791_v37 = vor.u32 %v7136_v36, %v5790_v35 }
 0x117   : > { %v2109_v41 = vmax.f32 %v1981_v30, 0.0 }
 0x118   : > { %v1535_v38 = vpop.f32.mrf.mxu1 }
 0x119   : > { %v7476_v44 = vpack.c.bf16 %v2109_v41, %v2108_v39  ;;  %v1536_v47 = vadd.f32 %v1535_v38, %v8173_v45  ;;  %v1223_v3 = vpop.f32.mrf.mxu0  ;;  %v7131_v41 = vld [vmem:[%s8069_s21 + $0xe4] sm:$0xf] }
 0x11b   : > { %7864 = vst [vmem:[#allocation2 + $0x40] sm:$0xff] %v7476_v44   ;;  %1574 = vmatmul.bf16.gmra.mxu1 %v5755_v43  ;;  %v1850_v48 = vmul.f32 %v8165_v40, %v1536_v47  ;;  %1265 = vmatmul.bf16.gmra.mxu0 %v5783_v13  ;;  %v5776_v43 = vld [vmem:[%s8069_s21 + $0xe8] sm:$0xf0] }
 0x11c   : > { %v5779_v47 = vor.u32 %v7131_v41, %v5776_v43  ;;  %v7142_v41 = vld [vmem:[%s8069_s21 + $0x134] sm:$0xf0] }
 0x11d   : > { %v1982_v55 = vadd.f32 %v8171_v42, %v1850_v48 }
 0x11f   : > { %v2110_v60 = vmax.f32 %v1982_v55, 0.0 }
 0x120   : > { %v1537_v49 = vpop.f32.mrf.mxu1 }
 0x121   : > { %v1538_v50 = vadd.f32 %v1537_v49, %v1208_v59  ;;  %v1226_v9 = vpop.f32.mrf.mxu0 }
 0x123   : > { %v1851_v56 = vmul.f32 %v8165_v40, %v1538_v50 }
 0x125   : > { %v1983_v45 = vadd.f32 %v8171_v42, %v1851_v56  ;;  %v5798_v56 = vld [vmem:[%s8069_s21 + $0x110] sm:$0xf] }
 0x126   : > { %v5799_v58 = vor.u32 %v7138_v57, %v5798_v56 }
 0x127   : > { %v2111_v61 = vmax.f32 %v1983_v45, 0.0 }
 0x128   : > { %v1540_v59 = vpop.f32.mrf.mxu1 }
 0x129   : > { %v7481_v63 = vpack.c.bf16 %v2111_v61, %v2110_v60  ;;  %v1541_v4 = vadd.f32 %v1540_v59, %v8183_v2  ;;  %v1228_v25 = vpop.f32.mrf.mxu0  ;;  %v7133_v61 = vld [vmem:[%s8069_s21 + $0xf4] sm:$0xf] }
 0x12b   : > { %7865 = vst [vmem:[#allocation2 + $0x48] sm:$0xff] %v7481_v63   ;;  %1579 = vmatmul.bf16.gmra.mxu1 %v5763_v62  ;;  %v1852_v5 = vmul.f32 %v8165_v40, %v1541_v4  ;;  %1270 = vmatmul.bf16.gmra.mxu0 %v5791_v37  ;;  %v5784_v62 = vld [vmem:[%s8069_s21 + $0xf8] sm:$0xf0] }
 0x12c   : > { %v5787_v4 = vor.u32 %v7133_v61, %v5784_v62  ;;  %v7144_v61 = vld [vmem:[%s8069_s21 + $0x144] sm:$0xf0] }
 0x12d   : > { %v1984_v14 = vadd.f32 %v8171_v42, %v1852_v5 }
 0x12f   : > { %v2112_v19 = vmax.f32 %v1984_v14, 0.0 }
 0x130   : > { %v1542_v6 = vpop.f32.mrf.mxu1 }
 0x131   : > { %v1543_v7 = vadd.f32 %v1542_v6, %v1213_v22  ;;  %v1231_v34 = vpop.f32.mrf.mxu0 }
 0x133   : > { %v1853_v15 = vmul.f32 %v8165_v40, %v1543_v7 }
 0x135   : > { %v1985_v2 = vadd.f32 %v8171_v42, %v1853_v15  ;;  %v5806_v15 = vld [vmem:[%s8069_s21 + $0x120] sm:$0xf] }
 0x136   : > { %v5807_v17 = vor.u32 %v7140_v16, %v5806_v15 }
 0x137   : > { %v2113_v21 = vmax.f32 %v1985_v2, 0.0 }
 0x138   : > { %v1545_v22 = vpop.f32.mrf.mxu1 }
 0x139   : > { %v7486_v24 = vpack.c.bf16 %v2113_v21, %v2112_v19  ;;  %v1546_v26 = vadd.f32 %v1545_v22, %v1216_v28  ;;  %v1233_v49 = vpop.f32.mrf.mxu0  ;;  %v7135_v21 = vld [vmem:[%s8069_s21 + $0x104] sm:$0xf] }
 0x13b   : > { %7866 = vst [vmem:[#allocation2 + $0x58] sm:$0xff] %v7486_v24   ;;  %1584 = vmatmul.bf16.gmra.mxu1 %v5771_v23  ;;  %v1854_v31 = vmul.f32 %v8165_v40, %v1546_v26  ;;  %1275 = vmatmul.bf16.gmra.mxu0 %v5799_v58  ;;  %v5792_v23 = vld [vmem:[%s8069_s21 + $0x108] sm:$0xf0] }
 0x13c   : > { %v5795_v26 = vor.u32 %v7135_v21, %v5792_v23  ;;  %v7146_v21 = vld [vmem:[%s8069_s21 + $0x154] sm:$0xf0] }
 0x13d   : > { %v1986_v30 = vadd.f32 %v8171_v42, %v1854_v31 }
 0x13f   : > { %v2114_v38 = vmax.f32 %v1986_v30, 0.0 }
 0x140   : > { %v1547_v32 = vpop.f32.mrf.mxu1 }
 0x141   : > { %v1548_v33 = vadd.f32 %v1547_v32, %v1218_v46  ;;  %v1236_v55 = vpop.f32.mrf.mxu0 }
 0x143   : > { %v1855_v39 = vmul.f32 %v8165_v40, %v1548_v33 }
 0x145   : > { %v1987_v28 = vadd.f32 %v8171_v42, %v1855_v39  ;;  %v5814_v39 = vld [vmem:[%s8069_s21 + $0x130] sm:$0xf] }
 0x146   : > { %v5815_v43 = vor.u32 %v7142_v41, %v5814_v39 }
 0x147   : > { %v2115_v44 = vmax.f32 %v1987_v28, 0.0 }
 0x148   : > { %v1550_v46 = vpop.f32.mrf.mxu1 }
 0x149   : > { %v7491_v48 = vpack.c.bf16 %v2115_v44, %v2114_v38  ;;  %v1551_v50 = vadd.f32 %v1550_v46, %v1221_v51  ;;  %v1238_v6 = vpop.f32.mrf.mxu0  ;;  %v7137_v44 = vld [vmem:[%s8069_s21 + $0x114] sm:$0xf] }
 0x14b   : > { %7867 = vst [vmem:[#allocation2 + $0x60] sm:$0xff] %v7491_v48   ;;  %1589 = vmatmul.bf16.gmra.mxu1 %v5779_v47  ;;  %v1856_v52 = vmul.f32 %v8165_v40, %v1551_v50  ;;  %1280 = vmatmul.bf16.gmra.mxu0 %v5807_v17  ;;  %v5800_v47 = vld [vmem:[%s8069_s21 + $0x118] sm:$0xf0] }
 0x14c   : > { %v5803_v50 = vor.u32 %v7137_v44, %v5800_v47  ;;  %v7148_v44 = vld [vmem:[%s8069_s21 + $0x164] sm:$0xf0] }
 0x14d   : > { %v1988_v45 = vadd.f32 %v8171_v42, %v1856_v52 }
 0x14f   : > { %v2116_v59 = vmax.f32 %v1988_v45, 0.0 }
 0x150   : > { %v1552_v53 = vpop.f32.mrf.mxu1 }
 0x151   : > { %v1553_v54 = vadd.f32 %v1552_v53, %v1223_v3  ;;  %v1241_v14 = vpop.f32.mrf.mxu0 }
 0x153   : > { %v1857_v60 = vmul.f32 %v8165_v40, %v1553_v54 }
 0x155   : > { %v1989_v51 = vadd.f32 %v8171_v42, %v1857_v60  ;;  %v5822_v60 = vld [vmem:[%s8069_s21 + $0x140] sm:$0xf] }
 0x156   : > { %v5823_v62 = vor.u32 %v7144_v61, %v5822_v60  ;;  %v2832_v60 = vld [vmem:[#allocation2 + $0x3c] sm:$0xf] }
 0x157   : > { %v2117_v63 = vmax.f32 %v1989_v51, 0.0  ;;  %2864 = vst [vmem:[#allocation3 + $0x7c] sm:$0xf] %v2832_v60 }
 0x158   : > { %v1555_v3 = vpop.f32.mrf.mxu1 }
 0x159   : > { %v7496_v5 = vpack.c.bf16 %v2117_v63, %v2116_v59  ;;  %v1556_v7 = vadd.f32 %v1555_v3, %v1226_v9  ;;  %v1243_v32 = vpop.f32.mrf.mxu0  ;;  %v7139_v63 = vld [vmem:[%s8069_s21 + $0x124] sm:$0xf] }
 0x15b   : > { %7868 = vst [vmem:[#allocation2 + $0x68] sm:$0xff] %v7496_v5   ;;  %1594 = vmatmul.bf16.gmra.mxu1 %v5787_v4  ;;  %v1858_v11 = vmul.f32 %v8165_v40, %v1556_v7  ;;  %1285 = vmatmul.bf16.gmra.mxu0 %v5815_v43  ;;  %v5808_v4 = vld [vmem:[%s8069_s21 + $0x128] sm:$0xf0] }
 0x15c   : > { %v5811_v7 = vor.u32 %v7139_v63, %v5808_v4  ;;  %v5846_v4 = vld [vmem:[%s8069_s21 + $0x170] sm:$0xf] }
 0x15d   : > { %v1990_v2 = vadd.f32 %v8171_v42, %v1858_v11 }
 0x15f   : > { %v2118_v22 = vmax.f32 %v1990_v2, 0.0 }
 0x160   : > { %v1557_v12 = vpop.f32.mrf.mxu1 }
 0x161   : > { %v1558_v13 = vadd.f32 %v1557_v12, %v1228_v25  ;;  %v1246_v30 = vpop.f32.mrf.mxu0 }
 0x163   : > { %v1859_v19 = vmul.f32 %v8165_v40, %v1558_v13 }
 0x165   : > { %v1991_v9 = vadd.f32 %v8171_v42, %v1859_v19  ;;  %v5830_v19 = vld [vmem:[%s8069_s21 + $0x150] sm:$0xf] }
 0x166   : > { %v5831_v23 = vor.u32 %v7146_v21, %v5830_v19  ;;  %v2833_v21 = vld [vmem:[#allocation2 + $0x40] sm:$0xf] }
 0x167   : > { %v2119_v24 = vmax.f32 %v1991_v9, 0.0  ;;  %2865 = vst [vmem:[#allocation3 + $0xa0] sm:$0xf] %v2833_v21 }
 0x168   : > { %v1560_v25 = vpop.f32.mrf.mxu1 }
 0x169   : > { %v7501_v31 = vpack.c.bf16 %v2119_v24, %v2118_v22  ;;  %v1561_v33 = vadd.f32 %v1560_v25, %v1231_v34  ;;  %v1248_v53 = vpop.f32.mrf.mxu0  ;;  %v7141_v24 = vld [vmem:[%s8069_s21 + $0x134] sm:$0xf] }
 0x16b   : > { %7869 = vst [vmem:[#allocation2 + $0x70] sm:$0xff] %v7501_v31   ;;  %1599 = vmatmul.bf16.gmra.mxu1 %v5795_v26  ;;  %v1860_v35 = vmul.f32 %v8165_v40, %v1561_v33  ;;  %1290 = vmatmul.bf16.gmra.mxu0 %v5823_v62  ;;  %v5816_v26 = vld [vmem:[%s8069_s21 + $0x138] sm:$0xf0] }
 0x16c   : > { %v5819_v33 = vor.u32 %v7141_v24, %v5816_v26 }
 0x16d   : > { %v1992_v28 = vadd.f32 %v8171_v42, %v1860_v35 }
 0x16f   : > { %v2120_v46 = vmax.f32 %v1992_v28, 0.0 }
 0x170   : > { %v1562_v36 = vpop.f32.mrf.mxu1 }
 0x171   : > { %v1563_v37 = vadd.f32 %v1562_v36, %v1233_v49  ;;  %v8251_v45 = vpop.f32.mrf.mxu0 }
 0x173   : > { %v1861_v38 = vmul.f32 %v8165_v40, %v1563_v37 }
 0x175   : > { %v1993_v34 = vadd.f32 %v8171_v42, %v1861_v38  ;;  %v5838_v38 = vld [vmem:[%s8069_s21 + $0x160] sm:$0xf] }
 0x176   : > { %v5839_v47 = vor.u32 %v7148_v44, %v5838_v38 }
 0x177   : > { %v2121_v48 = vmax.f32 %v1993_v34, 0.0 }
 0x178   : > { %v1565_v49 = vpop.f32.mrf.mxu1 }
 0x179   : > { %v7506_v52 = vpack.c.bf16 %v2121_v48, %v2120_v46  ;;  %v1566_v54 = vadd.f32 %v1565_v49, %v1236_v55  ;;  %v1253_v12 = vpop.f32.mrf.mxu0  ;;  %v7143_v48 = vld [vmem:[%s8069_s21 + $0x144] sm:$0xf] }
 0x17b   : > { %7870 = vst [vmem:[#allocation2 + $0x80] sm:$0xff] %v7506_v52   ;;  %1604 = vmatmul.bf16.gmra.mxu1 %v5803_v50  ;;  %v1862_v56 = vmul.f32 %v8165_v40, %v1566_v54  ;;  %1295 = vmatmul.bf16.gmra.mxu0 %v5831_v23  ;;  %v5824_v50 = vld [vmem:[%s8069_s21 + $0x148] sm:$0xf0]  ;;  %v2834_v23 = vld [vmem:[#allocation2 + $0x44] sm:$0xf] }
 0x17c   : > { %v5827_v54 = vor.u32 %v7143_v48, %v5824_v50  ;;  %2866 = vst [vmem:[#allocation3 + $0xc4] sm:$0xf] %v2834_v23 }
 0x17d   : > { %v1994_v51 = vadd.f32 %v8171_v42, %v1862_v56 }
 0x17f   : > { %v2122_v3 = vmax.f32 %v1994_v51, 0.0 }
 0x180   : > { %v1567_v57 = vpop.f32.mrf.mxu1 }
 0x181   : > { %v1568_v58 = vadd.f32 %v1567_v57, %v1238_v6  ;;  %v8261_v2 = vpop.f32.mrf.mxu0 }
 0x183   : > { %v1863_v59 = vmul.f32 %v8165_v40, %v1568_v58  ;;  %v2831_v58 = vld [vmem:[#allocation2 + $0x38] sm:$0xf] }
 0x184   : > { %2863 = vst [vmem:[#allocation3 + $0x58] sm:$0xf] %v2831_v58 }
 0x185   : > { %v1995_v55 = vadd.f32 %v8171_v42, %v1863_v59 }
 0x187   : > { %v2123_v5 = vmax.f32 %v1995_v55, 0.0  ;;  %v7150_v55 = vld [vmem:[%s8069_s21 + $0x174] sm:$0xf0] }
 0x188   : > { %v1570_v6 = vpop.f32.mrf.mxu1 }
 0x189   : > { %v7511_v11 = vpack.c.bf16 %v2123_v5, %v2122_v3  ;;  %v1571_v13 = vadd.f32 %v1570_v6, %v1241_v14  ;;  %v1258_v36 = vpop.f32.mrf.mxu0  ;;  %v5847_v3 = vor.u32 %v7150_v55, %v5846_v4  ;;  %v7145_v6 = vld [vmem:[%s8069_s21 + $0x154] sm:$0xf] }
 0x18b   : > { %7871 = vst [vmem:[#allocation2 + $0x88] sm:$0xff] %v7511_v11   ;;  %1609 = vmatmul.bf16.gmra.mxu1 %v5811_v7  ;;  %v1864_v15 = vmul.f32 %v8165_v40, %v1571_v13  ;;  %1300 = vmatmul.bf16.gmra.mxu0 %v5839_v47  ;;  %v5832_v11 = vld [vmem:[%s8069_s21 + $0x158] sm:$0xf0] }
 0x18d   : > { %v1996_v9 = vadd.f32 %v8171_v42, %v1864_v15 }
 0x18f   : > { %v2124_v25 = vmax.f32 %v1996_v9, 0.0 }
 0x190   : > { %v1572_v16 = vpop.f32.mrf.mxu1 }
 0x191   : > { %v1573_v17 = vadd.f32 %v1572_v16, %v1243_v32  ;;  %v8271_v28 = vpop.f32.mrf.mxu0  ;;  %v5835_v16 = vor.u32 %v7145_v6, %v5832_v11 }
 0x193   : > { %v1865_v22 = vmul.f32 %v8165_v40, %v1573_v17 }
 0x195   : > { %v1997_v14 = vadd.f32 %v8171_v42, %v1865_v22 }
 0x197   : > { %v2125_v31 = vmax.f32 %v1997_v14, 0.0 }
 0x198   : > { %v1575_v32 = vpop.f32.mrf.mxu1 }
 0x199   : > { %v7516_v35 = vpack.c.bf16 %v2125_v31, %v2124_v25  ;;  %v1576_v37 = vadd.f32 %v1575_v32, %v1246_v30  ;;  %v1263_v57 = vpop.f32.mrf.mxu0  ;;  %v5854_v25 = vld [vmem:[%s8069_s21 + $0x180] sm:$0xf]  ;;  %v7152_v31 = vld [vmem:[%s8069_s21 + $0x184] sm:$0xf0] }
 0x19b   : > { %7872 = vst [vmem:[#allocation2 + $0x90] sm:$0xff] %v7516_v35   ;;  %1614 = vmatmul.bf16.gmra.mxu1 %v5819_v33  ;;  %v1866_v39 = vmul.f32 %v8165_v40, %v1576_v37  ;;  %1305 = vmatmul.bf16.gmra.mxu0 %v5847_v3  ;;  %v5855_v33 = vor.u32 %v7152_v31, %v5854_v25  ;;  %v7147_v37 = vld [vmem:[%s8069_s21 + $0x164] sm:$0xf] }
 0x19d   : > { %v1998_v34 = vadd.f32 %v8171_v42, %v1866_v39  ;;  %v5840_v39 = vld [vmem:[%s8069_s21 + $0x168] sm:$0xf0] }
 0x19e   : > { %v5843_v38 = vor.u32 %v7147_v37, %v5840_v39 }
 0x19f   : > { %v2126_v30 = vmax.f32 %v1998_v34, 0.0  ;;  %v2835_v34 = vld [vmem:[#allocation2 + $0x48] sm:$0xf] }
 0x1a0   : > { %v1577_v41 = vpop.f32.mrf.mxu1  ;;  %2867 = vst [vmem:[#allocation3 + $0xe8] sm:$0xf] %v2835_v34 }
 0x1a1   : > { %v1578_v43 = vadd.f32 %v1577_v41, %v1248_v53  ;;  %v8282_v63 = vpop.f32.mrf.mxu0 }
 0x1a3   : > { %v1867_v46 = vmul.f32 %v8165_v40, %v1578_v43 }
 0x1a5   : > { %v1999_v49 = vadd.f32 %v8171_v42, %v1867_v46  ;;  %v2836_v46 = vld [vmem:[#allocation2 + $0x4c] sm:$0xf] }
 0x1a6   : > { %2868 = vst [vmem:[#allocation3 + $0x10c] sm:$0xf] %v2836_v46 }
 0x1a7   : > { %v2127_v52 = vmax.f32 %v1999_v49, 0.0 }
 0x1a8   : > { %v1580_v53 = vpop.f32.mrf.mxu1 }
 0x1a9   : > { %v7521_v56 = vpack.c.bf16 %v2127_v52, %v2126_v30  ;;  %v1581_v61 = vadd.f32 %v1580_v53, %v8251_v45  ;;  %v1268_v19 = vpop.f32.mrf.mxu0  ;;  %v7154_v53 = vld [vmem:[%s8069_s21 + $0x194] sm:$0xf0] }
 0x1ab   : > { %7873 = vst [vmem:[#allocation2 + $0x98] sm:$0xff] %v7521_v56   ;;  %1619 = vmatmul.bf16.gmra.mxu1 %v5827_v54  ;;  %v1868_v62 = vmul.f32 %v8165_v40, %v1581_v61  ;;  %1310 = vmatmul.bf16.gmra.mxu0 %v5855_v33  ;;  %v5862_v54 = vld [vmem:[%s8069_s21 + $0x190] sm:$0xf]  ;;  %v7149_v61 = vld [vmem:[%s8069_s21 + $0x174] sm:$0xf] }
 0x1ac   : > { %v5863_v56 = vor.u32 %v7154_v53, %v5862_v54 }
 0x1ad   : > { %v2000_v5 = vadd.f32 %v8171_v42, %v1868_v62  ;;  %v5848_v62 = vld [vmem:[%s8069_s21 + $0x178] sm:$0xf0] }
 0x1ae   : > { %v5851_v4 = vor.u32 %v7149_v61, %v5848_v62 }
 0x1af   : > { %v2128_v13 = vmax.f32 %v2000_v5, 0.0  ;;  %v2837_v5 = vld [vmem:[#allocation2 + $0x58] sm:$0xf] }
 0x1b0   : > { %v1582_v51 = vpop.f32.mrf.mxu1  ;;  %2869 = vst [vmem:[#allocation3 + $0x130] sm:$0xf] %v2837_v5 }
 0x1b1   : > { %v1583_v59 = vadd.f32 %v1582_v51, %v1253_v12  ;;  %v8293_v14 = vpop.f32.mrf.mxu0 }
 0x1b3   : > { %v1869_v7 = vmul.f32 %v8165_v40, %v1583_v59 }
 0x1b5   : > { %v2001_v45 = vadd.f32 %v8171_v42, %v1869_v7  ;;  %v2838_v7 = vld [vmem:[#allocation2 + $0x5c] sm:$0xf] }
 0x1b6   : > { %2870 = vst [vmem:[#allocation3 + $0x154] sm:$0xf] %v2838_v7 }
 0x1b7   : > { %v2129_v15 = vmax.f32 %v2001_v45, 0.0 }
 0x1b8   : > { %v1585_v12 = vpop.f32.mrf.mxu1 }
 0x1b9   : > { %v7526_v17 = vpack.c.bf16 %v2129_v15, %v2128_v13  ;;  %v1586_v9 = vadd.f32 %v1585_v12, %v8261_v2  ;;  %v1273_v47 = vpop.f32.mrf.mxu0  ;;  %v7156_v12 = vld [vmem:[%s8069_s21 + $0x1a4] sm:$0xf0] }
 0x1bb   : > { %7874 = vst [vmem:[#allocation2 + $0xa8] sm:$0xff] %v7526_v17   ;;  %1624 = vmatmul.bf16.gmra.mxu1 %v5835_v16  ;;  %v1870_v22 = vmul.f32 %v8165_v40, %v1586_v9  ;;  %1315 = vmatmul.bf16.gmra.mxu0 %v5863_v56  ;;  %v5870_v16 = vld [vmem:[%s8069_s21 + $0x1a0] sm:$0xf]  ;;  %v7151_v9 = vld [vmem:[%s8069_s21 + $0x184] sm:$0xf] }
 0x1bc   : > { %v5871_v17 = vor.u32 %v7156_v12, %v5870_v16 }
 0x1bd   : > { %v2002_v32 = vadd.f32 %v8171_v42, %v1870_v22  ;;  %v5856_v22 = vld [vmem:[%s8069_s21 + $0x188] sm:$0xf0] }
 0x1be   : > { %v5859_v25 = vor.u32 %v7151_v9, %v5856_v22  ;;  %v2844_v22 = vld [vmem:[#allocation2 + $0x74] sm:$0xf] }
 0x1bf   : > { %v2130_v41 = vmax.f32 %v2002_v32, 0.0  ;;  %v2839_v32 = vld [vmem:[#allocation2 + $0x60] sm:$0xf]  ;;  %2876 = vst [vmem:[#allocation3 + $0x22c] sm:$0xf] %v2844_v22 }
 0x1c0   : > { %v1587_v24 = vpop.f32.mrf.mxu1  ;;  %2871 = vst [vmem:[#allocation3 + $0x178] sm:$0xf] %v2839_v32 }
 0x1c1   : > { %v1588_v26 = vadd.f32 %v1587_v24, %v1258_v36  ;;  %v8304_v52 = vpop.f32.mrf.mxu0 }
 0x1c3   : > { %v1871_v35 = vmul.f32 %v8165_v40, %v1588_v26 }
 0x1c5   : > { %v2003_v2 = vadd.f32 %v8171_v42, %v1871_v35  ;;  %v2840_v35 = vld [vmem:[#allocation2 + $0x64] sm:$0xf] }
 0x1c6   : > { %2872 = vst [vmem:[#allocation3 + $0x19c] sm:$0xf] %v2840_v35 }
 0x1c7   : > { %v2131_v43 = vmax.f32 %v2003_v2, 0.0 }
 0x1c8   : > { %v1590_v36 = vpop.f32.mrf.mxu1 }
 0x1c9   : > { %v7531_v44 = vpack.c.bf16 %v2131_v43, %v2130_v41  ;;  %v1591_v48 = vadd.f32 %v1590_v36, %v8271_v28  ;;  %v1278_v3 = vpop.f32.mrf.mxu0  ;;  %v7158_v36 = vld [vmem:[%s8069_s21 + $0x1b4] sm:$0xf0] }
 0x1cb   : > { %7875 = vst [vmem:[#allocation2 + $0xb0] sm:$0xff] %v7531_v44   ;;  %1629 = vmatmul.bf16.gmra.mxu1 %v5843_v38  ;;  %v1872_v50 = vmul.f32 %v8165_v40, %v1591_v48  ;;  %1320 = vmatmul.bf16.gmra.mxu0 %v5871_v17  ;;  %v5878_v38 = vld [vmem:[%s8069_s21 + $0x1b0] sm:$0xf]  ;;  %v7153_v48 = vld [vmem:[%s8069_s21 + $0x194] sm:$0xf] }
 0x1cc   : > { %v5879_v44 = vor.u32 %v7158_v36, %v5878_v38 }
 0x1cd   : > { %v2004_v58 = vadd.f32 %v8171_v42, %v1872_v50  ;;  %v5864_v50 = vld [vmem:[%s8069_s21 + $0x198] sm:$0xf0] }
 0x1ce   : > { %v5867_v54 = vor.u32 %v7153_v48, %v5864_v50  ;;  %v2845_v50 = vld [vmem:[#allocation2 + $0x80] sm:$0xf] }
 0x1cf   : > { %v2132_v51 = vmax.f32 %v2004_v58, 0.0  ;;  %v2841_v58 = vld [vmem:[#allocation2 + $0x68] sm:$0xf]  ;;  %2877 = vst [vmem:[#allocation3 + $0x250] sm:$0xf] %v2845_v50 }
 0x1d0   : > { %v1592_v49 = vpop.f32.mrf.mxu1  ;;  %2873 = vst [vmem:[#allocation3 + $0x1c0] sm:$0xf] %v2841_v58  ;;  %v5902_v58 = vld [vmem:[%s8069_s21 + $0x1e0] sm:$0xf] }
 0x1d1   : > { %v1593_v30 = vadd.f32 %v1592_v49, %v1263_v57  ;;  %v8315_v15 = vpop.f32.mrf.mxu0 }
 0x1d3   : > { %v1873_v60 = vmul.f32 %v8165_v40, %v1593_v30 }
 0x1d5   : > { %v2005_v28 = vadd.f32 %v8171_v42, %v1873_v60  ;;  %v2842_v60 = vld [vmem:[#allocation2 + $0x6c] sm:$0xf] }
 0x1d6   : > { %2874 = vst [vmem:[#allocation3 + $0x1e4] sm:$0xf] %v2842_v60  ;;  %v7164_v60 = vld [vmem:[%s8069_s21 + $0x1e4] sm:$0xf0] }
 0x1d7   : > { %v2133_v59 = vmax.f32 %v2005_v28, 0.0 }
 0x1d8   : > { %v1595_v57 = vpop.f32.mrf.mxu1 }
 0x1d9   : > { %v7536_v55 = vpack.c.bf16 %v2133_v59, %v2132_v51  ;;  %v1596_v6 = vadd.f32 %v1595_v57, %v8282_v63  ;;  %v8324_v33 = vpop.f32.mrf.mxu0  ;;  %v7160_v57 = vld [vmem:[%s8069_s21 + $0x1c4] sm:$0xf0] }
 0x1db   : > { %7876 = vst [vmem:[#allocation2 + $0xb8] sm:$0xff] %v7536_v55   ;;  %1634 = vmatmul.bf16.gmra.mxu1 %v5851_v4  ;;  %v1874_v11 = vmul.f32 %v8165_v40, %v1596_v6  ;;  %1325 = vmatmul.bf16.gmra.mxu0 %v5879_v44  ;;  %v5886_v4 = vld [vmem:[%s8069_s21 + $0x1c0] sm:$0xf] }
 0x1dc   : > { %v5887_v7 = vor.u32 %v7160_v57, %v5886_v4  ;;  %v7159_v4 = vld [vmem:[%s8069_s21 + $0x1c4] sm:$0xf]  ;;  %v5888_v57 = vld [vmem:[%s8069_s21 + $0x1c8] sm:$0xf0] }
 0x1dd   : > { %v2006_v21 = vadd.f32 %v8171_v42, %v1874_v11  ;;  %v7155_v11 = vld [vmem:[%s8069_s21 + $0x1a4] sm:$0xf] }
 0x1df   : > { %v2134_v24 = vmax.f32 %v2006_v21, 0.0 }
 0x1e0   : > { %v1597_v45 = vpop.f32.mrf.mxu1 }
 0x1e1   : > { %v1598_v13 = vadd.f32 %v1597_v45, %v1268_v19  ;;  %v8328_v43 = vpop.f32.mrf.mxu0  ;;  %v5872_v45 = vld [vmem:[%s8069_s21 + $0x1a8] sm:$0xf0] }
 0x1e2   : > { %v5875_v12 = vor.u32 %v7155_v11, %v5872_v45  ;;  %v2847_v45 = vld [vmem:[#allocation2 + $0x88] sm:$0xf] }
 0x1e3   : > { %v1875_v23 = vmul.f32 %v8165_v40, %v1598_v13  ;;  %2879 = vst [vmem:[#allocation3 + $0x298] sm:$0xf] %v2847_v45 }
 0x1e5   : > { %v2007_v63 = vadd.f32 %v8171_v42, %v1875_v23  ;;  %v2843_v23 = vld [vmem:[#allocation2 + $0x70] sm:$0xf] }
 0x1e6   : > { %2875 = vst [vmem:[#allocation3 + $0x208] sm:$0xf] %v2843_v23  ;;  %v7166_v23 = vld [vmem:[%s8069_s21 + $0x1f4] sm:$0xf0] }
 0x1e7   : > { %v2135_v26 = vmax.f32 %v2007_v63, 0.0 }
 0x1e8   : > { %v1600_v19 = vpop.f32.mrf.mxu1 }
 0x1e9   : > { %v7541_v31 = vpack.c.bf16 %v2135_v26, %v2134_v24  ;;  %v1601_v37 = vadd.f32 %v1600_v19, %v8293_v14  ;;  %v8337_v56 = vpop.f32.mrf.mxu0  ;;  %v5894_v19 = vld [vmem:[%s8069_s21 + $0x1d0] sm:$0xf] }
 0x1eb   : > { %7877 = vst [vmem:[#allocation2 + $0xc0] sm:$0xff] %v7541_v31   ;;  %1639 = vmatmul.bf16.gmra.mxu1 %v5859_v25  ;;  %v1876_v39 = vmul.f32 %v8165_v40, %v1601_v37  ;;  %1330 = vmatmul.bf16.gmra.mxu0 %v5887_v7  ;;  %v7162_v31 = vld [vmem:[%s8069_s21 + $0x1d4] sm:$0xf0] }
 0x1ec   : > { %v5895_v35 = vor.u32 %v7162_v31, %v5894_v19  ;;  %v7161_v19 = vld [vmem:[%s8069_s21 + $0x1d4] sm:$0xf]  ;;  %v5896_v31 = vld [vmem:[%s8069_s21 + $0x1d8] sm:$0xf0] }
 0x1ed   : > { %v2008_v34 = vadd.f32 %v8171_v42, %v1876_v39 }
 0x1ef   : > { %v2136_v49 = vmax.f32 %v2008_v34, 0.0 }
 0x1f0   : > { %v1602_v2 = vpop.f32.mrf.mxu1 }
 0x1f1   : > { %v1603_v41 = vadd.f32 %v1602_v2, %v1273_v47  ;;  %v8341_v59 = vpop.f32.mrf.mxu0 }
 0x1f3   : > { %v1877_v46 = vmul.f32 %v8165_v40, %v1603_v41  ;;  %v5880_v41 = vld [vmem:[%s8069_s21 + $0x1b8] sm:$0xf0] }
 0x1f5   : > { %v2009_v14 = vadd.f32 %v8171_v42, %v1877_v46 }
 0x1f7   : > { %v2137_v30 = vmax.f32 %v2009_v14, 0.0  ;;  %v2846_v14 = vld [vmem:[#allocation2 + $0x84] sm:$0xf] }
 0x1f8   : > { %v1605_v47 = vpop.f32.mrf.mxu1  ;;  %2878 = vst [vmem:[#allocation3 + $0x274] sm:$0xf] %v2846_v14 }
 0x1f9   : > { %v7546_v53 = vpack.c.bf16 %v2137_v30, %v2136_v49  ;;  %v1606_v61 = vadd.f32 %v1605_v47, %v8304_v52  ;;  %v8350_v9 = vpop.f32.mrf.mxu0 }
 0x1fb   : > { %7878 = vst [vmem:[#allocation2 + $0xf8] sm:$0xff] %v7546_v53   ;;  %1644 = vmatmul.bf16.gmra.mxu1 %v5867_v54  ;;  %v1878_v62 = vmul.f32 %v8165_v40, %v1606_v61  ;;  %1335 = vmatmul.bf16.gmra.mxu0 %v5895_v35 }
 0x1fd   : > { %v2010_v6 = vadd.f32 %v8171_v42, %v1878_v62  ;;  %v5903_v62 = vor.u32 %v7164_v60, %v5902_v58 }
 0x1ff   : > { %v2138_v16 = vmax.f32 %v2010_v6, 0.0 }
 0x200   : > { %v1607_v28 = vpop.f32.mrf.mxu1 }
 0x201   : > { %v1608_v51 = vadd.f32 %v1607_v28, %v1278_v3  ;;  %v8361_v38 = vpop.f32.mrf.mxu0 }
 0x202   : > { %v2894_v55 = vld [vmem:[#allocation2 + $0xf8] sm:$0xf]  ;;  %v2895_v5 = vld [vmem:[#allocation2 + $0xfc] sm:$0xf] }
 0x203   : > { %2926 = vst [vmem:[#allocation3 + $0x14] sm:$0xf] %v2894_v55  ;;  %v1879_v52 = vmul.f32 %v8165_v40, %v1608_v51  ;;  %v2767_v32 = vld [vmem:[#allocation2 + $0xf8] sm:$0xf]  ;;  %v2768_v37 = vld [vmem:[#allocation2 + $0xfc] sm:$0xf] }
 0x204   : > { %2927 = vst [vmem:[#allocation3 + $0x38] sm:$0xf] %v2895_v5 }
 0x205   : > { %v2011_v13 = vadd.f32 %v8171_v42, %v1879_v52  ;;  %2799 = vst [vmem:[#allocation3 + $0x54] sm:$0xf] %v2767_v32 }
 0x206   : > { %2800 = vst [vmem:[#allocation3 + $0x78] sm:$0xf] %v2768_v37 }
 0x207   : > { %v2139_v3 = vmax.f32 %v2011_v13, 0.0  ;;  %v2848_v13 = vld [vmem:[#allocation2 + $0x8c] sm:$0xf] }
 0x208   : > { %v1610_v17 = vpop.f32.mrf.mxu1  ;;  %2880 = vst [vmem:[#allocation3 + $0x2bc] sm:$0xf] %v2848_v13 }
 0x209   : > { %v7551_v21 = vpack.c.bf16 %v2139_v3, %v2138_v16  ;;  %v1611_v63 = vadd.f32 %v1610_v17, %v8315_v15  ;;  %v7157_v15 = vld [vmem:[%s8069_s21 + $0x1b4] sm:$0xf]  ;;  %v8365_v30 = vpop.f32.mrf.mxu0 }
 0x20a   : > { %v5883_v34 = vor.u32 %v7157_v15, %v5880_v41  ;;  %v2849_v15 = vld [vmem:[#allocation2 + $0x90] sm:$0xf]  ;;  %v2850_v41 = vld [vmem:[#allocation2 + $0x94] sm:$0xf] }
 0x20b   : > { %7879 = vst [vmem:[#allocation2 + $0x100] sm:$0xff] %v7551_v21   ;;  %1649 = vmatmul.bf16.gmra.mxu1 %v5875_v12  ;;  %v1880_v24 = vmul.f32 %v8165_v40, %v1611_v63  ;;  %1340 = vmatmul.bf16.gmra.mxu0 %v5903_v62  ;;  %v5910_v21 = vld [vmem:[%s8069_s21 + $0x1f0] sm:$0xf] }
 0x20c   : > { %2881 = vst [vmem:[#allocation3 + $0x2e0] sm:$0xf] %v2849_v15 }
 0x20d   : > { %v2012_v39 = vadd.f32 %v8171_v42, %v1880_v24  ;;  %v5911_v24 = vor.u32 %v7166_v23, %v5910_v21  ;;  %2882 = vst [vmem:[#allocation3 + $0x304] sm:$0xf] %v2850_v41 }
 0x20f   : > { %v2140_v44 = vmax.f32 %v2012_v39, 0.0 }
 0x210   : > { %v1612_v26 = vpop.f32.mrf.mxu1 }
 0x211   : > { %v1613_v25 = vadd.f32 %v1612_v26, %v8324_v33  ;;  %v8376_v52 = vpop.f32.mrf.mxu0 }
 0x212   : > { %v2769_v61 = vld [vmem:[#allocation2 + $0x100] sm:$0xf]  ;;  %v2770_v28 = vld [vmem:[#allocation2 + $0x104] sm:$0xf] }
 0x213   : > { %v1881_v2 = vmul.f32 %v8165_v40, %v1613_v25  ;;  %2801 = vst [vmem:[#allocation3 + $0x9c] sm:$0xf] %v2769_v61 }
 0x214   : > { %2802 = vst [vmem:[#allocation3 + $0xc0] sm:$0xf] %v2770_v28 }
 0x215   : > { %v2013_v36 = vadd.f32 %v8171_v42, %v1881_v2 }
 0x217   : > { %v2141_v33 = vmax.f32 %v2013_v36, 0.0 }
 0x218   : > { %v1615_v46 = vpop.f32.mrf.mxu1 }
 0x219   : > { %v7556_v48 = vpack.c.bf16 %v2141_v33, %v2140_v44  ;;  %v1616_v49 = vadd.f32 %v1615_v46, %v8328_v43  ;;  %v1303_v63 = vpop.f32.mrf.mxu0  ;;  %v5918_v46 = vld [vmem:[%s8069_s21 + $0x200] sm:$0xf] }
 0x21b   : > { %7880 = vst [vmem:[#allocation2 + $0x108] sm:$0xff] %v7556_v48   ;;  %1654 = vmatmul.bf16.gmra.mxu1 %v5883_v34  ;;  %v1882_v54 = vmul.f32 %v8165_v40, %v1616_v49  ;;  %1345 = vmatmul.bf16.gmra.mxu0 %v5911_v24  ;;  %v7168_v48 = vld [vmem:[%s8069_s21 + $0x204] sm:$0xf0] }
 0x21c   : > { %v5919_v50 = vor.u32 %v7168_v48, %v5918_v46 }
 0x21d   : > { %v2014_v43 = vadd.f32 %v8171_v42, %v1882_v54  ;;  %v7163_v54 = vld [vmem:[%s8069_s21 + $0x1e4] sm:$0xf] }
 0x21f   : > { %v2142_v5 = vmax.f32 %v2014_v43, 0.0  ;;  %v2851_v43 = vld [vmem:[#allocation2 + $0x98] sm:$0xf] }
 0x220   : > { %v1617_v47 = vpop.f32.mrf.mxu1  ;;  %2883 = vst [vmem:[#allocation3 + $0x328] sm:$0xf] %v2851_v43  ;;  %v7224_v43 = vld [vmem:[%s8069_s21 + $0x3c4] sm:$0xf0] }
 0x221   : > { %v1618_v53 = vadd.f32 %v1617_v47, %v8337_v56  ;;  %v5891_v56 = vor.u32 %v7159_v4, %v5888_v57  ;;  %v5904_v47 = vld [vmem:[%s8069_s21 + $0x1e8] sm:$0xf0] }
 0x222   : > { %v2771_v22 = vld [vmem:[#allocation2 + $0x108] sm:$0xf]  ;;  %v2772_v26 = vld [vmem:[#allocation2 + $0x10c] sm:$0xf]  ;;  %v5907_v61 = vor.u32 %v7163_v54, %v5904_v47 }
 0x223   : > { %v1883_v51 = vmul.f32 %v8165_v40, %v1618_v53  ;;  %2803 = vst [vmem:[#allocation3 + $0xe4] sm:$0xf] %v2771_v22 }
 0x224   : > { %2804 = vst [vmem:[#allocation3 + $0x108] sm:$0xf] %v2772_v26 }
 0x225   : > { %v2015_v55 = vadd.f32 %v8171_v42, %v1883_v51  ;;  %v2852_v51 = vld [vmem:[#allocation2 + $0x9c] sm:$0xf] }
 0x226   : > { %2884 = vst [vmem:[#allocation3 + $0x34c] sm:$0xf] %v2852_v51 }
 0x227   : > { %v2143_v7 = vmax.f32 %v2015_v55, 0.0 }
 0x228   : > { %v1620_v6 = vpop.f32.mrf.mxu1 }
 0x229   : > { %v7561_v11 = vpack.c.bf16 %v2143_v7, %v2142_v5  ;;  %v1621_v16 = vadd.f32 %v1620_v6, %v8341_v59  ;;  %v7170_v6 = vld [vmem:[%s8069_s21 + $0x214] sm:$0xf0] }
 0x22b   : > { %7881 = vst [vmem:[#allocation2 + $0x110] sm:$0xff] %v7561_v11   ;;  %1659 = vmatmul.bf16.gmra.mxu1 %v5891_v56  ;;  %v1884_v3 = vmul.f32 %v8165_v40, %v1621_v16  ;;  %1350 = vmatmul.bf16.gmra.mxu0 %v5919_v50  ;;  %v5926_v56 = vld [vmem:[%s8069_s21 + $0x210] sm:$0xf] }
 0x22c   : > { %v5927_v45 = vor.u32 %v7170_v6, %v5926_v56  ;;  %v7174_v56 = vld [vmem:[%s8069_s21 + $0x234] sm:$0xf0] }
 0x22d   : > { %v2016_v25 = vadd.f32 %v8171_v42, %v1884_v3 }
 0x22f   : > { %v2144_v35 = vmax.f32 %v2016_v25, 0.0  ;;  %v2853_v25 = vld [vmem:[#allocation2 + $0xa8] sm:$0xf] }
 0x230   : > { %v1622_v12 = vpop.f32.mrf.mxu1  ;;  %2885 = vst [vmem:[#allocation3 + $0x370] sm:$0xf] %v2853_v25 }
 0x231   : > { %v1623_v17 = vadd.f32 %v1622_v12, %v8350_v9  ;;  %v5899_v9 = vor.u32 %v7161_v19, %v5896_v31  ;;  %v5912_v12 = vld [vmem:[%s8069_s21 + $0x1f8] sm:$0xf0] }
 0x233   : > { %v1885_v59 = vmul.f32 %v8165_v40, %v1623_v17  ;;  %v1306_v40 = vpop.f32.mrf.mxu0 }
 0x235   : > { %v2017_v32 = vadd.f32 %v8171_v42, %v1885_v59  ;;  %v8392_v42 = vld [vmem:[%s9773_s2] ss:$0 sm:$0xff]  ;;  %v2854_v59 = vld [vmem:[#allocation2 + $0xac] sm:$0xf] }
 0x236   : > { %2886 = vst [vmem:[#allocation3 + $0x394] sm:$0xf] %v2854_v59  ;;  %v2857_v59 = vld [vmem:[#allocation2 + $0xb8] sm:$0xf] }
 0x237   : > { %v2145_v37 = vmax.f32 %v2017_v32, 0.0  ;;  %2889 = vst [vmem:[#allocation3 + $0x400] sm:$0xf] %v2857_v59  ;;  %v7173_v59 = vld [vmem:[%s8069_s21 + $0x234] sm:$0xf] }
 0x238   : > { %v1625_v39 = vpop.f32.mrf.mxu1 }
 0x239   : > { %v7566_v2 = vpack.c.bf16 %v2145_v37, %v2144_v35  ;;  %v1626_v36 = vadd.f32 %v1625_v39, %v8361_v38  ;;  %v8401_v38 = vld [vmem:[%s9774_s3] ss:$0 sm:$0xff] }
 0x23a   : > { %v5934_v37 = vld [vmem:[%s8069_s21 + $0x220] sm:$0xf] }
 0x23b   : > { %7882 = vst [vmem:[#allocation2 + $0x120] sm:$0xff] %v7566_v2   ;;  %1664 = vmatmul.bf16.gmra.mxu1 %v5899_v9  ;;  %v1886_v44 = vmul.f32 %v8392_v42, %v1626_v36  ;;  %v1308_v58 = vpop.f32.mrf.mxu0  ;;  %1355 = vmatmul.bf16.gmra.mxu0 %v5927_v45  ;;  %v7172_v9 = vld [vmem:[%s8069_s21 + $0x224] sm:$0xf0] }
 0x23c   : > { %v5935_v2 = vor.u32 %v7172_v9, %v5934_v37  ;;  %v6150_v9 = vld [vmem:[%s8069_s21 + $0x3d0] sm:$0xf] }
 0x23d   : > { %v2018_v14 = vadd.f32 %v8401_v38, %v1886_v44  ;;  %v2897_v44 = vld [vmem:[#allocation2 + $0x104] sm:$0xf] }
 0x23e   : > { %2929 = vst [vmem:[#allocation3 + $0x80] sm:$0xf] %v2897_v44  ;;  %v7176_v44 = vld [vmem:[%s8069_s21 + $0x244] sm:$0xf0] }
 0x23f   : > { %v2146_v60 = vmax.f32 %v2018_v14, 0.0 }
 0x240   : > { %v1627_v33 = vpop.f32.mrf.mxu1 }
 0x241   : > { %v1628_v34 = vadd.f32 %v1627_v33, %v8365_v30  ;;  %v7167_v33 = vld [vmem:[%s8069_s21 + $0x204] sm:$0xf] }
 0x242   : > { %v2775_v11 = vld [vmem:[#allocation2 + $0x120] sm:$0xf]  ;;  %v2776_v13 = vld [vmem:[#allocation2 + $0x124] sm:$0xf] }
 0x243   : > { %v1887_v49 = vmul.f32 %v8392_v42, %v1628_v34  ;;  %v1311_v5 = vpop.f32.mrf.mxu0  ;;  %2807 = vst [vmem:[#allocation3 + $0x174] sm:$0xf] %v2775_v11  ;;  %v5920_v34 = vld [vmem:[%s8069_s21 + $0x208] sm:$0xf0] }
 0x244   : > { %2808 = vst [vmem:[#allocation3 + $0x198] sm:$0xf] %v2776_v13 }
 0x245   : > { %v2019_v53 = vadd.f32 %v8401_v38, %v1887_v49  ;;  %v5923_v49 = vor.u32 %v7167_v33, %v5920_v34 }
 0x247   : > { %v2147_v30 = vmax.f32 %v2019_v53, 0.0  ;;  %v2855_v53 = vld [vmem:[#allocation2 + $0xb0] sm:$0xf] }
 0x248   : > { %v1630_v62 = vpop.f32.mrf.mxu1  ;;  %2887 = vst [vmem:[#allocation3 + $0x3b8] sm:$0xf] %v2855_v53 }
 0x249   : > { %v7571_v28 = vpack.c.bf16 %v2147_v30, %v2146_v60  ;;  %v1631_v4 = vadd.f32 %v1630_v62, %v8376_v52  ;;  %v7165_v52 = vld [vmem:[%s8069_s21 + $0x1f4] sm:$0xf]  ;;  %v6110_v30 = vld [vmem:[%s8069_s21 + $0x380] sm:$0xf] }
 0x24a   : > { %v5915_v22 = vor.u32 %v7165_v52, %v5912_v12  ;;  %v2899_v52 = vld [vmem:[#allocation2 + $0x10c] sm:$0xf]  ;;  %v7169_v12 = vld [vmem:[%s8069_s21 + $0x214] sm:$0xf] }
 0x24b   : > { %7883 = vst [vmem:[#allocation2 + $0x128] sm:$0xff] %v7571_v28   ;;  %1669 = vmatmul.bf16.gmra.mxu1 %v5907_v61  ;;  %v1888_v57 = vmul.f32 %v8392_v42, %v1631_v4  ;;  %v1313_v26 = vpop.f32.mrf.mxu0  ;;  %1360 = vmatmul.bf16.gmra.mxu0 %v5935_v2  ;;  %v7216_v61 = vld [vmem:[%s8069_s21 + $0x384] sm:$0xf0]  ;;  %v6142_v28 = vld [vmem:[%s8069_s21 + $0x3c0] sm:$0xf] }
 0x24c   : > { %v6111_v62 = vor.u32 %v7216_v61, %v6110_v30  ;;  %v6143_v51 = vor.u32 %v7224_v43, %v6142_v28  ;;  %2931 = vst [vmem:[#allocation3 + $0xc8] sm:$0xf] %v2899_v52  ;;  %v2860_v28 = vld [vmem:[#allocation2 + $0xc4] sm:$0xf]  ;;  %v7405_v52 = vld [vmem:[%s9775_s4 + $0x70] sm:$0xff] }
 0x24d   : > { %v2020_v16 = vadd.f32 %v8401_v38, %v1888_v57  ;;  %2892 = vst [vmem:[#allocation3 + $0x46c] sm:$0xf] %v2860_v28  ;;  %v7180_v28 = vld [vmem:[%s8069_s21 + $0x264] sm:$0xf0] }
 0x24e   : > { %1470 = vmatmul.bf16.vlgmr.msra.gmra.mxu2 %v6111_v62  ;;  %1490 = vmatmul.bf16.vlgmr.msra.gmra.mxu3 %v6143_v51  ;;  %v2859_v62 = vld [vmem:[#allocation2 + $0xc0] sm:$0xf] }
 0x24f   : > { %v2148_v21 = vmax.f32 %v2020_v16, 0.0  ;;  %2891 = vst [vmem:[#allocation3 + $0x448] sm:$0xf] %v2859_v62  ;;  %v6126_v51 = vld [vmem:[%s8069_s21 + $0x3a0] sm:$0xf] }
 0x250   : > { %v1632_v55 = vpop.f32.mrf.mxu1  ;;  %v5966_v62 = vld [vmem:[%s8069_s21 + $0x260] sm:$0xf] }
 0x251   : > { %v1633_v7 = vadd.f32 %v1632_v55, %v1303_v63 }
 0x252   : > { %v2777_v39 = vld [vmem:[#allocation2 + $0x128] sm:$0xf]  ;;  %v2778_v15 = vld [vmem:[#allocation2 + $0x12c] sm:$0xf] }
 0x253   : > { %v1889_v3 = vmul.f32 %v8392_v42, %v1633_v7  ;;  %2809 = vst [vmem:[#allocation3 + $0x1bc] sm:$0xf] %v2777_v39  ;;  %v1316_v46 = vpop.f32.mrf.mxu0  ;;  %v5942_v7 = vld [vmem:[%s8069_s21 + $0x230] sm:$0xf]  ;;  %v7226_v39 = vld [vmem:[%s8069_s21 + $0x3d4] sm:$0xf0] }
 0x254   : > { %2810 = vst [vmem:[#allocation3 + $0x1e0] sm:$0xf] %v2778_v15  ;;  %v5943_v11 = vor.u32 %v7174_v56, %v5942_v7  ;;  %v6151_v2 = vor.u32 %v7226_v39, %v6150_v9  ;;  %v7228_v7 = vld [vmem:[%s8069_s21 + $0x3e4] sm:$0xf0] }
 0x255   : > { %v2021_v17 = vadd.f32 %v8401_v38, %v1889_v3  ;;  %v2898_v3 = vld [vmem:[#allocation2 + $0x108] sm:$0xf] }
 0x256   : > { %2930 = vst [vmem:[#allocation3 + $0xa4] sm:$0xf] %v2898_v3  ;;  %v7397_v3 = vld [vmem:[%s9775_s4 + $0x30] sm:$0xff] }
 0x257   : > { %v2149_v23 = vmax.f32 %v2021_v17, 0.0  ;;  %v5928_v17 = vld [vmem:[%s8069_s21 + $0x218] sm:$0xf0] }
 0x258   : > { %v1635_v63 = vpop.f32.mrf.mxu1 }
 0x259   : > { %v7576_v24 = vpack.c.bf16 %v2149_v23, %v2148_v21  ;;  %v1636_v19 = vadd.f32 %v1635_v63, %v1306_v40  ;;  %v2896_v40 = vld [vmem:[#allocation2 + $0x100] sm:$0xf]  ;;  %v5931_v63 = vor.u32 %v7169_v12, %v5928_v17  ;;  %v5958_v12 = vld [vmem:[%s8069_s21 + $0x250] sm:$0xf]  ;;  %v7178_v17 = vld [vmem:[%s8069_s21 + $0x254] sm:$0xf0] }
 0x25a   : > { %2928 = vst [vmem:[#allocation3 + $0x5c] sm:$0xf] %v2896_v40  ;;  %v5950_v40 = vld [vmem:[%s8069_s21 + $0x240] sm:$0xf] }
 0x25b   : > { %7884 = vst [vmem:[#allocation2 + $0x130] sm:$0xff] %v7576_v24   ;;  %1674 = vmatmul.bf16.gmra.mxu1 %v5915_v22  ;;  %v1890_v31 = vmul.f32 %v8392_v42, %v1636_v19  ;;  %v1318_v4 = vpop.f32.mrf.mxu0  ;;  %1365 = vmatmul.bf16.gmra.mxu0 %v5943_v11  ;;  %v2858_v19 = vld [vmem:[#allocation2 + $0xbc] sm:$0xf]  ;;  %v5951_v34 = vor.u32 %v7176_v44, %v5950_v40  ;;  %v7403_v40 = vld [vmem:[%s9775_s4 + $0x60] sm:$0xff] }
 0x25c   : > { %2890 = vst [vmem:[#allocation3 + $0x424] sm:$0xf] %v2858_v19  ;;  %v7406_v11 = vld [vmem:[%s9775_s4 + $0x78] sm:$0xff] }
 0x25d   : > { %v2022_v41 = vadd.f32 %v8401_v38, %v1890_v31  ;;  %4714 = vmatpush.bf16.msrb.mxu3 %v7406_v11  ;;  %v5944_v19 = vld [vmem:[%s8069_s21 + $0x238] sm:$0xf0] }
 0x25e   : > { %1495 = vmatmul.bf16.gmra.mxu3 %v6151_v2  ;;  %v5947_v2 = vor.u32 %v7173_v59, %v5944_v19  ;;  %v7177_v59 = vld [vmem:[%s8069_s21 + $0x254] sm:$0xf]  ;;  %v5960_v19 = vld [vmem:[%s8069_s21 + $0x258] sm:$0xf0] }
 0x25f   : > { %v2150_v50 = vmax.f32 %v2022_v41, 0.0 }
 0x260   : > { %v1637_v32 = vpop.f32.mrf.mxu1 }
 0x261   : > { %v1638_v35 = vadd.f32 %v1637_v32, %v1308_v58  ;;  %v2856_v58 = vld [vmem:[#allocation2 + $0xb4] sm:$0xf]  ;;  %v6118_v32 = vld [vmem:[%s8069_s21 + $0x390] sm:$0xf]  ;;  %4715 = vmatpush.bf16.msrb.mxu3 %v7405_v52  ;;  %v7399_v52 = vld [vmem:[%s9775_s4 + $0x40] sm:$0xff] }
 0x262   : > { %2888 = vst [vmem:[#allocation3 + $0x3dc] sm:$0xf] %v2856_v58  ;;  %v2779_v6 = vld [vmem:[#allocation2 + $0x130] sm:$0xf]  ;;  %v2780_v45 = vld [vmem:[#allocation2 + $0x134] sm:$0xf] }
 0x263   : > { %v1891_v36 = vmul.f32 %v8392_v42, %v1638_v35  ;;  %2811 = vst [vmem:[#allocation3 + $0x204] sm:$0xf] %v2779_v6  ;;  %v7218_v35 = vld [vmem:[%s8069_s21 + $0x394] sm:$0xf0] }
 0x264   : > { %2812 = vst [vmem:[#allocation3 + $0x228] sm:$0xf] %v2780_v45  ;;  %v6119_v37 = vor.u32 %v7218_v35, %v6118_v32  ;;  %v7398_v6 = vld [vmem:[%s9775_s4 + $0x38] sm:$0xff]  ;;  %v7396_v32 = vld [vmem:[%s9775_s4 + $0x28] sm:$0xff] }
 0x265   : > { %v2023_v48 = vadd.f32 %v8401_v38, %v1891_v36  ;;  %4625 = vmatpush.bf16.msrb.mxu2 %v7398_v6  ;;  %v7404_v35 = vld [vmem:[%s9775_s4 + $0x68] sm:$0xff] }
 0x266   : > { %1475 = vmatmul.bf16.gmra.mxu2 %v6119_v37  ;;  %4716 = vmatpush.bf16.msrb.mxu3 %v7404_v35 }
 0x267   : > { %v2151_v14 = vmax.f32 %v2023_v48, 0.0 }
 0x268   : > { %v1640_v54 = vpop.f32.mrf.mxu1 }
 0x269   : > { %v7581_v47 = vpack.c.bf16 %v2151_v14, %v2150_v50  ;;  %v1641_v60 = vadd.f32 %v1640_v54, %v1311_v5  ;;  %v2900_v50 = vld [vmem:[#allocation2 + $0x110] sm:$0xf]  ;;  %v2901_v14 = vld [vmem:[#allocation2 + $0x114] sm:$0xf]  ;;  %v5936_v54 = vld [vmem:[%s8069_s21 + $0x228] sm:$0xf0]  ;;  %4626 = vmatpush.bf16.msrb.mxu2 %v7397_v3 }
 0x26a   : > { %2932 = vst [vmem:[#allocation3 + $0xec] sm:$0xf] %v2900_v50  ;;  %4717 = vmatpush.bf16.msrb.mxu3 %v7403_v40  ;;  %v7230_v50 = vld [vmem:[%s8069_s21 + $0x3f4] sm:$0xf0]  ;;  %v7391_v3 = vld [vmem:[%s9775_s4] sm:$0xff] }
 0x26b   : > { %7885 = vst [vmem:[#allocation2 + $0x138] sm:$0xff] %v7581_v47   ;;  %1679 = vmatmul.bf16.gmra.mxu1 %v5923_v49  ;;  %v1892_v57 = vmul.f32 %v8392_v42, %v1641_v60  ;;  %v7171_v49 = vld [vmem:[%s8069_s21 + $0x224] sm:$0xf]  ;;  %1370 = vmatmul.bf16.gmra.mxu0 %v5951_v34  ;;  %v7222_v34 = vld [vmem:[%s8069_s21 + $0x3b4] sm:$0xf0] }
 0x26c   : > { %2933 = vst [vmem:[#allocation3 + $0x110] sm:$0xf] %v2901_v14  ;;  %v5939_v60 = vor.u32 %v7171_v49, %v5936_v54  ;;  %v7394_v49 = vld [vmem:[%s9775_s4 + $0x18] sm:$0xff] }
 0x26d   : > { %v2024_v13 = vadd.f32 %v8401_v38, %v1892_v57  ;;  %4627 = vmatpush.bf16.msrb.mxu2 %v7396_v32  ;;  %v7402_v54 = vld [vmem:[%s9775_s4 + $0x58] sm:$0xff] }
 0x26e   : > { %4718 = vmatpush.bf16.msrb.mxu3 %v7402_v54 }
 0x26f   : > { %v2152_v23 = vmax.f32 %v2024_v13, 0.0 }
 0x270   : > { %v1642_v55 = vpop.f32.mrf.mxu1 }
 0x271   : > { %v1643_v5 = vadd.f32 %v1642_v55, %v1313_v26  ;;  %v1321_v26 = vpop.f32.mrf.mxu0 }
 0x273   : > { %v1893_v16 = vmul.f32 %v8392_v42, %v1643_v5  ;;  %v6158_v5 = vld [vmem:[%s8069_s21 + $0x3e0] sm:$0xf] }
 0x274   : > { %v6159_v56 = vor.u32 %v7228_v7, %v6158_v5  ;;  %v7392_v7 = vld [vmem:[%s9775_s4 + $0x8] sm:$0xff] }
 0x275   : > { %v2025_v21 = vadd.f32 %v8401_v38, %v1893_v16 }
 0x276   : > { %1500 = vmatmul.bf16.gmra.mxu3 %v6159_v56  ;;  %v7400_v56 = vld [vmem:[%s9775_s4 + $0x48] sm:$0xff] }
 0x277   : > { %v2153_v22 = vmax.f32 %v2025_v21, 0.0 }
 0x278   : > { %v1645_v24 = vpop.f32.mrf.mxu1 }
 0x279   : > { %v7586_v25 = vpack.c.bf16 %v2153_v22, %v2152_v23  ;;  %v1646_v31 = vadd.f32 %v1645_v24, %v1316_v46  ;;  %v1323_v33 = vpop.f32.mrf.mxu0  ;;  %v5959_v24 = vor.u32 %v7178_v17, %v5958_v12 }
 0x27b   : > { %7886 = vst [vmem:[#allocation2 + $0x148] sm:$0xff] %v7586_v25   ;;  %1684 = vmatmul.bf16.gmra.mxu1 %v5931_v63  ;;  %v1894_v15 = vmul.f32 %v8392_v42, %v1646_v31  ;;  %v2903_v25 = vld [vmem:[#allocation2 + $0x124] sm:$0xf]  ;;  %1375 = vmatmul.bf16.gmra.mxu0 %v5959_v24 }
 0x27c   : > { %2935 = vst [vmem:[#allocation3 + $0x158] sm:$0xf] %v2903_v25 }
 0x27d   : > { %v2026_v46 = vadd.f32 %v8401_v38, %v1894_v15 }
 0x27f   : > { %v2154_v53 = vmax.f32 %v2026_v46, 0.0 }
 0x280   : > { %v1647_v41 = vpop.f32.mrf.mxu1 }
 0x281   : > { %v1648_v36 = vadd.f32 %v1647_v41, %v1318_v4  ;;  %v7220_v4 = vld [vmem:[%s8069_s21 + $0x3a4] sm:$0xf0]  ;;  %v1326_v57 = vpop.f32.mrf.mxu0 }
 0x282   : > { %v6127_v55 = vor.u32 %v7220_v4, %v6126_v51  ;;  %v2783_v21 = vld [vmem:[#allocation2 + $0x148] sm:$0xf]  ;;  %v2784_v23 = vld [vmem:[#allocation2 + $0x14c] sm:$0xf]  ;;  %v5967_v4 = vor.u32 %v7180_v28, %v5966_v62 }
 0x283   : > { %v1895_v48 = vmul.f32 %v8392_v42, %v1648_v36  ;;  %2815 = vst [vmem:[#allocation3 + $0x294] sm:$0xf] %v2783_v21  ;;  %v7395_v36 = vld [vmem:[%s9775_s4 + $0x20] sm:$0xff] }
 0x284   : > { %1480 = vmatmul.bf16.gmra.mxu2 %v6127_v55  ;;  %2816 = vst [vmem:[#allocation3 + $0x2b8] sm:$0xf] %v2784_v23  ;;  %v5952_v55 = vld [vmem:[%s8069_s21 + $0x248] sm:$0xf0] }
 0x285   : > { %v2027_v47 = vadd.f32 %v8401_v38, %v1895_v48  ;;  %4628 = vmatpush.bf16.msrb.mxu2 %v7395_v36  ;;  %v6166_v48 = vld [vmem:[%s8069_s21 + $0x3f0] sm:$0xf] }
 0x286   : > { %v6167_v14 = vor.u32 %v7230_v50, %v6166_v48 }
 0x287   : > { %v2155_v58 = vmax.f32 %v2027_v47, 0.0 }
 0x288   : > { %v1650_v30 = vpop.f32.mrf.mxu1  ;;  %1505 = vmatmul.bf16.gmra.mxu3 %v6167_v14 }
 0x289   : > { %v7591_v61 = vpack.c.bf16 %v2155_v58, %v2154_v53  ;;  %v1651_v43 = vadd.f32 %v1650_v30, %v1321_v26  ;;  %v2902_v26 = vld [vmem:[#allocation2 + $0x120] sm:$0xf]  ;;  %v1328_v37 = vpop.f32.mrf.mxu0  ;;  %4629 = vmatpush.bf16.msrb.mxu2 %v7394_v49  ;;  %v7393_v30 = vld [vmem:[%s9775_s4 + $0x10] sm:$0xff] }
 0x28a   : > { %2934 = vst [vmem:[#allocation3 + $0x134] sm:$0xf] %v2902_v26  ;;  %v7994_v26 = vmov 0  }
 0x28b   : > { %7887 = vst [vmem:[#allocation2 + $0x150] sm:$0xff] %v7591_v61   ;;  %1689 = vmatmul.bf16.gmra.mxu1 %v5939_v60  ;;  %v1896_v45 = vmul.f32 %v8392_v42, %v1651_v43  ;;  %v7401_v61 = vld [vmem:[%s9775_s4 + $0x50] sm:$0xff]  ;;  %1380 = vmatmul.bf16.gmra.mxu0 %v5967_v4  ;;  %v7182_v4 = vld [vmem:[%s8069_s21 + $0x274] sm:$0xf0] }
 0x28c   : > { %4719 = vmatpush.bf16.msrb.mxu3 %v7401_v61  ;;  %2262 = vst [vmem:[#allocation2 + $0x258] sm:$0xf] %v7994_v26 }
 0x28d   : > { %v2028_v22 = vadd.f32 %v8401_v38, %v1896_v45  ;;  %4630 = vmatpush.bf16.msrb.mxu2 %v7393_v30  ;;  %2263 = vst [vmem:[#allocation2 + $0x25c] sm:$0xf] %v7994_v26 }
 0x28e   : > { %2302 = vst [vmem:[#allocation2 + $0x258] sm:$0xf] %v7994_v26 }
 0x28f   : > { %v2156_v9 = vmax.f32 %v2028_v22, 0.0  ;;  %2303 = vst [vmem:[#allocation2 + $0x25c] sm:$0xf] %v7994_v26 }
 0x290   : > { %v1652_v13 = vpop.f32.mrf.mxu1  ;;  %4720 = vmatpush.bf16.msrb.mxu3 %v7400_v56  ;;  %2254 = vst [vmem:[#allocation2 + $0x198] sm:$0xf] %v7994_v26 }
 0x291   : > { %v1653_v16 = vadd.f32 %v1652_v13, %v1323_v33  ;;  %v6134_v33 = vld [vmem:[%s8069_s21 + $0x3b0] sm:$0xf]  ;;  %v1331_v53 = vpop.f32.mrf.mxu0  ;;  %4631 = vmatpush.bf16.msrb.mxu2 %v7392_v7  ;;  %2255 = vst [vmem:[#allocation2 + $0x19c] sm:$0xf] %v7994_v26  ;;  %v5976_v7 = vld [vmem:[%s8069_s21 + $0x278] sm:$0xf0] }
 0x292   : > { %v6135_v46 = vor.u32 %v7222_v34, %v6134_v33  ;;  %v7179_v34 = vld [vmem:[%s8069_s21 + $0x264] sm:$0xf]  ;;  %2256 = vst [vmem:[#allocation2 + $0x1a0] sm:$0xf] %v7994_v26 }
 0x293   : > { %v1897_v63 = vmul.f32 %v8392_v42, %v1653_v16  ;;  %2257 = vst [vmem:[#allocation2 + $0x1a4] sm:$0xf] %v7994_v26 }
 0x294   : > { %1485 = vmatmul.bf16.gmra.mxu2 %v6135_v46  ;;  %4721 = vmatpush.bf16.msrb.mxu3 %v7399_v52  ;;  %v5968_v46 = vld [vmem:[%s8069_s21 + $0x268] sm:$0xf0]  ;;  %2258 = vst [vmem:[#allocation2 + $0x1a8] sm:$0xf] %v7994_v26 }
 0x295   : > { %v2029_v31 = vadd.f32 %v8401_v38, %v1897_v63  ;;  %4632 = vmatpush.bf16.msrb.mxu2 %v7391_v3  ;;  %v5971_v49 = vor.u32 %v7179_v34, %v5968_v46  ;;  %2259 = vst [vmem:[#allocation2 + $0x1ac] sm:$0xf] %v7994_v26 }
 0x296   : > { %v2571_v30 = vld [vmem:[#allocation2 + $0x25c] sm:$0xf]  ;;  %2260 = vst [vmem:[#allocation2 + $0x1b0] sm:$0xf] %v7994_v26 }
 0x297   : > { %v2157_v39 = vmax.f32 %v2029_v31, 0.0  ;;  %2603 = vst [vmem:[#allocation3 + $0x24] sm:$0xf] %v2571_v30 }
 0x298   : > { %v1655_v15 = vpop.f32.mrf.mxu1  ;;  %2261 = vst [vmem:[#allocation2 + $0x1b4] sm:$0xf] %v7994_v26 }
 0x299   : > { %v7596_v41 = vpack.c.bf16 %v2157_v39, %v2156_v9  ;;  %v1656_v44 = vadd.f32 %v1655_v15, %v1326_v57  ;;  %v7175_v57 = vld [vmem:[%s8069_s21 + $0x244] sm:$0xf]  ;;  %v1333_v12 = vpop.f32.mrf.mxu0  ;;  %2264 = vst [vmem:[#allocation2 + $0x260] sm:$0xf] %v7994_v26  ;;  %v2637_v34 = vld [vmem:[#allocation2 + $0x1a0] sm:$0xf] }
 0x29a   : > { %v5955_v45 = vor.u32 %v7175_v57, %v5952_v55  ;;  %2265 = vst [vmem:[#allocation2 + $0x264] sm:$0xf] %v7994_v26 }
 0x29b   : > { %7888 = vst [vmem:[#allocation2 + $0x158] sm:$0xff] %v7596_v41   ;;  %1694 = vmatmul.bf16.gmra.mxu1 %v5947_v2  ;;  %v1898_v47 = vmul.f32 %v8392_v42, %v1656_v44 }
 0x29c   : > { %2266 = vst [vmem:[#allocation2 + $0x268] sm:$0xf] %v7994_v26  ;;  %v2640_v30 = vld [vmem:[#allocation2 + $0x1ac] sm:$0xf] }
 0x29d   : > { %v2030_v43 = vadd.f32 %v8401_v38, %v1898_v47  ;;  %2267 = vst [vmem:[#allocation2 + $0x26c] sm:$0xf] %v7994_v26 }
 0x29e   : > { %2268 = vst [vmem:[#allocation2 + $0x270] sm:$0xf] %v7994_v26 }
 0x29f   : > { %v2158_v6 = vmax.f32 %v2030_v43, 0.0  ;;  %v5974_v43 = vld [vmem:[%s8069_s21 + $0x270] sm:$0xf]  ;;  %2269 = vst [vmem:[#allocation2 + $0x274] sm:$0xf] %v7994_v26 }
 0x2a0   : > { %v1657_v58 = vpop.f32.mrf.mxu1  ;;  %v5975_v55 = vor.u32 %v7182_v4, %v5974_v43  ;;  %2270 = vst [vmem:[#allocation2 + $0x278] sm:$0xf] %v7994_v26 }
 0x2a1   : > { %v1658_v60 = vadd.f32 %v1657_v58, %v1328_v37  ;;  %v1336_v25 = vpop.f32.mrf.mxu0  ;;  %v5963_v37 = vor.u32 %v7177_v59, %v5960_v19  ;;  %2271 = vst [vmem:[#allocation2 + $0x27c] sm:$0xf] %v7994_v26  ;;  %v7184_v59 = vld [vmem:[%s8069_s21 + $0x284] sm:$0xf0] }
 0x2a2   : > { %1385 = vmatmul.bf16.gmra.mxu0 %v5975_v55  ;;  %2284 = vst [vmem:[#allocation2 + $0xf0] sm:$0xf] %v7994_v26 }
 0x2a3   : > { %v1899_v51 = vmul.f32 %v8392_v42, %v1658_v60  ;;  %v2570_v60 = vld [vmem:[#allocation2 + $0x258] sm:$0xf]  ;;  %2285 = vst [vmem:[#allocation2 + $0xf4] sm:$0xf] %v7994_v26 }
 0x2a4   : > { %2602 = vst [vmem:[#allocation3] sm:$0xf] %v2570_v60 }
 0x2a5   : > { %v2031_v5 = vadd.f32 %v8401_v38, %v1899_v51  ;;  %v7251_v51 = vld [vmem:[#allocation3 + $0x20] sm:$0xf0]  ;;  %2286 = vst [vmem:[#allocation2 + $0x118] sm:$0xf] %v7994_v26 }
 0x2a6   : > { %2287 = vst [vmem:[#allocation2 + $0x11c] sm:$0xf] %v7994_v26 }
 0x2a7   : > { %v2159_v11 = vmax.f32 %v2031_v5, 0.0  ;;  %v7181_v5 = vld [vmem:[%s8069_s21 + $0x274] sm:$0xf]  ;;  %2288 = vst [vmem:[#allocation2 + $0x140] sm:$0xf] %v7994_v26 }
 0x2a8   : > { %v1660_v13 = vpop.f32.mrf.mxu1  ;;  %2289 = vst [vmem:[#allocation2 + $0x144] sm:$0xf] %v7994_v26 }
 0x2a9   : > { %v7601_v16 = vpack.c.bf16 %v2159_v11, %v2158_v6  ;;  %v1661_v17 = vadd.f32 %v1660_v13, %v1331_v53  ;;  %v1338_v15 = vpop.f32.mrf.mxu0  ;;  %v5979_v11 = vor.u32 %v7181_v5, %v5976_v7  ;;  %2290 = vst [vmem:[#allocation2 + $0x168] sm:$0xf] %v7994_v26  ;;  %v7186_v7 = vld [vmem:[%s8069_s21 + $0x294] sm:$0xf0] }
 0x2aa   : > { %2291 = vst [vmem:[#allocation2 + $0x16c] sm:$0xf] %v7994_v26 }
 0x2ab   : > { %7889 = vst [vmem:[#allocation2 + $0x160] sm:$0xff] %v7601_v16   ;;  %1699 = vmatmul.bf16.gmra.mxu1 %v5955_v45  ;;  %v1900_v21 = vmul.f32 %v8392_v42, %v1661_v17  ;;  %v6238_v61 = vld [vmem:[#allocation3] sm:$0xf] }
 0x2ac   : > { %v6239_v57 = vor.u32 %v7251_v51, %v6238_v61  ;;  %2304 = vst [vmem:[#allocation2 + $0x280] sm:$0xf] %v7994_v26 }
 0x2ad   : > { %v2032_v63 = vadd.f32 %v8401_v38, %v1900_v21  ;;  %2305 = vst [vmem:[#allocation2 + $0x284] sm:$0xf] %v7994_v26 }
 0x2ae   : > { %4633 = vmatmul.bf16.vlgmr.msrb.gmra.mxu2 %v6239_v57  ;;  %2306 = vst [vmem:[#allocation2 + $0x2a8] sm:$0xf] %v7994_v26  ;;  %v5990_v57 = vld [vmem:[%s8069_s21 + $0x290] sm:$0xf] }
 0x2af   : > { %v2160_v32 = vmax.f32 %v2032_v63, 0.0  ;;  %2307 = vst [vmem:[#allocation2 + $0x2ac] sm:$0xf] %v7994_v26 }
 0x2b0   : > { %v1662_v23 = vpop.f32.mrf.mxu1  ;;  %2308 = vst [vmem:[#allocation2 + $0x2d0] sm:$0xf] %v7994_v26 }
 0x2b1   : > { %v1663_v22 = vadd.f32 %v1662_v23, %v1333_v12  ;;  %v1341_v54 = vpop.f32.mrf.mxu0  ;;  %2309 = vst [vmem:[#allocation2 + $0x2d4] sm:$0xf] %v7994_v26 }
 0x2b2   : > { %2310 = vst [vmem:[#allocation2 + $0x2f8] sm:$0xf] %v7994_v26 }
 0x2b3   : > { %v1901_v24 = vmul.f32 %v8392_v42, %v1663_v22  ;;  %2311 = vst [vmem:[#allocation2 + $0x2fc] sm:$0xf] %v7994_v26  ;;  %v2574_v26 = vld [vmem:[#allocation2 + $0x268] sm:$0xf] }
 0x2b4   : > { %2669 = vst [vmem:[#allocation3 + $0x4c] sm:$0xf] %v2637_v34 }
 0x2b5   : > { %v2033_v31 = vadd.f32 %v8401_v38, %v1901_v24  ;;  %2606 = vst [vmem:[#allocation3 + $0x90] sm:$0xf] %v2574_v26 }
 0x2b6   : > { %2672 = vst [vmem:[#allocation3 + $0xb8] sm:$0xf] %v2640_v30 }
 0x2b7   : > { %v2161_v35 = vmax.f32 %v2033_v31, 0.0 }
 0x2b8   : > { %v1665_v9 = vpop.f32.mrf.mxu1 }
 0x2b9   : > { %v7606_v39 = vpack.c.bf16 %v2161_v35, %v2160_v32  ;;  %v1666_v2 = vadd.f32 %v1665_v9, %v1336_v25  ;;  %v1343_v53 = vpop.f32.mrf.mxu0  ;;  %v5982_v25 = vld [vmem:[%s8069_s21 + $0x280] sm:$0xf]  ;;  %v7183_v32 = vld [vmem:[%s8069_s21 + $0x284] sm:$0xf]  ;;  %v5984_v35 = vld [vmem:[%s8069_s21 + $0x288] sm:$0xf0] }
 0x2ba   : > { %v5983_v31 = vor.u32 %v7184_v59, %v5982_v25  ;;  %v5987_v9 = vor.u32 %v7183_v32, %v5984_v35  ;;  %v2788_v59 = vld [vmem:[#allocation2 + $0x15c] sm:$0xf] }
 0x2bb   : > { %7890 = vst [vmem:[#allocation2 + $0x170] sm:$0xff] %v7606_v39   ;;  %1704 = vmatmul.bf16.gmra.mxu1 %v5963_v37  ;;  %v1902_v41 = vmul.f32 %v8392_v42, %v1666_v2  ;;  %v2635_v37 = vld [vmem:[#allocation2 + $0x198] sm:$0xf]  ;;  %v2636_v39 = vld [vmem:[#allocation2 + $0x19c] sm:$0xf] }
 0x2bc   : > { %1390 = vmatmul.bf16.gmra.mxu0 %v5983_v31  ;;  %2667 = vst [vmem:[#allocation3 + $0x4] sm:$0xf] %v2635_v37  ;;  %v2904_v31 = vld [vmem:[#allocation2 + $0x128] sm:$0xf]  ;;  %v7256_v32 = vld [vmem:[#allocation3 + $0x4c] sm:$0xf] }
 0x2bd   : > { %v2034_v44 = vadd.f32 %v8401_v38, %v1902_v41  ;;  %2668 = vst [vmem:[#allocation3 + $0x28] sm:$0xf] %v2636_v39  ;;  %v2906_v39 = vld [vmem:[#allocation2 + $0x130] sm:$0xf] }
 0x2be   : > { %2820 = vst [vmem:[#allocation3 + $0x348] sm:$0xf] %v2788_v59  ;;  %v6006_v59 = vld [vmem:[%s8069_s21 + $0x2b0] sm:$0xf] }
 0x2bf   : > { %v2162_v50 = vmax.f32 %v2034_v44, 0.0  ;;  %v2573_v44 = vld [vmem:[#allocation2 + $0x264] sm:$0xf]  ;;  %2936 = vst [vmem:[#allocation3 + $0x17c] sm:$0xf] %v2904_v31 }
 0x2c0   : > { %v1667_v36 = vpop.f32.mrf.mxu1  ;;  %2605 = vst [vmem:[#allocation3 + $0x6c] sm:$0xf] %v2573_v44  ;;  %v8596_v44 = vld [vmem:[%s9773_s2] ss:$0 sm:$0xff] }
 0x2c1   : > { %v1668_v40 = vadd.f32 %v1667_v36, %v1338_v15  ;;  %v1346_v62 = vpop.f32.mrf.mxu0  ;;  %v2572_v36 = vld [vmem:[#allocation2 + $0x260] sm:$0xf]  ;;  %2938 = vst [vmem:[#allocation3 + $0x1c4] sm:$0xf] %v2906_v39 }
 0x2c2   : > { %2604 = vst [vmem:[#allocation3 + $0x48] sm:$0xf] %v2572_v36 }
 0x2c3   : > { %v1903_v33 = vmul.f32 %v8392_v42, %v1668_v40 }
 0x2c4   : > { %v6240_v60 = vld [vmem:[#allocation3 + $0x24] sm:$0xf0] }
 0x2c5   : > { %v2035_v48 = vadd.f32 %v8401_v38, %v1903_v33 }
 0x2c7   : > { %v2163_v14 = vmax.f32 %v2035_v48, 0.0  ;;  %v2638_v48 = vld [vmem:[#allocation2 + $0x1a4] sm:$0xf]  ;;  %v7260_v43 = vld [vmem:[#allocation3 + $0x68] sm:$0xf0] }
 0x2c8   : > { %v1670_v58 = vpop.f32.mrf.mxu1  ;;  %2670 = vst [vmem:[#allocation3 + $0x70] sm:$0xf] %v2638_v48  ;;  %v5998_v48 = vld [vmem:[%s8069_s21 + $0x2a0] sm:$0xf] }
 0x2c9   : > { %v7611_v47 = vpack.c.bf16 %v2163_v14, %v2162_v50  ;;  %v1671_v56 = vadd.f32 %v1670_v58, %v1341_v54  ;;  %v1348_v16 = vpop.f32.mrf.mxu0  ;;  %v2639_v58 = vld [vmem:[#allocation2 + $0x1a8] sm:$0xf] }
 0x2ca   : > { %2671 = vst [vmem:[#allocation3 + $0x94] sm:$0xf] %v2639_v58 }
 0x2cb   : > { %7891 = vst [vmem:[#allocation2 + $0x178] sm:$0xff] %v7611_v47   ;;  %1709 = vmatmul.bf16.gmra.mxu1 %v5971_v49  ;;  %v1904_v45 = vmul.f32 %v8392_v42, %v1671_v56  ;;  %v2575_v47 = vld [vmem:[#allocation2 + $0x26c] sm:$0xf]  ;;  %v7185_v56 = vld [vmem:[%s8069_s21 + $0x294] sm:$0xf] }
 0x2cc   : > { %2607 = vst [vmem:[#allocation3 + $0xb4] sm:$0xf] %v2575_v47  ;;  %v2578_v47 = vld [vmem:[#allocation2 + $0x280] sm:$0xf] }
 0x2cd   : > { %v2036_v52 = vadd.f32 %v8401_v38, %v1904_v45  ;;  %v2576_v45 = vld [vmem:[#allocation2 + $0x270] sm:$0xf]  ;;  %2610 = vst [vmem:[#allocation3 + $0x120] sm:$0xf] %v2578_v47 }
 0x2ce   : > { %2608 = vst [vmem:[#allocation3 + $0xd8] sm:$0xf] %v2576_v45  ;;  %v2792_v45 = vld [vmem:[#allocation2 + $0x174] sm:$0xf] }
 0x2cf   : > { %v2164_v21 = vmax.f32 %v2036_v52, 0.0  ;;  %v2577_v52 = vld [vmem:[#allocation2 + $0x274] sm:$0xf]  ;;  %v6276_v35 = vld [vmem:[#allocation3 + $0x6c] sm:$0xf0] }
 0x2d0   : > { %v1672_v28 = vpop.f32.mrf.mxu1  ;;  %2609 = vst [vmem:[#allocation3 + $0xfc] sm:$0xf] %v2577_v52 }
 0x2d1   : > { %v1673_v6 = vadd.f32 %v1672_v28, %v1343_v53  ;;  %v1351_v63 = vpop.f32.mrf.mxu0  ;;  %v7247_v53 = vld [vmem:[#allocation3 + $0x4] sm:$0xf]  ;;  %2824 = vst [vmem:[#allocation3 + $0x3d8] sm:$0xf] %v2792_v45 }
 0x2d2   : > { %v6243_v61 = vor.u32 %v7247_v53, %v6240_v60  ;;  %v2579_v53 = vld [vmem:[#allocation2 + $0x284] sm:$0xf] }
 0x2d3   : > { %v1905_v13 = vmul.f32 %v8392_v42, %v1673_v6  ;;  %v5991_v6 = vor.u32 %v7186_v7, %v5990_v57  ;;  %v7269_v36 = vld [vmem:[#allocation3 + $0xb0] sm:$0xf0]  ;;  %2611 = vst [vmem:[#allocation3 + $0x144] sm:$0xf] %v2579_v53  ;;  %v2908_v57 = vld [vmem:[#allocation2 + $0x138] sm:$0xf] }
 0x2d4   : > { %4722 = vmatmul.bf16.vlgmr.msrb.gmra.mxu3 %v6243_v61  ;;  %v8606_v61 = vld [vmem:[%s9774_s3] ss:$0 sm:$0xff]  ;;  %v2791_v7 = vld [vmem:[#allocation2 + $0x170] sm:$0xf]  ;;  %2940 = vst [vmem:[#allocation3 + $0x20c] sm:$0xf] %v2908_v57 }
 0x2d5   : > { %v2037_v12 = vadd.f32 %v8401_v38, %v1905_v13  ;;  %1395 = vmatmul.bf16.gmra.mxu0 %v5991_v6  ;;  %2823 = vst [vmem:[#allocation3 + $0x3b4] sm:$0xf] %v2791_v7  ;;  %v6382_v47 = vld [vmem:[#allocation3 + $0x120] sm:$0xf]  ;;  %v7192_v57 = vld [vmem:[%s8069_s21 + $0x2c4] sm:$0xf0] }
 0x2d6   : > { %v7191_v7 = vld [vmem:[%s8069_s21 + $0x2c4] sm:$0xf] }
 0x2d7   : > { %v2165_v23 = vmax.f32 %v2037_v12, 0.0  ;;  %v2641_v12 = vld [vmem:[#allocation2 + $0x1b0] sm:$0xf] }
 0x2d8   : > { %v1675_v3 = vpop.f32.mrf.mxu1  ;;  %2673 = vst [vmem:[#allocation3 + $0xdc] sm:$0xf] %v2641_v12  ;;  %v6346_v12 = vld [vmem:[#allocation3 + $0xd8] sm:$0xf] }
 0x2d9   : > { %v1676_v17 = vadd.f32 %v1675_v3, %v1346_v62  ;;  %v7616_v2 = vpack.c.bf16 %v2165_v23, %v2164_v21  ;;  %v1353_v50 = vpop.f32.mrf.mxu0  ;;  %v6274_v62 = vld [vmem:[#allocation3 + $0x48] sm:$0xf]  ;;  %v2785_v21 = vld [vmem:[#allocation2 + $0x150] sm:$0xf] }
 0x2da   : > { %v6275_v55 = vor.u32 %v7260_v43, %v6274_v62  ;;  %2817 = vst [vmem:[#allocation3 + $0x2dc] sm:$0xf] %v2785_v21  ;;  %v7287_v53 = vld [vmem:[#allocation3 + $0x140] sm:$0xf0] }
 0x2db   : > { %1714 = vmatmul.bf16.gmra.mxu1 %v5979_v11  ;;  %v1906_v22 = vmul.f32 %v8392_v42, %v1676_v17  ;;  %7892 = vst [vmem:[#allocation2 + $0x180] sm:$0xff] %v7616_v2   ;;  %v5992_v11 = vld [vmem:[%s8069_s21 + $0x298] sm:$0xf0]  ;;  %v2642_v17 = vld [vmem:[#allocation2 + $0x1b4] sm:$0xf] }
 0x2dc   : > { %4638 = vmatmul.bf16.gmra.mxu2 %v6275_v55  ;;  %v5995_v3 = vor.u32 %v7185_v56, %v5992_v11  ;;  %2674 = vst [vmem:[#allocation3 + $0x100] sm:$0xf] %v2642_v17  ;;  %v2907_v2 = vld [vmem:[#allocation2 + $0x134] sm:$0xf]  ;;  %v7278_v17 = vld [vmem:[#allocation3 + $0xf8] sm:$0xf0] }
 0x2dd   : > { %v2038_v15 = vadd.f32 %v8401_v38, %v1906_v22  ;;  %v2786_v22 = vld [vmem:[#allocation2 + $0x154] sm:$0xf]  ;;  %2939 = vst [vmem:[#allocation3 + $0x1e8] sm:$0xf] %v2907_v2 }
 0x2de   : > { %2818 = vst [vmem:[#allocation3 + $0x300] sm:$0xf] %v2786_v22  ;;  %v7265_v56 = vld [vmem:[#allocation3 + $0x94] sm:$0xf]  ;;  %v2911_v22 = vld [vmem:[#allocation2 + $0x14c] sm:$0xf] }
 0x2df   : > { %v2166_v33 = vmax.f32 %v2038_v15, 0.0  ;;  %v6279_v15 = vor.u32 %v7256_v32, %v6276_v35  ;;  %2943 = vst [vmem:[#allocation3 + $0x278] sm:$0xf] %v2911_v22  ;;  %v6008_v35 = vld [vmem:[%s8069_s21 + $0x2b8] sm:$0xf0] }
 0x2e0   : > { %v1677_v24 = vpop.f32.mrf.mxu1 }
 0x2e1   : > { %v1678_v19 = vadd.f32 %v1677_v24, %v1348_v16  ;;  %v1356_v51 = vpop.f32.mrf.mxu0 }
 0x2e3   : > { %v1907_v41 = vmul.f32 %v8392_v42, %v1678_v19 }
 0x2e4   : > { %4727 = vmatmul.bf16.gmra.mxu3 %v6279_v15 }
 0x2e5   : > { %v2039_v40 = vadd.f32 %v8401_v38, %v1907_v41  ;;  %v6310_v41 = vld [vmem:[#allocation3 + $0x90] sm:$0xf] }
 0x2e7   : > { %v2167_v46 = vmax.f32 %v2039_v40, 0.0  ;;  %v6311_v40 = vor.u32 %v7269_v36, %v6310_v41 }
 0x2e8   : > { %v1680_v14 = vpop.f32.mrf.mxu1 }
 0x2e9   : > { %v7621_v49 = vpack.c.bf16 %v2167_v46, %v2166_v33  ;;  %v1681_v54 = vadd.f32 %v1680_v14, %v1351_v63  ;;  %v2787_v63 = vld [vmem:[#allocation2 + $0x158] sm:$0xf]  ;;  %v7187_v14 = vld [vmem:[%s8069_s21 + $0x2a4] sm:$0xf] }
 0x2ea   : > { %2819 = vst [vmem:[#allocation3 + $0x324] sm:$0xf] %v2787_v63  ;;  %v6347_v63 = vor.u32 %v7278_v17, %v6346_v12 }
 0x2eb   : > { %1719 = vmatmul.bf16.gmra.mxu1 %v5987_v9  ;;  %7893 = vst [vmem:[#allocation2 + $0x188] sm:$0xff] %v7621_v49   ;;  %v1908_v28 = vmul.f32 %v8392_v42, %v1681_v54  ;;  %v2905_v9 = vld [vmem:[#allocation2 + $0x12c] sm:$0xf] }
 0x2ec   : > { %2937 = vst [vmem:[#allocation3 + $0x1a0] sm:$0xf] %v2905_v9  ;;  %v6000_v54 = vld [vmem:[%s8069_s21 + $0x2a8] sm:$0xf0]  ;;  %4643 = vmatmul.bf16.gmra.mxu2 %v6311_v40  ;;  %v2793_v40 = vld [vmem:[#allocation2 + $0x178] sm:$0xf] }
 0x2ed   : > { %v2040_v13 = vadd.f32 %v8401_v38, %v1908_v28  ;;  %v6003_v30 = vor.u32 %v7187_v14, %v6000_v54  ;;  %2825 = vst [vmem:[#allocation3 + $0x3fc] sm:$0xf] %v2793_v40  ;;  %v6348_v14 = vld [vmem:[#allocation3 + $0xfc] sm:$0xf0] }
 0x2ef   : > { %v2168_v24 = vmax.f32 %v2040_v13, 0.0  ;;  %v6312_v13 = vld [vmem:[#allocation3 + $0xb4] sm:$0xf0] }
 0x2f0   : > { %v1682_v4 = vpop.f32.mrf.mxu1  ;;  %v6315_v52 = vor.u32 %v7265_v56, %v6312_v13  ;;  %v6016_v56 = vld [vmem:[%s8069_s21 + $0x2c8] sm:$0xf0] }
 0x2f1   : > { %v1683_v5 = vadd.f32 %v1682_v4, %v1353_v50  ;;  %v7188_v50 = vld [vmem:[%s8069_s21 + $0x2a4] sm:$0xf0]  ;;  %v6019_v45 = vor.u32 %v7191_v7, %v6016_v56  ;;  %v2916_v7 = vld [vmem:[#allocation2 + $0x160] sm:$0xf]  ;;  %v2917_v56 = vld [vmem:[#allocation2 + $0x164] sm:$0xf] }
 0x2f2   : > { %v5999_v26 = vor.u32 %v7188_v50, %v5998_v48  ;;  %v7274_v50 = vld [vmem:[#allocation3 + $0xdc] sm:$0xf]  ;;  %2948 = vst [vmem:[#allocation3 + $0x32c] sm:$0xf] %v2916_v7 }
 0x2f3   : > { %v1909_v16 = vmul.f32 %v8392_v42, %v1683_v5  ;;  %v1358_v42 = vpop.f32.mrf.mxu0  ;;  %v6351_v54 = vor.u32 %v7274_v50, %v6348_v14  ;;  %2949 = vst [vmem:[#allocation3 + $0x350] sm:$0xf] %v2917_v56 }
 0x2f4   : > { %1400 = vmatmul.bf16.gmra.mxu0 %v5999_v26  ;;  %4732 = vmatmul.bf16.gmra.mxu3 %v6315_v52 }
 0x2f5   : > { %v2041_v23 = vadd.f32 %v8401_v38, %v1909_v16 }
 0x2f7   : > { %v2169_v25 = vmax.f32 %v2041_v23, 0.0  ;;  %v2910_v23 = vld [vmem:[#allocation2 + $0x148] sm:$0xf] }
 0x2f8   : > { %v1685_v19 = vpop.f32.mrf.mxu1  ;;  %2942 = vst [vmem:[#allocation3 + $0x254] sm:$0xf] %v2910_v23  ;;  %v2796_v23 = vld [vmem:[#allocation2 + $0x184] sm:$0xf] }
 0x2f9   : > { %v7626_v37 = vpack.c.bf16 %v2169_v25, %v2168_v24  ;;  %v1686_v38 = vadd.f32 %v1685_v19, %v1356_v51  ;;  %v7189_v19 = vld [vmem:[%s8069_s21 + $0x2b4] sm:$0xf]  ;;  %2828 = vst [vmem:[#allocation3 + $0x468] sm:$0xf] %v2796_v23  ;;  %v6032_v23 = vld [vmem:[%s8069_s21 + $0x2e8] sm:$0xf0] }
 0x2fb   : > { %1724 = vmatmul.bf16.gmra.mxu1 %v5995_v3  ;;  %7894 = vst [vmem:[#allocation2 + $0x1c0] sm:$0xff] %v7626_v37   ;;  %v1910_v33 = vmul.f32 %v8596_v44, %v1686_v38  ;;  %v1361_v34 = vpop.f32.mrf.mxu0  ;;  %v2909_v3 = vld [vmem:[#allocation2 + $0x13c] sm:$0xf]  ;;  %v8616_v37 = vpop.f32.mrf.mxu2  ;;  %v6011_v38 = vor.u32 %v7189_v19, %v6008_v35 }
 0x2fc   : > { %2941 = vst [vmem:[#allocation3 + $0x230] sm:$0xf] %v2909_v3  ;;  %4648 = vmatmul.bf16.gmra.mxu2 %v6347_v63 }
 0x2fd   : > { %v2042_v62 = vadd.f32 %v8606_v61, %v1910_v33  ;;  %v2794_v33 = vld [vmem:[#allocation2 + $0x17c] sm:$0xf] }
 0x2fe   : > { %2826 = vst [vmem:[#allocation3 + $0x420] sm:$0xf] %v2794_v33 }
 0x2ff   : > { %v2170_v55 = vmax.f32 %v2042_v62, 0.0  ;;  %v2913_v62 = vld [vmem:[#allocation2 + $0x154] sm:$0xf] }
 0x300   : > { %v1687_v46 = vpop.f32.mrf.mxu1  ;;  %2945 = vst [vmem:[#allocation3 + $0x2c0] sm:$0xf] %v2913_v62 }
 0x301   : > { %v1688_v49 = vadd.f32 %v1687_v46, %v1358_v42  ;;  %v7190_v42 = vld [vmem:[%s8069_s21 + $0x2b4] sm:$0xf0] }
 0x302   : > { %v3024_v58 = vld [vmem:[#allocation2 + $0x1c0] sm:$0xf]  ;;  %v3025_v60 = vld [vmem:[#allocation2 + $0x1c4] sm:$0xf]  ;;  %v6007_v32 = vor.u32 %v7190_v42, %v6006_v59 }
 0x303   : > { %3056 = vst [vmem:[#allocation3 + $0x1c] sm:$0xf] %v3024_v58  ;;  %v1911_v28 = vmul.f32 %v8596_v44, %v1688_v49  ;;  %v2643_v43 = vld [vmem:[#allocation2 + $0x1c0] sm:$0xf]  ;;  %v2644_v51 = vld [vmem:[#allocation2 + $0x1c4] sm:$0xf]  ;;  %v1363_v6 = vpop.f32.mrf.mxu0  ;;  %v8621_v58 = vpop.f32.mrf.mxu2 }
 0x304   : > { %3057 = vst [vmem:[#allocation3 + $0x40] sm:$0xf] %v3025_v60  ;;  %1405 = vmatmul.bf16.gmra.mxu0 %v6007_v32  ;;  %4737 = vmatmul.bf16.gmra.mxu3 %v6351_v54 }
 0x305   : > { %v2043_v4 = vadd.f32 %v8606_v61, %v1911_v28  ;;  %2675 = vst [vmem:[#allocation3 + $0x124] sm:$0xf] %v2643_v43  ;;  %v6383_v28 = vor.u32 %v7287_v53, %v6382_v47 }
 0x306   : > { %2676 = vst [vmem:[#allocation3 + $0x148] sm:$0xf] %v2644_v51 }
 0x307   : > { %v2171_v5 = vmax.f32 %v2043_v4, 0.0  ;;  %v6014_v4 = vld [vmem:[%s8069_s21 + $0x2c0] sm:$0xf] }
 0x308   : > { %v1690_v11 = vpop.f32.mrf.mxu1 }
 0x309   : > { %v7631_v16 = vpack.c.bf16 %v2171_v5, %v2170_v55  ;;  %v1691_v21 = vadd.f32 %v1690_v11, %v1361_v34  ;;  %v6015_v5 = vor.u32 %v7192_v57, %v6014_v4 }
 0x30b   : > { %1729 = vmatmul.bf16.gmra.mxu1 %v6003_v30  ;;  %7895 = vst [vmem:[#allocation2 + $0x1c8] sm:$0xff] %v7631_v16   ;;  %v1912_v24 = vmul.f32 %v8596_v44, %v1691_v21  ;;  %v1366_v25 = vpop.f32.mrf.mxu0  ;;  %v2912_v30 = vld [vmem:[#allocation2 + $0x150] sm:$0xf]  ;;  %v8632_v12 = vpop.f32.mrf.mxu2  ;;  %v2795_v21 = vld [vmem:[#allocation2 + $0x180] sm:$0xf] }
 0x30c   : > { %2944 = vst [vmem:[#allocation3 + $0x29c] sm:$0xf] %v2912_v30  ;;  %4653 = vmatmul.bf16.gmra.mxu2 %v6383_v28 }
 0x30d   : > { %v2044_v15 = vadd.f32 %v8606_v61, %v1912_v24  ;;  %2827 = vst [vmem:[#allocation3 + $0x444] sm:$0xf] %v2795_v21  ;;  %v6384_v59 = vld [vmem:[#allocation3 + $0x144] sm:$0xf0]  ;;  %v7195_v21 = vld [vmem:[%s8069_s21 + $0x2e4] sm:$0xf] }
 0x30f   : > { %v2172_v34 = vmax.f32 %v2044_v15, 0.0 }
 0x310   : > { %v1692_v31 = vpop.f32.mrf.mxu1 }
 0x311   : > { %v1693_v9 = vadd.f32 %v1692_v31, %v1363_v6  ;;  %v8628_v6 = vpop.f32.mrf.mxu3 }
 0x312   : > { %v2645_v39 = vld [vmem:[#allocation2 + $0x1c8] sm:$0xf]  ;;  %v2646_v2 = vld [vmem:[#allocation2 + $0x1cc] sm:$0xf] }
 0x313   : > { %2677 = vst [vmem:[#allocation3 + $0x16c] sm:$0xf] %v2645_v39  ;;  %v1913_v41 = vmul.f32 %v8596_v44, %v1693_v9  ;;  %v1368_v48 = vpop.f32.mrf.mxu0  ;;  %v2914_v9 = vld [vmem:[#allocation2 + $0x158] sm:$0xf]  ;;  %v8637_v39 = vpop.f32.mrf.mxu2 }
 0x314   : > { %2678 = vst [vmem:[#allocation3 + $0x190] sm:$0xf] %v2646_v2  ;;  %1410 = vmatmul.bf16.gmra.mxu0 %v6015_v5 }
 0x315   : > { %v2045_v36 = vadd.f32 %v8606_v61, %v1913_v41  ;;  %2946 = vst [vmem:[#allocation3 + $0x2e4] sm:$0xf] %v2914_v9  ;;  %v6022_v41 = vld [vmem:[%s8069_s21 + $0x2d0] sm:$0xf] }
 0x317   : > { %v2173_v46 = vmax.f32 %v2045_v36, 0.0  ;;  %v7194_v36 = vld [vmem:[%s8069_s21 + $0x2d4] sm:$0xf0] }
 0x318   : > { %v1695_v49 = vpop.f32.mrf.mxu1  ;;  %v6023_v33 = vor.u32 %v7194_v36, %v6022_v41 }
 0x319   : > { %v7636_v26 = vpack.c.bf16 %v2173_v46, %v2172_v34  ;;  %v1696_v60 = vadd.f32 %v1695_v49, %v1366_v25  ;;  %v7283_v25 = vld [vmem:[#allocation3 + $0x124] sm:$0xf]  ;;  %v8635_v32 = vpop.f32.mrf.mxu3  ;;  %v7193_v34 = vld [vmem:[%s8069_s21 + $0x2d4] sm:$0xf]  ;;  %v6024_v46 = vld [vmem:[%s8069_s21 + $0x2d8] sm:$0xf0] }
 0x31a   : > { %v6387_v31 = vor.u32 %v7283_v25, %v6384_v59  ;;  %v6027_v50 = vor.u32 %v7193_v34, %v6024_v46  ;;  %v7292_v28 = vld [vmem:[#allocation3 + $0x16c] sm:$0xf]  ;;  %v2918_v46 = vld [vmem:[#allocation2 + $0x170] sm:$0xf] }
 0x31b   : > { %1734 = vmatmul.bf16.gmra.mxu1 %v6011_v38  ;;  %7896 = vst [vmem:[#allocation2 + $0x1d0] sm:$0xff] %v7636_v26   ;;  %v1914_v43 = vmul.f32 %v8596_v44, %v1696_v60  ;;  %v1371_v51 = vpop.f32.mrf.mxu0  ;;  %v2915_v38 = vld [vmem:[#allocation2 + $0x15c] sm:$0xf]  ;;  %v8649_v4 = vpop.f32.mrf.mxu2 }
 0x31c   : > { %2947 = vst [vmem:[#allocation3 + $0x308] sm:$0xf] %v2915_v38  ;;  %4742 = vmatmul.bf16.gmra.mxu3 %v6387_v31 }
 0x31d   : > { %v2046_v3 = vadd.f32 %v8606_v61, %v1914_v43  ;;  %v6420_v43 = vld [vmem:[#allocation3 + $0x18c] sm:$0xf0]  ;;  %2950 = vst [vmem:[#allocation3 + $0x374] sm:$0xf] %v2918_v46 }
 0x31f   : > { %v2174_v22 = vmax.f32 %v2046_v3, 0.0  ;;  %v7196_v3 = vld [vmem:[%s8069_s21 + $0x2e4] sm:$0xf0] }
 0x320   : > { %v1697_v55 = vpop.f32.mrf.mxu1 }
 0x321   : > { %v1698_v11 = vadd.f32 %v1697_v55, %v1368_v48  ;;  %v8646_v47 = vpop.f32.mrf.mxu3  ;;  %v6423_v55 = vor.u32 %v7292_v28, %v6420_v43 }
 0x322   : > { %v2647_v13 = vld [vmem:[#allocation2 + $0x1d0] sm:$0xf]  ;;  %v2648_v16 = vld [vmem:[#allocation2 + $0x1d4] sm:$0xf] }
 0x323   : > { %v1915_v52 = vmul.f32 %v8596_v44, %v1698_v11  ;;  %2679 = vst [vmem:[#allocation3 + $0x1b4] sm:$0xf] %v2647_v13  ;;  %v1373_v24 = vpop.f32.mrf.mxu0  ;;  %v8658_v59 = vpop.f32.mrf.mxu2 }
 0x324   : > { %2680 = vst [vmem:[#allocation3 + $0x1d8] sm:$0xf] %v2648_v16  ;;  %1415 = vmatmul.bf16.gmra.mxu0 %v6023_v33  ;;  %v6030_v16 = vld [vmem:[%s8069_s21 + $0x2e0] sm:$0xf] }
 0x325   : > { %v2047_v17 = vadd.f32 %v8606_v61, %v1915_v52 }
 0x327   : > { %v2175_v63 = vmax.f32 %v2047_v17, 0.0  ;;  %v6031_v17 = vor.u32 %v7196_v3, %v6030_v16 }
 0x328   : > { %v1700_v42 = vpop.f32.mrf.mxu1 }
 0x329   : > { %v7641_v19 = vpack.c.bf16 %v2175_v63, %v2174_v22  ;;  %v1701_v35 = vadd.f32 %v1700_v42, %v1371_v51  ;;  %v8651_v11 = vpop.f32.mrf.mxu3  ;;  %v6035_v63 = vor.u32 %v7195_v21, %v6032_v23  ;;  %v6040_v21 = vld [vmem:[%s8069_s21 + $0x2f8] sm:$0xf0] }
 0x32b   : > { %1739 = vmatmul.bf16.gmra.mxu1 %v6019_v45  ;;  %7897 = vst [vmem:[#allocation2 + $0x1d8] sm:$0xff] %v7641_v19   ;;  %v1916_v2 = vmul.f32 %v8596_v44, %v1701_v35  ;;  %v1376_v15 = vpop.f32.mrf.mxu0 }
 0x32c   : > { %4747 = vmatmul.bf16.gmra.mxu3 %v6423_v55 }
 0x32d   : > { %v2048_v26 = vadd.f32 %v8606_v61, %v1916_v2  ;;  %v7301_v2 = vld [vmem:[#allocation3 + $0x1b4] sm:$0xf] }
 0x32f   : > { %v2176_v60 = vmax.f32 %v2048_v26, 0.0 }
 0x330   : > { %v1702_v40 = vpop.f32.mrf.mxu1 }
 0x331   : > { %v1703_v48 = vadd.f32 %v1702_v40, %v1373_v24  ;;  %v8663_v36 = vpop.f32.mrf.mxu3 }
 0x332   : > { %v2649_v14 = vld [vmem:[#allocation2 + $0x1d8] sm:$0xf]  ;;  %v2650_v49 = vld [vmem:[#allocation2 + $0x1dc] sm:$0xf] }
 0x333   : > { %v1917_v54 = vmul.f32 %v8596_v44, %v1703_v48  ;;  %2681 = vst [vmem:[#allocation3 + $0x1fc] sm:$0xf] %v2649_v14  ;;  %v1378_v62 = vpop.f32.mrf.mxu0  ;;  %v2919_v48 = vld [vmem:[#allocation2 + $0x174] sm:$0xf] }
 0x334   : > { %2682 = vst [vmem:[#allocation3 + $0x220] sm:$0xf] %v2650_v49  ;;  %1420 = vmatmul.bf16.gmra.mxu0 %v6031_v17  ;;  %v7197_v17 = vld [vmem:[%s8069_s21 + $0x2f4] sm:$0xf] }
 0x335   : > { %v2049_v53 = vadd.f32 %v8606_v61, %v1917_v54  ;;  %2951 = vst [vmem:[#allocation3 + $0x398] sm:$0xf] %v2919_v48 }
 0x337   : > { %v2177_v30 = vmax.f32 %v2049_v53, 0.0  ;;  %v6038_v53 = vld [vmem:[%s8069_s21 + $0x2f0] sm:$0xf] }
 0x338   : > { %v1705_v51 = vpop.f32.mrf.mxu1 }
 0x339   : > { %v7646_v57 = vpack.c.bf16 %v2177_v30, %v2176_v60  ;;  %v1706_v5 = vadd.f32 %v1705_v51, %v1376_v15  ;;  %v6456_v15 = vld [vmem:[#allocation3 + $0x1d4] sm:$0xf0]  ;;  %v8670_v30 = vpop.f32.mrf.mxu3 }
 0x33a   : > { %v6459_v33 = vor.u32 %v7301_v2, %v6456_v15  ;;  %v7198_v60 = vld [vmem:[%s8069_s21 + $0x2f4] sm:$0xf0]  ;;  %v6046_v2 = vld [vmem:[%s8069_s21 + $0x300] sm:$0xf]  ;;  %v7200_v15 = vld [vmem:[%s8069_s21 + $0x304] sm:$0xf0] }
 0x33b   : > { %1744 = vmatmul.bf16.gmra.mxu1 %v6027_v50  ;;  %7898 = vst [vmem:[#allocation2 + $0x1e8] sm:$0xff] %v7646_v57   ;;  %v1918_v45 = vmul.f32 %v8596_v44, %v1706_v5  ;;  %v1381_v13 = vpop.f32.mrf.mxu0  ;;  %v8665_v50 = vpop.f32.mrf.mxu2  ;;  %v6039_v43 = vor.u32 %v7198_v60, %v6038_v53 }
 0x33c   : > { %4752 = vmatmul.bf16.gmra.mxu3 %v6459_v33  ;;  %v6047_v33 = vor.u32 %v7200_v15, %v6046_v2 }
 0x33d   : > { %v2050_v42 = vadd.f32 %v8606_v61, %v1918_v45  ;;  %v7310_v45 = vld [vmem:[#allocation3 + $0x1fc] sm:$0xf] }
 0x33f   : > { %v2178_v35 = vmax.f32 %v2050_v42, 0.0 }
 0x340   : > { %v1707_v52 = vpop.f32.mrf.mxu1 }
 0x341   : > { %v1708_v22 = vadd.f32 %v1707_v52, %v1378_v62  ;;  %v8679_v42 = vpop.f32.mrf.mxu3 }
 0x342   : > { %v2651_v24 = vld [vmem:[#allocation2 + $0x1e8] sm:$0xf]  ;;  %v2652_v25 = vld [vmem:[#allocation2 + $0x1ec] sm:$0xf] }
 0x343   : > { %v1919_v19 = vmul.f32 %v8596_v44, %v1708_v22  ;;  %2683 = vst [vmem:[#allocation3 + $0x244] sm:$0xf] %v2651_v24  ;;  %v1383_v38 = vpop.f32.mrf.mxu0  ;;  %v8675_v5 = vpop.f32.mrf.mxu2  ;;  %v2920_v24 = vld [vmem:[#allocation2 + $0x178] sm:$0xf] }
 0x344   : > { %2684 = vst [vmem:[#allocation3 + $0x268] sm:$0xf] %v2652_v25  ;;  %1425 = vmatmul.bf16.gmra.mxu0 %v6039_v43  ;;  %v2921_v25 = vld [vmem:[#allocation2 + $0x17c] sm:$0xf]  ;;  %v7199_v43 = vld [vmem:[%s8069_s21 + $0x304] sm:$0xf] }
 0x345   : > { %v2051_v31 = vadd.f32 %v8606_v61, %v1919_v19  ;;  %2952 = vst [vmem:[#allocation3 + $0x3bc] sm:$0xf] %v2920_v24 }
 0x346   : > { %2953 = vst [vmem:[#allocation3 + $0x3e0] sm:$0xf] %v2921_v25 }
 0x347   : > { %v2179_v9 = vmax.f32 %v2051_v31, 0.0 }
 0x348   : > { %v1710_v41 = vpop.f32.mrf.mxu1 }
 0x349   : > { %v7651_v40 = vpack.c.bf16 %v2179_v9, %v2178_v35  ;;  %v1711_v34 = vadd.f32 %v1710_v41, %v1381_v13  ;;  %v6492_v13 = vld [vmem:[#allocation3 + $0x21c] sm:$0xf0] }
 0x34a   : > { %v6495_v23 = vor.u32 %v7310_v45, %v6492_v13  ;;  %v2922_v45 = vld [vmem:[#allocation2 + $0x180] sm:$0xf]  ;;  %v2923_v13 = vld [vmem:[#allocation2 + $0x184] sm:$0xf] }
 0x34b   : > { %1749 = vmatmul.bf16.gmra.mxu1 %v6035_v63  ;;  %7899 = vst [vmem:[#allocation2 + $0x1f0] sm:$0xff] %v7651_v40   ;;  %v1920_v14 = vmul.f32 %v8596_v44, %v1711_v34  ;;  %v1386_v49 = vpop.f32.mrf.mxu0  ;;  %v6043_v63 = vor.u32 %v7197_v17, %v6040_v21  ;;  %v4634_v9 = vpop.f32.mrf.mxu2  ;;  %v6528_v53 = vld [vmem:[#allocation3 + $0x264] sm:$0xf0] }
 0x34c   : > { %4757 = vmatmul.bf16.gmra.mxu3 %v6495_v23  ;;  %2954 = vst [vmem:[#allocation3 + $0x404] sm:$0xf] %v2922_v45  ;;  %v6054_v23 = vld [vmem:[%s8069_s21 + $0x310] sm:$0xf] }
 0x34d   : > { %v2052_v62 = vadd.f32 %v8606_v61, %v1920_v14  ;;  %v8687_v14 = vpop.f32.mrf.mxu3  ;;  %2955 = vst [vmem:[#allocation3 + $0x428] sm:$0xf] %v2923_v13  ;;  %v6062_v13 = vld [vmem:[%s8069_s21 + $0x320] sm:$0xf] }
 0x34f   : > { %v2180_v7 = vmax.f32 %v2052_v62, 0.0 }
 0x350   : > { %v1712_v26 = vpop.f32.mrf.mxu1 }
 0x351   : > { %v1713_v54 = vadd.f32 %v1712_v26, %v1383_v38 }
 0x352   : > { %v2653_v51 = vld [vmem:[#allocation2 + $0x1f0] sm:$0xf]  ;;  %v2654_v57 = vld [vmem:[#allocation2 + $0x1f4] sm:$0xf] }
 0x353   : > { %v1921_v28 = vmul.f32 %v8596_v44, %v1713_v54  ;;  %2685 = vst [vmem:[#allocation3 + $0x28c] sm:$0xf] %v2653_v51  ;;  %v1388_v16 = vpop.f32.mrf.mxu0  ;;  %v7319_v54 = vld [vmem:[#allocation3 + $0x244] sm:$0xf]  ;;  %v6048_v51 = vld [vmem:[%s8069_s21 + $0x308] sm:$0xf0] }
 0x354   : > { %2686 = vst [vmem:[#allocation3 + $0x2b0] sm:$0xf] %v2654_v57  ;;  %1430 = vmatmul.bf16.gmra.mxu0 %v6047_v33  ;;  %v6531_v57 = vor.u32 %v7319_v54, %v6528_v53 }
 0x355   : > { %v2053_v55 = vadd.f32 %v8606_v61, %v1921_v28 }
 0x357   : > { %v2181_v56 = vmax.f32 %v2053_v55, 0.0  ;;  %v8691_v55 = vpop.f32.mrf.mxu2  ;;  %v4723_v21 = vpop.f32.mrf.mxu3 }
 0x358   : > { %v1715_v3 = vpop.f32.mrf.mxu1 }
 0x359   : > { %v7656_v52 = vpack.c.bf16 %v2181_v56, %v2180_v7  ;;  %v1716_v22 = vadd.f32 %v1715_v3, %v1386_v49  ;;  %v6051_v56 = vor.u32 %v7199_v43, %v6048_v51 }
 0x35b   : > { %7900 = vst [vmem:[#allocation2 + $0x1f8] sm:$0xff] %v7656_v52   ;;  %1754 = vmatmul.bf16.gmra.mxu1 %v6043_v63  ;;  %v1922_v19 = vmul.f32 %v8596_v44, %v1716_v22  ;;  %v1391_v31 = vpop.f32.mrf.mxu0  ;;  %v7202_v22 = vld [vmem:[%s8069_s21 + $0x314] sm:$0xf0]  ;;  %v8696_v63 = vadd.f32 %v4723_v21, %v4634_v9  ;;  %v6564_v9 = vld [vmem:[#allocation3 + $0x2ac] sm:$0xf0] }
 0x35c   : > { %4762 = vmatmul.bf16.gmra.mxu3 %v6531_v57 }
 0x35d   : > { %v2054_v41 = vadd.f32 %v8606_v61, %v1922_v19  ;;  %v6055_v19 = vor.u32 %v7202_v22, %v6054_v23  ;;  %v7462_v23 = vld [vmem:[%s9775_s4 + $0x238] sm:$0xff] }
 0x35e   : > { %5337 = vmatpush.bf16.msrb.mxu0 %v7462_v23 }
 0x35f   : > { %v2182_v49 = vmax.f32 %v2054_v41, 0.0 }
 0x360   : > { %v1717_v35 = vpop.f32.mrf.mxu1 }
 0x361   : > { %v1718_v38 = vadd.f32 %v1717_v35, %v1388_v16 }
 0x362   : > { %v2655_v34 = vld [vmem:[#allocation2 + $0x1f8] sm:$0xf]  ;;  %v2656_v46 = vld [vmem:[#allocation2 + $0x1fc] sm:$0xf] }
 0x363   : > { %v1923_v40 = vmul.f32 %v8596_v44, %v1718_v38  ;;  %2687 = vst [vmem:[#allocation3 + $0x2d4] sm:$0xf] %v2655_v34  ;;  %v1393_v60 = vpop.f32.mrf.mxu0  ;;  %v4639_v38 = vpop.f32.mrf.mxu2 }
 0x364   : > { %2688 = vst [vmem:[#allocation3 + $0x2f8] sm:$0xf] %v2656_v46  ;;  %1435 = vmatmul.bf16.gmra.mxu0 %v6055_v19 }
 0x365   : > { %v2055_v48 = vadd.f32 %v8606_v61, %v1923_v40  ;;  %v7328_v40 = vld [vmem:[#allocation3 + $0x28c] sm:$0xf] }
 0x366   : > { %v6567_v54 = vor.u32 %v7328_v40, %v6564_v9 }
 0x367   : > { %v2183_v26 = vmax.f32 %v2055_v48, 0.0  ;;  %v8701_v48 = vpop.f32.mrf.mxu3 }
 0x368   : > { %v1720_v62 = vpop.f32.mrf.mxu1 }
 0x369   : > { %v7661_v28 = vpack.c.bf16 %v2183_v26, %v2182_v49  ;;  %v1721_v7 = vadd.f32 %v1720_v62, %v1391_v31  ;;  %v7201_v49 = vld [vmem:[%s8069_s21 + $0x314] sm:$0xf]  ;;  %v6056_v26 = vld [vmem:[%s8069_s21 + $0x318] sm:$0xf0]  ;;  %v2924_v62 = vld [vmem:[#allocation2 + $0x188] sm:$0xf] }
 0x36a   : > { %2956 = vst [vmem:[#allocation3 + $0x44c] sm:$0xf] %v2924_v62 }
 0x36b   : > { %7901 = vst [vmem:[#allocation2 + $0x200] sm:$0xff] %v7661_v28   ;;  %1759 = vmatmul.bf16.gmra.mxu1 %v6051_v56  ;;  %v1924_v16 = vmul.f32 %v8596_v44, %v1721_v7  ;;  %v1396_v3 = vpop.f32.mrf.mxu0  ;;  %v2925_v28 = vld [vmem:[#allocation2 + $0x18c] sm:$0xf]  ;;  %v8705_v43 = vpop.f32.mrf.mxu2 }
 0x36c   : > { %2957 = vst [vmem:[#allocation3 + $0x470] sm:$0xf] %v2925_v28  ;;  %4767 = vmatmul.bf16.gmra.mxu3 %v6567_v54 }
 0x36d   : > { %v2056_v24 = vadd.f32 %v8606_v61, %v1924_v16  ;;  %v7204_v16 = vld [vmem:[%s8069_s21 + $0x324] sm:$0xf0] }
 0x36e   : > { %v6063_v21 = vor.u32 %v7204_v16, %v6062_v13 }
 0x36f   : > { %v2184_v15 = vmax.f32 %v2056_v24, 0.0  ;;  %v4728_v45 = vpop.f32.mrf.mxu3 }
 0x370   : > { %v1722_v52 = vpop.f32.mrf.mxu1 }
 0x371   : > { %v1723_v17 = vadd.f32 %v1722_v52, %v1393_v60  ;;  %v6059_v60 = vor.u32 %v7201_v49, %v6056_v26  ;;  %v8710_v52 = vadd.f32 %v4728_v45, %v4639_v38  ;;  %v7337_v38 = vld [vmem:[#allocation3 + $0x2d4] sm:$0xf] }
 0x372   : > { %v2657_v31 = vld [vmem:[#allocation2 + $0x200] sm:$0xf]  ;;  %v2658_v35 = vld [vmem:[#allocation2 + $0x204] sm:$0xf] }
 0x373   : > { %v1925_v25 = vmul.f32 %v8596_v44, %v1723_v17  ;;  %2689 = vst [vmem:[#allocation3 + $0x31c] sm:$0xf] %v2657_v31  ;;  %v1398_v33 = vpop.f32.mrf.mxu0  ;;  %v4644_v19 = vpop.f32.mrf.mxu2 }
 0x374   : > { %2690 = vst [vmem:[#allocation3 + $0x340] sm:$0xf] %v2658_v35  ;;  %1440 = vmatmul.bf16.gmra.mxu0 %v6063_v21 }
 0x375   : > { %v2057_v2 = vadd.f32 %v8606_v61, %v1925_v25 }
 0x377   : > { %v2185_v41 = vmax.f32 %v2057_v2, 0.0  ;;  %v6600_v2 = vld [vmem:[#allocation3 + $0x2f4] sm:$0xf0]  ;;  %v8718_v9 = vpop.f32.mrf.mxu3 }
 0x378   : > { %v1725_v34 = vpop.f32.mrf.mxu1 }
 0x379   : > { %v7666_v46 = vpack.c.bf16 %v2185_v41, %v2184_v15  ;;  %v1726_v53 = vadd.f32 %v1725_v34, %v1396_v3  ;;  %v6064_v34 = vld [vmem:[%s8069_s21 + $0x328] sm:$0xf0] }
 0x37a   : > { %v7346_v21 = vld [vmem:[#allocation3 + $0x31c] sm:$0xf] }
 0x37b   : > { %7902 = vst [vmem:[#allocation2 + $0x210] sm:$0xff] %v7666_v46   ;;  %1764 = vmatmul.bf16.gmra.mxu1 %v6059_v60  ;;  %v1926_v51 = vmul.f32 %v8596_v44, %v1726_v53  ;;  %v1401_v57 = vpop.f32.mrf.mxu0  ;;  %v6603_v46 = vor.u32 %v7337_v38, %v6600_v2  ;;  %v8723_v62 = vpop.f32.mrf.mxu2  ;;  %v6636_v23 = vld [vmem:[#allocation3 + $0x33c] sm:$0xf0]  ;;  %v7205_v38 = vld [vmem:[%s8069_s21 + $0x334] sm:$0xf] }
 0x37c   : > { %v6639_v2 = vor.u32 %v7346_v21, %v6636_v23 }
 0x37d   : > { %v2058_v3 = vadd.f32 %v8606_v61, %v1926_v51  ;;  %4772 = vmatmul.bf16.gmra.mxu3 %v6603_v46  ;;  %v3026_v46 = vld [vmem:[#allocation2 + $0x1c8] sm:$0xf] }
 0x37e   : > { %3058 = vst [vmem:[#allocation3 + $0x64] sm:$0xf] %v3026_v46  ;;  %v7422_v46 = vld [vmem:[%s9775_s4 + $0xf8] sm:$0xff] }
 0x37f   : > { %v2186_v31 = vmax.f32 %v2058_v3, 0.0  ;;  %v4733_v51 = vpop.f32.mrf.mxu3  ;;  %4892 = vmatpush.bf16.msra.mxu3 %v7422_v46 }
 0x380   : > { %v1727_v7 = vpop.f32.mrf.mxu1 }
 0x381   : > { %v1728_v56 = vadd.f32 %v1727_v7, %v1398_v33  ;;  %v7203_v33 = vld [vmem:[%s8069_s21 + $0x324] sm:$0xf]  ;;  %v8725_v7 = vadd.f32 %v4733_v51, %v4644_v19 }
 0x382   : > { %v2659_v22 = vld [vmem:[#allocation2 + $0x210] sm:$0xf]  ;;  %v2660_v24 = vld [vmem:[#allocation2 + $0x214] sm:$0xf]  ;;  %v6067_v26 = vor.u32 %v7203_v33, %v6064_v34  ;;  %v6072_v33 = vld [vmem:[%s8069_s21 + $0x338] sm:$0xf0] }
 0x383   : > { %v1927_v17 = vmul.f32 %v8596_v44, %v1728_v56  ;;  %2691 = vst [vmem:[#allocation3 + $0x364] sm:$0xf] %v2659_v22  ;;  %v1403_v15 = vpop.f32.mrf.mxu0  ;;  %v6075_v34 = vor.u32 %v7205_v38, %v6072_v33  ;;  %v7207_v38 = vld [vmem:[%s8069_s21 + $0x344] sm:$0xf]  ;;  %v3028_v33 = vld [vmem:[#allocation2 + $0x1d0] sm:$0xf] }
 0x384   : > { %2692 = vst [vmem:[#allocation3 + $0x388] sm:$0xf] %v2660_v24 }
 0x385   : > { %v2059_v25 = vadd.f32 %v8606_v61, %v1927_v17  ;;  %3060 = vst [vmem:[#allocation3 + $0xac] sm:$0xf] %v3028_v33  ;;  %v7209_v33 = vld [vmem:[%s8069_s21 + $0x354] sm:$0xf] }
 0x387   : > { %v2187_v35 = vmax.f32 %v2059_v25, 0.0  ;;  %v8730_v19 = vpop.f32.mrf.mxu3 }
 0x388   : > { %v1730_v41 = vpop.f32.mrf.mxu1 }
 0x389   : > { %v7671_v40 = vpack.c.bf16 %v2187_v35, %v2186_v31  ;;  %v1731_v49 = vadd.f32 %v1730_v41, %v1401_v57  ;;  %v6070_v31 = vld [vmem:[%s8069_s21 + $0x330] sm:$0xf]  ;;  %v7206_v35 = vld [vmem:[%s8069_s21 + $0x334] sm:$0xf0] }
 0x38a   : > { %v7355_v23 = vld [vmem:[#allocation3 + $0x364] sm:$0xf] }
 0x38b   : > { %7903 = vst [vmem:[#allocation2 + $0x218] sm:$0xff] %v7671_v40   ;;  %1769 = vmatmul.bf16.gmra.mxu1 %v6067_v26  ;;  %v1928_v54 = vmul.f32 %v8596_v44, %v1731_v49  ;;  %v1406_v53 = vpop.f32.mrf.mxu0  ;;  %v6071_v40 = vor.u32 %v7206_v35, %v6070_v31  ;;  %v3027_v49 = vld [vmem:[#allocation2 + $0x1cc] sm:$0xf] }
 0x38c   : > { %3059 = vst [vmem:[#allocation3 + $0x88] sm:$0xf] %v3027_v49 }
 0x38d   : > { %v2060_v56 = vadd.f32 %v8606_v61, %v1928_v54  ;;  %1445 = vmatmul.bf16.gmra.mxu0 %v6071_v40  ;;  %4777 = vmatmul.bf16.gmra.mxu3 %v6639_v2  ;;  %v6080_v2 = vld [vmem:[%s8069_s21 + $0x348] sm:$0xf0] }
 0x38e   : > { %v6083_v40 = vor.u32 %v7207_v38, %v6080_v2 }
 0x38f   : > { %v2188_v3 = vmax.f32 %v2060_v56, 0.0  ;;  %v4738_v51 = vpop.f32.mrf.mxu3 }
 0x390   : > { %v1732_v60 = vpop.f32.mrf.mxu1 }
 0x391   : > { %v1733_v28 = vadd.f32 %v1732_v60, %v1403_v15  ;;  %v4649_v15 = vpop.f32.mrf.mxu2 }
 0x392   : > { %v2661_v57 = vld [vmem:[#allocation2 + $0x218] sm:$0xf]  ;;  %v2662_v13 = vld [vmem:[#allocation2 + $0x21c] sm:$0xf]  ;;  %v8737_v56 = vadd.f32 %v4738_v51, %v4649_v15 }
 0x393   : > { %v1929_v45 = vmul.f32 %v8596_v44, %v1733_v28  ;;  %2693 = vst [vmem:[#allocation3 + $0x3ac] sm:$0xf] %v2661_v57  ;;  %v1408_v22 = vpop.f32.mrf.mxu0 }
 0x394   : > { %2694 = vst [vmem:[#allocation3 + $0x3d0] sm:$0xf] %v2662_v13 }
 0x395   : > { %v2061_v16 = vadd.f32 %v8606_v61, %v1929_v45 }
 0x397   : > { %v2189_v17 = vmax.f32 %v2061_v16, 0.0  ;;  %v8744_v35 = vpop.f32.mrf.mxu3 }
 0x398   : > { %v1735_v24 = vpop.f32.mrf.mxu1 }
 0x399   : > { %v7676_v25 = vpack.c.bf16 %v2189_v17, %v2188_v3  ;;  %v1736_v41 = vadd.f32 %v1735_v24, %v1406_v53  ;;  %v8741_v16 = vpop.f32.mrf.mxu2 }
 0x39b   : > { %7904 = vst [vmem:[#allocation2 + $0x220] sm:$0xff] %v7676_v25   ;;  %1774 = vmatmul.bf16.gmra.mxu1 %v6075_v34  ;;  %v1930_v26 = vmul.f32 %v8596_v44, %v1736_v41  ;;  %v1411_v54 = vpop.f32.mrf.mxu0  ;;  %v3029_v34 = vld [vmem:[#allocation2 + $0x1d4] sm:$0xf] }
 0x39c   : > { %3061 = vst [vmem:[#allocation3 + $0xd0] sm:$0xf] %v3029_v34  ;;  %v6088_v34 = vld [vmem:[%s8069_s21 + $0x358] sm:$0xf0] }
 0x39d   : > { %v2062_v53 = vadd.f32 %v8606_v61, %v1930_v26 }
 0x39f   : > { %v2190_v17 = vmax.f32 %v2062_v53, 0.0  ;;  %v4743_v53 = vpop.f32.mrf.mxu3 }
 0x3a0   : > { %v1737_v60 = vpop.f32.mrf.mxu1 }
 0x3a1   : > { %v1738_v28 = vadd.f32 %v1737_v60, %v1408_v22  ;;  %v6672_v22 = vld [vmem:[#allocation3 + $0x384] sm:$0xf0]  ;;  %v4654_v49 = vpop.f32.mrf.mxu2 }
 0x3a2   : > { %v2663_v57 = vld [vmem:[#allocation2 + $0x220] sm:$0xf]  ;;  %v2664_v13 = vld [vmem:[#allocation2 + $0x224] sm:$0xf]  ;;  %v6675_v15 = vor.u32 %v7355_v23, %v6672_v22 }
 0x3a3   : > { %v1931_v45 = vmul.f32 %v8596_v44, %v1738_v28  ;;  %2695 = vst [vmem:[#allocation3 + $0x3f4] sm:$0xf] %v2663_v57  ;;  %v1413_v24 = vpop.f32.mrf.mxu0 }
 0x3a4   : > { %2696 = vst [vmem:[#allocation3 + $0x418] sm:$0xf] %v2664_v13  ;;  %4782 = vmatmul.bf16.gmra.mxu3 %v6675_v15 }
 0x3a5   : > { %v2063_v3 = vadd.f32 %v8606_v61, %v1931_v45  ;;  %v8755_v45 = vadd.f32 %v4743_v53, %v4654_v49  ;;  %v7418_v53 = vld [vmem:[%s9775_s4 + $0xd8] sm:$0xff] }
 0x3a7   : > { %v2191_v21 = vmax.f32 %v2063_v3, 0.0  ;;  %v7420_v3 = vld [vmem:[%s9775_s4 + $0xe8] sm:$0xff] }
 0x3a8   : > { %v1740_v25 = vpop.f32.mrf.mxu1 }
 0x3a9   : > { %v7681_v31 = vpack.c.bf16 %v2191_v21, %v2190_v17  ;;  %v1741_v41 = vadd.f32 %v1740_v25, %v1411_v54  ;;  %v7421_v54 = vld [vmem:[%s9775_s4 + $0xf0] sm:$0xff]  ;;  %v7364_v25 = vld [vmem:[#allocation3 + $0x3ac] sm:$0xf] }
 0x3aa   : > { %4893 = vmatpush.bf16.msra.mxu3 %v7421_v54 }
 0x3ab   : > { %7905 = vst [vmem:[#allocation2 + $0x228] sm:$0xff] %v7681_v31   ;;  %1779 = vmatmul.bf16.gmra.mxu1 %v6083_v40  ;;  %v1932_v26 = vmul.f32 %v8596_v44, %v1741_v41  ;;  %v1416_v60 = vpop.f32.mrf.mxu0  ;;  %v6708_v31 = vld [vmem:[#allocation3 + $0x3cc] sm:$0xf0]  ;;  %v8763_v41 = vpop.f32.mrf.mxu3  ;;  %v7419_v40 = vld [vmem:[%s9775_s4 + $0xe0] sm:$0xff] }
 0x3ac   : > { %v6711_v46 = vor.u32 %v7364_v25, %v6708_v31  ;;  %v2765_v25 = vld [vmem:[#allocation2 + $0xf0] sm:$0xf]  ;;  %v2766_v31 = vld [vmem:[#allocation2 + $0xf4] sm:$0xf] }
 0x3ad   : > { %v2064_v57 = vadd.f32 %v8606_v61, %v1932_v26  ;;  %v6091_v26 = vor.u32 %v7209_v33, %v6088_v34  ;;  %2797 = vst [vmem:[#allocation3 + $0xc] sm:$0xf] %v2765_v25  ;;  %v6744_v33 = vld [vmem:[#allocation3 + $0x414] sm:$0xf0] }
 0x3ae   : > { %4894 = vmatpush.bf16.msra.mxu3 %v7420_v3  ;;  %2798 = vst [vmem:[#allocation3 + $0x30] sm:$0xf] %v2766_v31 }
 0x3af   : > { %v2192_v22 = vmax.f32 %v2064_v57, 0.0  ;;  %v7414_v57 = vld [vmem:[%s9775_s4 + $0xb8] sm:$0xff] }
 0x3b0   : > { %v1742_v28 = vpop.f32.mrf.mxu1  ;;  %4803 = vmatpush.bf16.msra.mxu2 %v7414_v57 }
 0x3b1   : > { %v1743_v51 = vadd.f32 %v1742_v28, %v1413_v24  ;;  %v3030_v28 = vld [vmem:[#allocation2 + $0x1d8] sm:$0xf] }
 0x3b2   : > { %v2665_v17 = vld [vmem:[#allocation2 + $0x228] sm:$0xf]  ;;  %v2666_v21 = vld [vmem:[#allocation2 + $0x22c] sm:$0xf]  ;;  %4895 = vmatpush.bf16.msra.mxu3 %v7419_v40  ;;  %3062 = vst [vmem:[#allocation3 + $0xf4] sm:$0xf] %v3030_v28 }
 0x3b3   : > { %v1933_v13 = vmul.f32 %v8596_v44, %v1743_v51  ;;  %2697 = vst [vmem:[#allocation3 + $0x43c] sm:$0xf] %v2665_v17  ;;  %v1418_v38 = vpop.f32.mrf.mxu0  ;;  %v3031_v51 = vld [vmem:[#allocation2 + $0x1dc] sm:$0xf]  ;;  %v8777_v17 = vpop.f32.mrf.mxu3  ;;  %v7373_v40 = vld [vmem:[#allocation3 + $0x3f4] sm:$0xf] }
 0x3b4   : > { %2698 = vst [vmem:[#allocation3 + $0x460] sm:$0xf] %v2666_v21  ;;  %4787 = vmatmul.bf16.gmra.mxu3 %v6711_v46  ;;  %v7417_v21 = vld [vmem:[%s9775_s4 + $0xd0] sm:$0xff]  ;;  %v7211_v28 = vld [vmem:[%s8069_s21 + $0x364] sm:$0xf] }
 0x3b5   : > { %v2065_v23 = vadd.f32 %v8606_v61, %v1933_v13  ;;  %3063 = vst [vmem:[#allocation3 + $0x118] sm:$0xf] %v3031_v51  ;;  %v6096_v51 = vld [vmem:[%s8069_s21 + $0x368] sm:$0xf0] }
 0x3b6   : > { %4896 = vmatpush.bf16.msra.mxu3 %v7418_v53  ;;  %v6747_v53 = vor.u32 %v7373_v40, %v6744_v33  ;;  %v6099_v57 = vor.u32 %v7211_v28, %v6096_v51  ;;  %v7213_v51 = vld [vmem:[%s8069_s21 + $0x374] sm:$0xf] }
 0x3b7   : > { %v2193_v24 = vmax.f32 %v2065_v23, 0.0 }
 0x3b8   : > { %v1745_v2 = vpop.f32.mrf.mxu1 }
 0x3b9   : > { %v7686_v15 = vpack.c.bf16 %v2193_v24, %v2192_v22  ;;  %v1746_v49 = vadd.f32 %v1745_v2, %v1416_v60  ;;  %v7416_v24 = vld [vmem:[%s9775_s4 + $0xc8] sm:$0xff] }
 0x3ba   : > { %4897 = vmatpush.bf16.msra.mxu3 %v7417_v21  ;;  %v8798_v21 = vld [vmem:[%s9773_s2] ss:$0 sm:$0xff]  ;;  %v7382_v33 = vld [vmem:[#allocation3 + $0x43c] sm:$0xf] }
 0x3bb   : > { %7906 = vst [vmem:[#allocation2 + $0x238] sm:$0xff] %v7686_v15   ;;  %1784 = vmatmul.bf16.gmra.mxu1 %v6091_v26  ;;  %v1934_v54 = vmul.f32 %v8596_v44, %v1746_v49  ;;  %v1421_v60 = vpop.f32.mrf.mxu0  ;;  %v8788_v49 = vpop.f32.mrf.mxu3  ;;  %v7415_v26 = vld [vmem:[%s9775_s4 + $0xc0] sm:$0xff] }
 0x3bd   : > { %v2066_v23 = vadd.f32 %v8606_v61, %v1934_v54 }
 0x3be   : > { %4898 = vmatpush.bf16.msra.mxu3 %v7416_v24 }
 0x3bf   : > { %v2194_v2 = vmax.f32 %v2066_v23, 0.0 }
 0x3c0   : > { %v1747_v13 = vpop.f32.mrf.mxu1 }
 0x3c1   : > { %v1748_v3 = vadd.f32 %v1747_v13, %v1418_v38  ;;  %v3032_v13 = vld [vmem:[#allocation2 + $0x1e8] sm:$0xf] }
 0x3c2   : > { %4899 = vmatpush.bf16.msra.mxu3 %v7415_v26  ;;  %3064 = vst [vmem:[#allocation3 + $0x13c] sm:$0xf] %v3032_v13 }
 0x3c3   : > { %v1935_v22 = vmul.f32 %v8596_v44, %v1748_v3  ;;  %v1423_v34 = vpop.f32.mrf.mxu0  ;;  %v3033_v3 = vld [vmem:[#allocation2 + $0x1ec] sm:$0xf] }
 0x3c4   : > { %3065 = vst [vmem:[#allocation3 + $0x160] sm:$0xf] %v3033_v3  ;;  %4792 = vmatmul.bf16.gmra.mxu3 %v6747_v53  ;;  %v6104_v53 = vld [vmem:[%s8069_s21 + $0x378] sm:$0xf0]  ;;  %v3035_v3 = vld [vmem:[#allocation2 + $0x1f4] sm:$0xf] }
 0x3c5   : > { %v2067_v38 = vadd.f32 %v8606_v61, %v1935_v22  ;;  %v6107_v13 = vor.u32 %v7213_v51, %v6104_v53  ;;  %3067 = vst [vmem:[#allocation3 + $0x1a8] sm:$0xf] %v3035_v3 }
 0x3c7   : > { %v2195_v15 = vmax.f32 %v2067_v38, 0.0 }
 0x3c8   : > { %v1750_v44 = vpop.f32.mrf.mxu1 }
 0x3c9   : > { %v7691_v46 = vpack.c.bf16 %v2195_v15, %v2194_v2  ;;  %v1751_v54 = vadd.f32 %v1750_v44, %v1421_v60  ;;  %v8801_v60 = vpop.f32.mrf.mxu3  ;;  %v6780_v44 = vld [vmem:[#allocation3 + $0x45c] sm:$0xf0] }
 0x3ca   : > { %9779 = vst [vmem:[#allocation4_spill] sm:$0xff] %v8801_v60 }
 0x3cb   : > { %7907 = vst [vmem:[#allocation2 + $0x240] sm:$0xff] %v7691_v46   ;;  %1789 = vmatmul.bf16.gmra.mxu1 %v6099_v57  ;;  %v1936_v23 = vmul.f32 %v8798_v21, %v1751_v54  ;;  %v1426_v25 = vpop.f32.mrf.mxu0  ;;  %v6783_v54 = vor.u32 %v7382_v33, %v6780_v44  ;;  %v7248_v33 = vld [vmem:[#allocation3 + $0xc] sm:$0xf]  ;;  %v6248_v44 = vld [vmem:[#allocation3 + $0x2c] sm:$0xf0] }
 0x3cd   : > { %v2068_v31 = vadd.f32 %v8606_v61, %v1936_v23 }
 0x3cf   : > { %v2196_v15 = vmax.f32 %v2068_v31, 0.0 }
 0x3d0   : > { %v1752_v22 = vpop.f32.mrf.mxu1 }
 0x3d1   : > { %v1753_v24 = vadd.f32 %v1752_v22, %v1423_v34  ;;  %v8806_v26 = vpop.f32.mrf.mxu3  ;;  %v7413_v34 = vld [vmem:[%s9775_s4 + $0xb0] sm:$0xff] }
 0x3d2   : > { %9780 = vst [vmem:[#allocation5_spill] sm:$0xff] %v8806_v26  ;;  %4804 = vmatpush.bf16.msra.mxu2 %v7413_v34 }
 0x3d3   : > { %v1937_v38 = vmul.f32 %v8798_v21, %v1753_v24  ;;  %v1428_v28 = vpop.f32.mrf.mxu0 }
 0x3d4   : > { %4797 = vmatmul.bf16.gmra.mxu3 %v6783_v54 }
 0x3d5   : > { %v2069_v2 = vadd.f32 %v8606_v61, %v1937_v38  ;;  %v3034_v61 = vld [vmem:[#allocation2 + $0x1f0] sm:$0xf] }
 0x3d6   : > { %3066 = vst [vmem:[#allocation3 + $0x184] sm:$0xf] %v3034_v61 }
 0x3d7   : > { %v2197_v40 = vmax.f32 %v2069_v2, 0.0 }
 0x3d8   : > { %v1755_v57 = vpop.f32.mrf.mxu1 }
 0x3d9   : > { %v7696_v46 = vpack.c.bf16 %v2197_v40, %v2196_v15  ;;  %v1756_v23 = vadd.f32 %v1755_v57, %v1426_v25  ;;  %v8813_v22 = vpop.f32.mrf.mxu3  ;;  %v8819_v15 = vld [vmem:[%s9774_s3] ss:$0 sm:$0xff]  ;;  %v7215_v57 = vld [vmem:[%s8069_s21 + $0x384] sm:$0xf] }
 0x3da   : > { %9781 = vst [vmem:[#allocation6_spill] sm:$0xff] %v8813_v22  ;;  %v3037_v22 = vld [vmem:[#allocation2 + $0x1fc] sm:$0xf] }
 0x3db   : > { %7908 = vst [vmem:[#allocation2 + $0x248] sm:$0xff] %v7696_v46   ;;  %1794 = vmatmul.bf16.gmra.mxu1 %v6107_v13  ;;  %v1938_v24 = vmul.f32 %v8798_v21, %v1756_v23  ;;  %v1431_v31 = vpop.f32.mrf.mxu0  ;;  %v6251_v13 = vor.u32 %v7248_v33, %v6248_v44 }
 0x3dc   : > { %3069 = vst [vmem:[#allocation3 + $0x1f0] sm:$0xf] %v3037_v22 }
 0x3dd   : > { %v2070_v40 = vadd.f32 %v8819_v15, %v1938_v24 }
 0x3df   : > { %v2198_v53 = vmax.f32 %v2070_v40, 0.0 }
 0x3e0   : > { %v1757_v38 = vpop.f32.mrf.mxu1 }
 0x3e1   : > { %v1758_v2 = vadd.f32 %v1757_v38, %v1428_v28  ;;  %v8824_v51 = vpop.f32.mrf.mxu3  ;;  %v6112_v28 = vld [vmem:[%s8069_s21 + $0x388] sm:$0xf0]  ;;  %v3036_v38 = vld [vmem:[#allocation2 + $0x1f8] sm:$0xf] }
 0x3e2   : > { %9782 = vst [vmem:[#allocation7_spill] sm:$0xff] %v8824_v51  ;;  %v6115_v3 = vor.u32 %v7215_v57, %v6112_v28  ;;  %v7257_v57 = vld [vmem:[#allocation3 + $0x54] sm:$0xf]  ;;  %v6284_v28 = vld [vmem:[#allocation3 + $0x74] sm:$0xf0] }
 0x3e3   : > { %v1939_v25 = vmul.f32 %v8798_v21, %v1758_v2  ;;  %v1433_v54 = vpop.f32.mrf.mxu0  ;;  %3068 = vst [vmem:[#allocation3 + $0x1cc] sm:$0xf] %v3036_v38  ;;  %v7461_v2 = vld [vmem:[%s9775_s4 + $0x230] sm:$0xff] }
 0x3e4   : > { %4900 = vmatmul.bf16.vlgmr.msra.gmra.mxu3 %v6251_v13  ;;  %5338 = vmatpush.bf16.msrb.mxu0 %v7461_v2  ;;  %v7217_v38 = vld [vmem:[%s8069_s21 + $0x394] sm:$0xf] }
 0x3e5   : > { %v2071_v46 = vadd.f32 %v8819_v15, %v1939_v25 }
 0x3e7   : > { %v2199_v34 = vmax.f32 %v2071_v46, 0.0 }
 0x3e8   : > { %v1760_v61 = vpop.f32.mrf.mxu1 }
 0x3e9   : > { %v7701_v23 = vpack.c.bf16 %v2199_v34, %v2198_v53  ;;  %v1761_v24 = vadd.f32 %v1760_v61, %v1431_v31  ;;  %v8832_v25 = vpop.f32.mrf.mxu3  ;;  %v7460_v31 = vld [vmem:[%s9775_s4 + $0x228] sm:$0xff] }
 0x3ea   : > { %9783 = vst [vmem:[#allocation8_spill] sm:$0xff] %v8832_v25  ;;  %5339 = vmatpush.bf16.msrb.mxu0 %v7460_v31 }
 0x3eb   : > { %7909 = vst [vmem:[#allocation2 + $0x250] sm:$0xff] %v7701_v23   ;;  %1799 = vmatmul.bf16.gmra.mxu1 %v6115_v3  ;;  %v1940_v40 = vmul.f32 %v8798_v21, %v1761_v24  ;;  %v1436_v44 = vpop.f32.mrf.mxu0  ;;  %v7459_v23 = vld [vmem:[%s9775_s4 + $0x220] sm:$0xff]  ;;  %v6120_v24 = vld [vmem:[%s8069_s21 + $0x398] sm:$0xf0] }
 0x3ec   : > { %v6123_v2 = vor.u32 %v7217_v38, %v6120_v24  ;;  %v2774_v24 = vld [vmem:[#allocation2 + $0x11c] sm:$0xf] }
 0x3ed   : > { %v2072_v53 = vadd.f32 %v8819_v15, %v1940_v40  ;;  %v7412_v40 = vld [vmem:[%s9775_s4 + $0xa8] sm:$0xff]  ;;  %2806 = vst [vmem:[#allocation3 + $0x150] sm:$0xf] %v2774_v24  ;;  %v3041_v24 = vld [vmem:[#allocation2 + $0x214] sm:$0xf] }
 0x3ee   : > { %5340 = vmatpush.bf16.msrb.mxu0 %v7459_v23  ;;  %4805 = vmatpush.bf16.msra.mxu2 %v7412_v40  ;;  %v2773_v23 = vld [vmem:[#allocation2 + $0x118] sm:$0xf]  ;;  %3073 = vst [vmem:[#allocation3 + $0x280] sm:$0xf] %v3041_v24 }
 0x3ef   : > { %v2200_v13 = vmax.f32 %v2072_v53, 0.0  ;;  %v6287_v53 = vor.u32 %v7257_v57, %v6284_v28  ;;  %2805 = vst [vmem:[#allocation3 + $0x12c] sm:$0xf] %v2773_v23  ;;  %v7219_v23 = vld [vmem:[%s8069_s21 + $0x3a4] sm:$0xf] }
 0x3f0   : > { %v1762_v33 = vpop.f32.mrf.mxu1 }
 0x3f1   : > { %v1763_v46 = vadd.f32 %v1762_v33, %v1433_v54  ;;  %v8840_v61 = vpop.f32.mrf.mxu3  ;;  %v3038_v33 = vld [vmem:[#allocation2 + $0x200] sm:$0xf] }
 0x3f2   : > { %9784 = vst [vmem:[#allocation9_spill] sm:$0xff] %v8840_v61  ;;  %v7458_v61 = vld [vmem:[%s9775_s4 + $0x218] sm:$0xff] }
 0x3f3   : > { %v1941_v34 = vmul.f32 %v8798_v21, %v1763_v46  ;;  %v3039_v46 = vld [vmem:[#allocation2 + $0x204] sm:$0xf]  ;;  %3070 = vst [vmem:[#allocation3 + $0x214] sm:$0xf] %v3038_v33  ;;  %5341 = vmatpush.bf16.msrb.mxu0 %v7458_v61  ;;  %v7266_v33 = vld [vmem:[#allocation3 + $0x9c] sm:$0xf] }
 0x3f4   : > { %4905 = vmatmul.bf16.gmra.mxu3 %v6287_v53  ;;  %3071 = vst [vmem:[#allocation3 + $0x238] sm:$0xf] %v3039_v46 }
 0x3f5   : > { %v2073_v22 = vadd.f32 %v8819_v15, %v1941_v34 }
 0x3f7   : > { %v2201_v3 = vmax.f32 %v2073_v22, 0.0  ;;  %v1438_v22 = vpop.f32.mrf.mxu0 }
 0x3f8   : > { %v1765_v54 = vpop.f32.mrf.mxu1 }
 0x3f9   : > { %v7706_v31 = vpack.c.bf16 %v2201_v3, %v2200_v13  ;;  %v1766_v34 = vadd.f32 %v1765_v54, %v1436_v44  ;;  %v8854_v13 = vpop.f32.mrf.mxu3  ;;  %v7457_v44 = vld [vmem:[%s9775_s4 + $0x210] sm:$0xff]  ;;  %v7456_v3 = vld [vmem:[%s9775_s4 + $0x208] sm:$0xff] }
 0x3fa   : > { %9785 = vst [vmem:[#allocation10_spill] sm:$0xff] %v8854_v13  ;;  %5342 = vmatpush.bf16.msrb.mxu0 %v7457_v44 }
 0x3fb   : > { %7910 = vst [vmem:[#allocation2 + $0x288] sm:$0xff] %v7706_v31   ;;  %1804 = vmatmul.bf16.gmra.mxu1 %v6123_v2  ;;  %v1942_v38 = vmul.f32 %v8798_v21, %v1766_v34 }
 0x3fd   : > { %v2074_v54 = vadd.f32 %v8819_v15, %v1942_v38 }
 0x3fe   : > { %5343 = vmatpush.bf16.msrb.mxu0 %v7456_v3  ;;  %v3040_v3 = vld [vmem:[#allocation2 + $0x210] sm:$0xf] }
 0x3ff   : > { %v1441_v46 = vpop.f32.mrf.mxu0  ;;  %v2202_v44 = vmax.f32 %v2074_v54, 0.0  ;;  %3072 = vst [vmem:[#allocation3 + $0x25c] sm:$0xf] %v3040_v3 }
 0x400   : > { %v1767_v57 = vpop.f32.mrf.mxu1 }
 0x401   : > { %v1768_v28 = vadd.f32 %v1767_v57, %v1438_v22  ;;  %v6320_v22 = vld [vmem:[#allocation3 + $0xbc] sm:$0xf0]  ;;  %v8865_v38 = vpop.f32.mrf.mxu3 }
 0x402   : > { %v2580_v61 = vld [vmem:[#allocation2 + $0x288] sm:$0xf]  ;;  %v2581_v2 = vld [vmem:[#allocation2 + $0x28c] sm:$0xf]  ;;  %9786 = vst [vmem:[#allocation11_spill] sm:$0xff] %v8865_v38 }
 0x403   : > { %v1943_v40 = vmul.f32 %v8798_v21, %v1768_v28  ;;  %2612 = vst [vmem:[#allocation3 + $0x168] sm:$0xf] %v2580_v61  ;;  %v3089_v31 = vld [vmem:[#allocation2 + $0x288] sm:$0xf]  ;;  %v3090_v34 = vld [vmem:[#allocation2 + $0x28c] sm:$0xf] }
 0x404   : > { %2613 = vst [vmem:[#allocation3 + $0x18c] sm:$0xf] %v2581_v2  ;;  %v7455_v28 = vld [vmem:[%s9775_s4 + $0x200] sm:$0xff]  ;;  %v6128_v61 = vld [vmem:[%s8069_s21 + $0x3a8] sm:$0xf0] }
 0x405   : > { %v2075_v53 = vadd.f32 %v8819_v15, %v1943_v40  ;;  %3121 = vst [vmem:[#allocation3 + $0x20] sm:$0xf] %v3089_v31  ;;  %v6131_v13 = vor.u32 %v7219_v23, %v6128_v61  ;;  %5344 = vmatpush.bf16.msrb.mxu0 %v7455_v28  ;;  %v6323_v40 = vor.u32 %v7266_v33, %v6320_v22 }
 0x406   : > { %3122 = vst [vmem:[#allocation3 + $0x44] sm:$0xf] %v3090_v34 }
 0x407   : > { %v2203_v57 = vmax.f32 %v2075_v53, 0.0  ;;  %4910 = vmatmul.bf16.gmra.mxu3 %v6323_v40  ;;  %v1443_v34 = vpop.f32.mrf.mxu0 }
 0x408   : > { %v1770_v2 = vpop.f32.mrf.mxu1 }
 0x409   : > { %v7711_v25 = vpack.c.bf16 %v2203_v57, %v2202_v44  ;;  %v1771_v51 = vadd.f32 %v1770_v2, %v1441_v46  ;;  %v8873_v23 = vpop.f32.mrf.mxu3  ;;  %v7275_v2 = vld [vmem:[#allocation3 + $0xe4] sm:$0xf] }
 0x40a   : > { %v6418_v54 = vld [vmem:[#allocation3 + $0x168] sm:$0xf]  ;;  %9787 = vst [vmem:[#allocation12_spill] sm:$0xff] %v8873_v23 }
 0x40b   : > { %7911 = vst [vmem:[#allocation2 + $0x290] sm:$0xff] %v7711_v25   ;;  %1809 = vmatmul.bf16.gmra.mxu1 %v6131_v13  ;;  %v7296_v31 = vld [vmem:[#allocation3 + $0x188] sm:$0xf0]  ;;  %v1944_v26 = vmul.f32 %v8798_v21, %v1771_v51 }
 0x40c   : > { %v6419_v53 = vor.u32 %v7296_v31, %v6418_v54  ;;  %v6270_v38 = vld [vmem:[#allocation3 + $0x20] sm:$0xf]  ;;  %v7221_v31 = vld [vmem:[%s8069_s21 + $0x3b4] sm:$0xf] }
 0x40d   : > { %v7255_v44 = vld [vmem:[#allocation3 + $0x40] sm:$0xf0]  ;;  %v2076_v46 = vadd.f32 %v8819_v15, %v1944_v26 }
 0x40e   : > { %4658 = vmatmul.bf16.gmra.mxu2 %v6419_v53  ;;  %v6271_v57 = vor.u32 %v7255_v44, %v6270_v38  ;;  %v6356_v38 = vld [vmem:[#allocation3 + $0x104] sm:$0xf0]  ;;  %v6136_v53 = vld [vmem:[%s8069_s21 + $0x3b8] sm:$0xf0] }
 0x40f   : > { %v2204_v24 = vmax.f32 %v2076_v46, 0.0  ;;  %v1446_v54 = vpop.f32.mrf.mxu0 }
 0x410   : > { %v1772_v28 = vpop.f32.mrf.mxu1  ;;  %5345 = vmatmul.bf16.vlgmr.msrb.gmra.mxu0 %v6271_v57  ;;  %v6139_v57 = vor.u32 %v7221_v31, %v6136_v53 }
 0x411   : > { %v1773_v33 = vadd.f32 %v1772_v28, %v1443_v34  ;;  %v8878_v40 = vpop.f32.mrf.mxu3  ;;  %v7411_v34 = vld [vmem:[%s9775_s4 + $0xa0] sm:$0xff] }
 0x412   : > { %v2582_v25 = vld [vmem:[#allocation2 + $0x290] sm:$0xf]  ;;  %v2583_v13 = vld [vmem:[#allocation2 + $0x294] sm:$0xf]  ;;  %9788 = vst [vmem:[#allocation13_spill] sm:$0xff] %v8878_v40  ;;  %4806 = vmatpush.bf16.msra.mxu2 %v7411_v34 }
 0x413   : > { %v3091_v22 = vld [vmem:[#allocation2 + $0x290] sm:$0xf]  ;;  %v1945_v61 = vmul.f32 %v8798_v21, %v1773_v33  ;;  %2614 = vst [vmem:[#allocation3 + $0x1b0] sm:$0xf] %v2582_v25  ;;  %v3092_v51 = vld [vmem:[#allocation2 + $0x294] sm:$0xf] }
 0x414   : > { %2615 = vst [vmem:[#allocation3 + $0x1d4] sm:$0xf] %v2583_v13  ;;  %v3042_v33 = vld [vmem:[#allocation2 + $0x218] sm:$0xf]  ;;  %v3043_v25 = vld [vmem:[#allocation2 + $0x21c] sm:$0xf]  ;;  %v6359_v13 = vor.u32 %v7275_v2, %v6356_v38 }
 0x415   : > { %v2077_v3 = vadd.f32 %v8819_v15, %v1945_v61  ;;  %3123 = vst [vmem:[#allocation3 + $0x68] sm:$0xf] %v3091_v22 }
 0x416   : > { %3124 = vst [vmem:[#allocation3 + $0x8c] sm:$0xf] %v3092_v51 }
 0x417   : > { %v2205_v26 = vmax.f32 %v2077_v3, 0.0  ;;  %3074 = vst [vmem:[#allocation3 + $0x2a4] sm:$0xf] %v3042_v33  ;;  %4915 = vmatmul.bf16.gmra.mxu3 %v6359_v13 }
 0x418   : > { %v1775_v44 = vpop.f32.mrf.mxu1  ;;  %3075 = vst [vmem:[#allocation3 + $0x2c8] sm:$0xf] %v3043_v25 }
 0x419   : > { %v7716_v28 = vpack.c.bf16 %v2205_v26, %v2204_v24  ;;  %v1776_v46 = vadd.f32 %v1775_v44, %v1446_v54  ;;  %v8885_v60 = vpop.f32.mrf.mxu3  ;;  %v1448_v26 = vpop.f32.mrf.mxu0 }
 0x41a   : > { %v6454_v22 = vld [vmem:[#allocation3 + $0x1b0] sm:$0xf] }
 0x41b   : > { %7912 = vst [vmem:[#allocation2 + $0x298] sm:$0xff] %v7716_v28   ;;  %1814 = vmatmul.bf16.gmra.mxu1 %v6139_v57  ;;  %v7305_v61 = vld [vmem:[#allocation3 + $0x1d0] sm:$0xf0]  ;;  %v1946_v24 = vmul.f32 %v8798_v21, %v1776_v46  ;;  %v6392_v28 = vld [vmem:[#allocation3 + $0x14c] sm:$0xf0] }
 0x41c   : > { %v6455_v51 = vor.u32 %v7305_v61, %v6454_v22  ;;  %v6306_v3 = vld [vmem:[#allocation3 + $0x68] sm:$0xf]  ;;  %v7223_v22 = vld [vmem:[%s8069_s21 + $0x3c4] sm:$0xf]  ;;  %v6144_v46 = vld [vmem:[%s8069_s21 + $0x3c8] sm:$0xf0] }
 0x41d   : > { %v7264_v40 = vld [vmem:[#allocation3 + $0x88] sm:$0xf0]  ;;  %v2078_v34 = vadd.f32 %v8819_v15, %v1946_v24 }
 0x41e   : > { %4663 = vmatmul.bf16.gmra.mxu2 %v6455_v51  ;;  %v6307_v23 = vor.u32 %v7264_v40, %v6306_v3  ;;  %v7284_v40 = vld [vmem:[#allocation3 + $0x12c] sm:$0xf]  ;;  %v6147_v3 = vor.u32 %v7223_v22, %v6144_v46 }
 0x41f   : > { %v6395_v61 = vor.u32 %v7284_v40, %v6392_v28 }
 0x420   : > { %v1777_v31 = vpop.f32.mrf.mxu1  ;;  %5350 = vmatmul.bf16.gmra.mxu0 %v6307_v23  ;;  %v2206_v23 = vmax.f32 %v2078_v34, 0.0 }
 0x421   : > { %v1778_v2 = vadd.f32 %v1777_v31, %v1448_v26  ;;  %v8891_v25 = vpop.f32.mrf.mxu3  ;;  %v3044_v26 = vld [vmem:[#allocation2 + $0x220] sm:$0xf]  ;;  %v3045_v31 = vld [vmem:[#allocation2 + $0x224] sm:$0xf] }
 0x422   : > { %v2584_v38 = vld [vmem:[#allocation2 + $0x298] sm:$0xf]  ;;  %v2585_v54 = vld [vmem:[#allocation2 + $0x29c] sm:$0xf]  ;;  %3076 = vst [vmem:[#allocation3 + $0x2ec] sm:$0xf] %v3044_v26 }
 0x423   : > { %v3093_v53 = vld [vmem:[#allocation2 + $0x298] sm:$0xf]  ;;  %v1947_v44 = vmul.f32 %v8798_v21, %v1778_v2  ;;  %2616 = vst [vmem:[#allocation3 + $0x1f8] sm:$0xf] %v2584_v38  ;;  %v3094_v57 = vld [vmem:[#allocation2 + $0x29c] sm:$0xf] }
 0x424   : > { %2617 = vst [vmem:[#allocation3 + $0x21c] sm:$0xf] %v2585_v54  ;;  %v6428_v26 = vld [vmem:[#allocation3 + $0x194] sm:$0xf0] }
 0x425   : > { %v2079_v33 = vadd.f32 %v8819_v15, %v1947_v44  ;;  %3125 = vst [vmem:[#allocation3 + $0xb0] sm:$0xf] %v3093_v53 }
 0x426   : > { %3126 = vst [vmem:[#allocation3 + $0xd4] sm:$0xf] %v3094_v57 }
 0x427   : > { %v2207_v13 = vmax.f32 %v2079_v33, 0.0  ;;  %4920 = vmatmul.bf16.gmra.mxu3 %v6395_v61  ;;  %3077 = vst [vmem:[#allocation3 + $0x310] sm:$0xf] %v3045_v31 }
 0x428   : > { %v1780_v51 = vpop.f32.mrf.mxu1 }
 0x429   : > { %v7721_v24 = vpack.c.bf16 %v2207_v13, %v2206_v23  ;;  %v1781_v2 = vadd.f32 %v1780_v51, %v8130_v0  ;;  %v8897_v28 = vpop.f32.mrf.mxu3  ;;  %v2586_v0 = vld [vmem:[#allocation2 + $0x2a8] sm:$0xf]  ;;  %v2587_v13 = vld [vmem:[#allocation2 + $0x2ac] sm:$0xf] }
 0x42a   : > { %v6490_v38 = vld [vmem:[#allocation3 + $0x1f8] sm:$0xf]  ;;  %2618 = vst [vmem:[#allocation3 + $0x240] sm:$0xf] %v2586_v0 }
 0x42b   : > { %7913 = vst [vmem:[#allocation2 + $0x2a0] sm:$0xff] %v7721_v24   ;;  %1819 = vmatmul.bf16.gmra.mxu1 %v6147_v3  ;;  %v7314_v54 = vld [vmem:[#allocation3 + $0x218] sm:$0xf0]  ;;  %v1948_v57 = vmul.f32 %v8798_v21, %v1781_v2  ;;  %v7293_v24 = vld [vmem:[#allocation3 + $0x174] sm:$0xf] }
 0x42c   : > { %v6491_v53 = vor.u32 %v7314_v54, %v6490_v38  ;;  %v6342_v44 = vld [vmem:[#allocation3 + $0xb0] sm:$0xf]  ;;  %2619 = vst [vmem:[#allocation3 + $0x264] sm:$0xf] %v2587_v13  ;;  %v7225_v38 = vld [vmem:[%s8069_s21 + $0x3d4] sm:$0xf]  ;;  %v6431_v0 = vor.u32 %v7293_v24, %v6428_v26 }
 0x42d   : > { %v7273_v34 = vld [vmem:[#allocation3 + $0xd0] sm:$0xf0]  ;;  %v2080_v22 = vadd.f32 %v8819_v15, %v1948_v57  ;;  %v6152_v54 = vld [vmem:[%s8069_s21 + $0x3d8] sm:$0xf0]  ;;  %v2781_v26 = vld [vmem:[#allocation2 + $0x140] sm:$0xf] }
 0x42e   : > { %4668 = vmatmul.bf16.gmra.mxu2 %v6491_v53  ;;  %v6343_v40 = vor.u32 %v7273_v34, %v6342_v44  ;;  %v7410_v53 = vld [vmem:[%s9775_s4 + $0x98] sm:$0xff]  ;;  %v6155_v34 = vor.u32 %v7225_v38, %v6152_v54  ;;  %v2782_v54 = vld [vmem:[#allocation2 + $0x144] sm:$0xf]  ;;  %2813 = vst [vmem:[#allocation3 + $0x24c] sm:$0xf] %v2781_v26 }
 0x42f   : > { %4807 = vmatpush.bf16.msra.mxu2 %v7410_v53  ;;  %2814 = vst [vmem:[#allocation3 + $0x270] sm:$0xf] %v2782_v54  ;;  %v3048_v26 = vld [vmem:[#allocation2 + $0x238] sm:$0xf] }
 0x430   : > { %v1782_v33 = vpop.f32.mrf.mxu1  ;;  %5355 = vmatmul.bf16.gmra.mxu0 %v6343_v40  ;;  %3080 = vst [vmem:[#allocation3 + $0x37c] sm:$0xf] %v3048_v26  ;;  %v6500_v26 = vld [vmem:[#allocation3 + $0x224] sm:$0xf0] }
 0x431   : > { %v1783_v23 = vadd.f32 %v1782_v33, %v8132_v1  ;;  %v2208_v1 = vmax.f32 %v2080_v22, 0.0  ;;  %v8903_v31 = vpop.f32.mrf.mxu3  ;;  %v6526_v40 = vld [vmem:[#allocation3 + $0x240] sm:$0xf]  ;;  %v3046_v33 = vld [vmem:[#allocation2 + $0x228] sm:$0xf] }
 0x432   : > { %v3095_v46 = vld [vmem:[#allocation2 + $0x2a0] sm:$0xf]  ;;  %v3096_v61 = vld [vmem:[#allocation2 + $0x2a4] sm:$0xf]  ;;  %3078 = vst [vmem:[#allocation3 + $0x334] sm:$0xf] %v3046_v33 }
 0x433   : > { %v1949_v51 = vmul.f32 %v8798_v21, %v1783_v23  ;;  %3127 = vst [vmem:[#allocation3 + $0xf8] sm:$0xf] %v3095_v46  ;;  %v3047_v23 = vld [vmem:[#allocation2 + $0x22c] sm:$0xf]  ;;  %v7323_v13 = vld [vmem:[#allocation3 + $0x260] sm:$0xf0] }
 0x434   : > { %3128 = vst [vmem:[#allocation3 + $0x11c] sm:$0xf] %v3096_v61  ;;  %v6527_v46 = vor.u32 %v7323_v13, %v6526_v40  ;;  %v7302_v40 = vld [vmem:[#allocation3 + $0x1bc] sm:$0xf]  ;;  %v6464_v33 = vld [vmem:[#allocation3 + $0x1dc] sm:$0xf0] }
 0x435   : > { %v2081_v3 = vadd.f32 %v8819_v15, %v1949_v51  ;;  %3079 = vst [vmem:[#allocation3 + $0x358] sm:$0xf] %v3047_v23  ;;  %v2709_v13 = vld [vmem:[#allocation2 + $0x28c] sm:$0xf] }
 0x436   : > { %2741 = vst [vmem:[#allocation3 + $0x14c] sm:$0xf] %v2709_v13 }
 0x437   : > { %v2209_v2 = vmax.f32 %v2081_v3, 0.0  ;;  %4925 = vmatmul.bf16.gmra.mxu3 %v6431_v0  ;;  %v2708_v0 = vld [vmem:[#allocation2 + $0x288] sm:$0xf] }
 0x438   : > { %v1785_v44 = vpop.f32.mrf.mxu1  ;;  %2740 = vst [vmem:[#allocation3 + $0x128] sm:$0xf] %v2708_v0 }
 0x439   : > { %v7726_v57 = vpack.c.bf16 %v2209_v2, %v2208_v1  ;;  %v1786_v22 = vadd.f32 %v1785_v44, %v8138_v8  ;;  %v8911_v38 = vpop.f32.mrf.mxu3 }
 0x43a   : > { %v6378_v61 = vld [vmem:[#allocation3 + $0xf8] sm:$0xf] }
 0x43b   : > { %7914 = vst [vmem:[#allocation2 + $0x2b0] sm:$0xff] %v7726_v57   ;;  %1824 = vmatmul.bf16.gmra.mxu1 %v6155_v34  ;;  %v7282_v51 = vld [vmem:[#allocation3 + $0x118] sm:$0xf0]  ;;  %v1950_v1 = vmul.f32 %v8798_v21, %v1786_v22 }
 0x43c   : > { %v6379_v3 = vor.u32 %v7282_v51, %v6378_v61  ;;  %v7227_v51 = vld [vmem:[%s8069_s21 + $0x3e4] sm:$0xf] }
 0x43d   : > { %v2082_v44 = vadd.f32 %v8819_v15, %v1950_v1 }
 0x43e   : > { %4673 = vmatmul.bf16.gmra.mxu2 %v6527_v46 }
 0x43f   : > { %v2210_v46 = vmax.f32 %v2082_v44, 0.0 }
 0x440   : > { %v1787_v2 = vpop.f32.mrf.mxu1  ;;  %5360 = vmatmul.bf16.gmra.mxu0 %v6379_v3  ;;  %v6160_v3 = vld [vmem:[%s8069_s21 + $0x3e8] sm:$0xf0] }
 0x441   : > { %v1788_v24 = vadd.f32 %v1787_v2, %v8140_v10  ;;  %v8918_v22 = vpop.f32.mrf.mxu3  ;;  %v6163_v2 = vor.u32 %v7227_v51, %v6160_v3 }
 0x442   : > { %v2588_v53 = vld [vmem:[#allocation2 + $0x2b0] sm:$0xf]  ;;  %v2589_v8 = vld [vmem:[#allocation2 + $0x2b4] sm:$0xf] }
 0x443   : > { %v1951_v34 = vmul.f32 %v8798_v21, %v1788_v24  ;;  %2620 = vst [vmem:[#allocation3 + $0x288] sm:$0xf] %v2588_v53  ;;  %v3097_v57 = vld [vmem:[#allocation2 + $0x2b0] sm:$0xf]  ;;  %v3098_v10 = vld [vmem:[#allocation2 + $0x2b4] sm:$0xf]  ;;  %v6467_v53 = vor.u32 %v7302_v40, %v6464_v33 }
 0x444   : > { %2621 = vst [vmem:[#allocation3 + $0x2ac] sm:$0xf] %v2589_v8 }
 0x445   : > { %v2083_v23 = vadd.f32 %v8819_v15, %v1951_v34  ;;  %3129 = vst [vmem:[#allocation3 + $0x140] sm:$0xf] %v3097_v57  ;;  %v3049_v34 = vld [vmem:[#allocation2 + $0x23c] sm:$0xf] }
 0x446   : > { %3130 = vst [vmem:[#allocation3 + $0x164] sm:$0xf] %v3098_v10 }
 0x447   : > { %v2211_v61 = vmax.f32 %v2083_v23, 0.0  ;;  %4930 = vmatmul.bf16.gmra.mxu3 %v6467_v53  ;;  %3081 = vst [vmem:[#allocation3 + $0x3a0] sm:$0xf] %v3049_v34 }
 0x448   : > { %v1790_v1 = vpop.f32.mrf.mxu1 }
 0x449   : > { %v7731_v24 = vpack.c.bf16 %v2211_v61, %v2210_v46  ;;  %v1791_v8 = vadd.f32 %v1790_v1, %v8146_v18  ;;  %v8924_v10 = vpop.f32.mrf.mxu3 }
 0x44a   : > { %v6562_v54 = vld [vmem:[#allocation3 + $0x288] sm:$0xf] }
 0x44b   : > { %7915 = vst [vmem:[#allocation2 + $0x2b8] sm:$0xff] %v7731_v24   ;;  %1829 = vmatmul.bf16.gmra.mxu1 %v6163_v2  ;;  %v7332_v57 = vld [vmem:[#allocation3 + $0x2a8] sm:$0xf0]  ;;  %v1952_v51 = vmul.f32 %v8798_v21, %v1791_v8  ;;  %v7311_v24 = vld [vmem:[#allocation3 + $0x204] sm:$0xf] }
 0x44c   : > { %v6563_v44 = vor.u32 %v7332_v57, %v6562_v54  ;;  %v6414_v23 = vld [vmem:[#allocation3 + $0x140] sm:$0xf]  ;;  %v2710_v8 = vld [vmem:[#allocation2 + $0x290] sm:$0xf]  ;;  %v2711_v54 = vld [vmem:[#allocation2 + $0x294] sm:$0xf] }
 0x44d   : > { %v7291_v0 = vld [vmem:[#allocation3 + $0x160] sm:$0xf0]  ;;  %v2084_v13 = vadd.f32 %v8819_v15, %v1952_v51  ;;  %v7409_v51 = vld [vmem:[%s9775_s4 + $0x90] sm:$0xff]  ;;  %2742 = vst [vmem:[#allocation3 + $0x170] sm:$0xf] %v2710_v8 }
 0x44e   : > { %4678 = vmatmul.bf16.gmra.mxu2 %v6563_v44  ;;  %v6415_v40 = vor.u32 %v7291_v0, %v6414_v23  ;;  %v7229_v44 = vld [vmem:[%s8069_s21 + $0x3f4] sm:$0xf]  ;;  %v6168_v23 = vld [vmem:[%s8069_s21 + $0x3f8] sm:$0xf0]  ;;  %2743 = vst [vmem:[#allocation3 + $0x194] sm:$0xf] %v2711_v54 }
 0x44f   : > { %4808 = vmatpush.bf16.msra.mxu2 %v7409_v51  ;;  %v2712_v51 = vld [vmem:[#allocation2 + $0x298] sm:$0xf] }
 0x450   : > { %v1792_v33 = vpop.f32.mrf.mxu1  ;;  %5365 = vmatmul.bf16.gmra.mxu0 %v6415_v40  ;;  %v6171_v40 = vor.u32 %v7229_v44, %v6168_v23  ;;  %2744 = vst [vmem:[#allocation3 + $0x1b8] sm:$0xf] %v2712_v51 }
 0x451   : > { %v1793_v18 = vadd.f32 %v1792_v33, %v8148_v20  ;;  %v2212_v20 = vmax.f32 %v2084_v13, 0.0  ;;  %v8930_v34 = vpop.f32.mrf.mxu3  ;;  %v6503_v13 = vor.u32 %v7311_v24, %v6500_v26 }
 0x452   : > { %v2590_v46 = vld [vmem:[#allocation2 + $0x2b8] sm:$0xf]  ;;  %v2591_v61 = vld [vmem:[#allocation2 + $0x2bc] sm:$0xf]  ;;  %9789 = vst [vmem:[#allocation14_spill] sm:$0xff] %v8930_v34 }
 0x453   : > { %v3099_v3 = vld [vmem:[#allocation2 + $0x2b8] sm:$0xf]  ;;  %v1953_v1 = vmul.f32 %v8798_v21, %v1793_v18  ;;  %2622 = vst [vmem:[#allocation3 + $0x2d0] sm:$0xf] %v2590_v46  ;;  %v3100_v2 = vld [vmem:[#allocation2 + $0x2bc] sm:$0xf] }
 0x454   : > { %2623 = vst [vmem:[#allocation3 + $0x2f4] sm:$0xf] %v2591_v61  ;;  %v3050_v18 = vld [vmem:[#allocation2 + $0x240] sm:$0xf]  ;;  %v3051_v46 = vld [vmem:[#allocation2 + $0x244] sm:$0xf] }
 0x455   : > { %v2085_v53 = vadd.f32 %v8819_v15, %v1953_v1  ;;  %3131 = vst [vmem:[#allocation3 + $0x188] sm:$0xf] %v3099_v3 }
 0x456   : > { %3132 = vst [vmem:[#allocation3 + $0x1ac] sm:$0xf] %v3100_v2 }
 0x457   : > { %v2213_v57 = vmax.f32 %v2085_v53, 0.0  ;;  %3082 = vst [vmem:[#allocation3 + $0x3c4] sm:$0xf] %v3050_v18  ;;  %4935 = vmatmul.bf16.gmra.mxu3 %v6503_v13 }
 0x458   : > { %v1795_v0 = vpop.f32.mrf.mxu1  ;;  %3083 = vst [vmem:[#allocation3 + $0x3e8] sm:$0xf] %v3051_v46 }
 0x459   : > { %v7736_v33 = vpack.c.bf16 %v2213_v57, %v2212_v20  ;;  %v1796_v3 = vadd.f32 %v1795_v0, %v8154_v27  ;;  %v8938_v20 = vpop.f32.mrf.mxu3  ;;  %v2713_v0 = vld [vmem:[#allocation2 + $0x29c] sm:$0xf] }
 0x45a   : > { %v6598_v61 = vld [vmem:[#allocation3 + $0x2d0] sm:$0xf]  ;;  %2745 = vst [vmem:[#allocation3 + $0x1dc] sm:$0xf] %v2713_v0 }
 0x45b   : > { %7916 = vst [vmem:[#allocation2 + $0x2c0] sm:$0xff] %v7736_v33   ;;  %1834 = vmatmul.bf16.gmra.mxu1 %v6171_v40  ;;  %v7341_v1 = vld [vmem:[#allocation3 + $0x2f0] sm:$0xf0]  ;;  %v1954_v54 = vmul.f32 %v8798_v21, %v1796_v3  ;;  %v7320_v40 = vld [vmem:[#allocation3 + $0x24c] sm:$0xf] }
 0x45c   : > { %v6599_v2 = vor.u32 %v7341_v1, %v6598_v61  ;;  %v6450_v53 = vld [vmem:[#allocation3 + $0x188] sm:$0xf] }
 0x45d   : > { %v7300_v34 = vld [vmem:[#allocation3 + $0x1a8] sm:$0xf0]  ;;  %v2086_v27 = vadd.f32 %v8819_v15, %v1954_v54  ;;  %v3052_v1 = vld [vmem:[#allocation2 + $0x248] sm:$0xf] }
 0x45e   : > { %4683 = vmatmul.bf16.gmra.mxu2 %v6599_v2  ;;  %v6451_v8 = vor.u32 %v7300_v34, %v6450_v53  ;;  %v6536_v34 = vld [vmem:[#allocation3 + $0x26c] sm:$0xf0]  ;;  %3084 = vst [vmem:[#allocation3 + $0x40c] sm:$0xf] %v3052_v1 }
 0x45f   : > { %v6539_v13 = vor.u32 %v7320_v40, %v6536_v34 }
 0x460   : > { %v1797_v57 = vpop.f32.mrf.mxu1  ;;  %5370 = vmatmul.bf16.gmra.mxu0 %v6451_v8 }
 0x461   : > { %v1798_v24 = vadd.f32 %v1797_v57, %v8156_v29  ;;  %v8945_v18 = vpop.f32.mrf.mxu3  ;;  %v2214_v29 = vmax.f32 %v2086_v27, 0.0 }
 0x462   : > { %v2592_v26 = vld [vmem:[#allocation2 + $0x2c0] sm:$0xf]  ;;  %v2593_v44 = vld [vmem:[#allocation2 + $0x2c4] sm:$0xf] }
 0x463   : > { %v1955_v23 = vmul.f32 %v8798_v21, %v1798_v24  ;;  %2624 = vst [vmem:[#allocation3 + $0x318] sm:$0xf] %v2592_v26  ;;  %v3101_v57 = vld [vmem:[#allocation2 + $0x2c0] sm:$0xf]  ;;  %v3102_v24 = vld [vmem:[#allocation2 + $0x2c4] sm:$0xf] }
 0x464   : > { %2625 = vst [vmem:[#allocation3 + $0x33c] sm:$0xf] %v2593_v44  ;;  %v3053_v26 = vld [vmem:[#allocation2 + $0x24c] sm:$0xf] }
 0x465   : > { %v2087_v33 = vadd.f32 %v8819_v15, %v1955_v23  ;;  %3133 = vst [vmem:[#allocation3 + $0x1d0] sm:$0xf] %v3101_v57  ;;  %v3054_v57 = vld [vmem:[#allocation2 + $0x250] sm:$0xf] }
 0x466   : > { %3134 = vst [vmem:[#allocation3 + $0x1f4] sm:$0xf] %v3102_v24  ;;  %v3055_v24 = vld [vmem:[#allocation2 + $0x254] sm:$0xf] }
 0x467   : > { %v2215_v46 = vmax.f32 %v2087_v33, 0.0  ;;  %4940 = vmatmul.bf16.gmra.mxu3 %v6539_v13  ;;  %3085 = vst [vmem:[#allocation3 + $0x430] sm:$0xf] %v3053_v26 }
 0x468   : > { %v1800_v61 = vpop.f32.mrf.mxu1  ;;  %3086 = vst [vmem:[#allocation3 + $0x454] sm:$0xf] %v3054_v57 }
 0x469   : > { %v7741_v3 = vpack.c.bf16 %v2215_v46, %v2214_v29  ;;  %v1801_v2 = vadd.f32 %v1800_v61, %v8616_v37  ;;  %v8949_v27 = vpop.f32.mrf.mxu3  ;;  %v7329_v29 = vld [vmem:[#allocation3 + $0x294] sm:$0xf]  ;;  %v6572_v46 = vld [vmem:[#allocation3 + $0x2b4] sm:$0xf0]  ;;  %3087 = vst [vmem:[#allocation3 + $0x478] sm:$0xf] %v3055_v24 }
 0x46a   : > { %v6634_v53 = vld [vmem:[#allocation3 + $0x318] sm:$0xf]  ;;  %v6575_v26 = vor.u32 %v7329_v29, %v6572_v46 }
 0x46b   : > { %7917 = vst [vmem:[#allocation2 + $0x2c8] sm:$0xff] %v7741_v3   ;;  %v7350_v8 = vld [vmem:[#allocation3 + $0x338] sm:$0xf0]  ;;  %v1956_v44 = vmul.f32 %v8798_v21, %v1801_v2  ;;  %v2594_v2 = vld [vmem:[#allocation2 + $0x2d0] sm:$0xf] }
 0x46c   : > { %v6635_v54 = vor.u32 %v7350_v8, %v6634_v53  ;;  %v6486_v40 = vld [vmem:[#allocation3 + $0x1d0] sm:$0xf]  ;;  %v2595_v53 = vld [vmem:[#allocation2 + $0x2d4] sm:$0xf]  ;;  %2626 = vst [vmem:[#allocation3 + $0x360] sm:$0xf] %v2594_v2 }
 0x46d   : > { %v2088_v51 = vadd.f32 %v8819_v15, %v1956_v44  ;;  %v7309_v34 = vld [vmem:[#allocation3 + $0x1f0] sm:$0xf0]  ;;  %2627 = vst [vmem:[#allocation3 + $0x384] sm:$0xf] %v2595_v53  ;;  %v7338_v53 = vld [vmem:[#allocation3 + $0x2dc] sm:$0xf] }
 0x46e   : > { %4688 = vmatmul.bf16.gmra.mxu2 %v6635_v54  ;;  %v6487_v61 = vor.u32 %v7309_v34, %v6486_v40 }
 0x46f   : > { %v2216_v13 = vmax.f32 %v2088_v51, 0.0 }
 0x470   : > { %v1802_v23 = vpop.f32.mrf.mxu1  ;;  %5375 = vmatmul.bf16.gmra.mxu0 %v6487_v61 }
 0x471   : > { %v1803_v37 = vadd.f32 %v1802_v23, %v8621_v58  ;;  %v8955_v3 = vpop.f32.mrf.mxu3  ;;  %v7408_v58 = vld [vmem:[%s9775_s4 + $0x88] sm:$0xff] }
 0x472   : > { %9790 = vst [vmem:[#allocation15_spill] sm:$0xff] %v8955_v3  ;;  %4809 = vmatpush.bf16.msra.mxu2 %v7408_v58  ;;  %v3103_v23 = vld [vmem:[#allocation2 + $0x2c8] sm:$0xf]  ;;  %v6608_v58 = vld [vmem:[#allocation3 + $0x2fc] sm:$0xf0] }
 0x473   : > { %v1957_v0 = vmul.f32 %v8798_v21, %v1803_v37  ;;  %v3104_v37 = vld [vmem:[#allocation2 + $0x2cc] sm:$0xf]  ;;  %3135 = vst [vmem:[#allocation3 + $0x218] sm:$0xf] %v3103_v23  ;;  %v6670_v40 = vld [vmem:[#allocation3 + $0x360] sm:$0xf] }
 0x474   : > { %3136 = vst [vmem:[#allocation3 + $0x23c] sm:$0xf] %v3104_v37  ;;  %v7359_v34 = vld [vmem:[#allocation3 + $0x380] sm:$0xf0]  ;;  %v2789_v23 = vld [vmem:[#allocation2 + $0x168] sm:$0xf]  ;;  %v8970_v37 = vpop.f32.mrf.mxu2 }
 0x475   : > { %v2089_v33 = vadd.f32 %v8819_v15, %v1957_v0  ;;  %2821 = vst [vmem:[#allocation3 + $0x36c] sm:$0xf] %v2789_v23  ;;  %v7312_v3 = vld [vmem:[#allocation3 + $0x20c] sm:$0xf] }
 0x477   : > { %v2217_v1 = vmax.f32 %v2089_v33, 0.0  ;;  %4945 = vmatmul.bf16.gmra.mxu3 %v6575_v26 }
 0x478   : > { %v1805_v8 = vpop.f32.mrf.mxu1 }
 0x479   : > { %v7746_v54 = vpack.c.bf16 %v2217_v1, %v2216_v13  ;;  %v1806_v44 = vadd.f32 %v1805_v8, %v8632_v12  ;;  %v8961_v51 = vpop.f32.mrf.mxu3  ;;  %v6671_v13 = vor.u32 %v7359_v34, %v6670_v40  ;;  %v2790_v40 = vld [vmem:[#allocation2 + $0x16c] sm:$0xf]  ;;  %v6611_v34 = vor.u32 %v7338_v53, %v6608_v58 }
 0x47a   : > { %9791 = vst [vmem:[#allocation16_spill] sm:$0xff] %v8961_v51  ;;  %v6522_v61 = vld [vmem:[#allocation3 + $0x218] sm:$0xf]  ;;  %v6472_v51 = vld [vmem:[#allocation3 + $0x1e4] sm:$0xf0] }
 0x47b   : > { %7918 = vst [vmem:[#allocation2 + $0x2d8] sm:$0xff] %v7746_v54   ;;  %v1958_v0 = vmul.f32 %v8798_v21, %v1806_v44  ;;  %v7318_v1 = vld [vmem:[#allocation3 + $0x238] sm:$0xf0] }
 0x47c   : > { %v6523_v8 = vor.u32 %v7318_v1, %v6522_v61  ;;  %2822 = vst [vmem:[#allocation3 + $0x390] sm:$0xf] %v2790_v40  ;;  %v6644_v40 = vld [vmem:[#allocation3 + $0x344] sm:$0xf0] }
 0x47d   : > { %v2090_v46 = vadd.f32 %v8819_v15, %v1958_v0 }
 0x47e   : > { %4693 = vmatmul.bf16.gmra.mxu2 %v6671_v13  ;;  %v2961_v13 = vld [vmem:[#allocation2 + $0x288] sm:$0xf] }
 0x47f   : > { %v2218_v57 = vmax.f32 %v2090_v46, 0.0  ;;  %2993 = vst [vmem:[#allocation3 + $0x60] sm:$0xf] %v2961_v13 }
 0x480   : > { %v1807_v33 = vpop.f32.mrf.mxu1  ;;  %5380 = vmatmul.bf16.gmra.mxu0 %v6523_v8 }
 0x481   : > { %v1808_v29 = vadd.f32 %v1807_v33, %v8637_v39  ;;  %v8968_v54 = vpop.f32.mrf.mxu3 }
 0x482   : > { %9792 = vst [vmem:[#allocation17_spill] sm:$0xff] %v8968_v54  ;;  %v2596_v26 = vld [vmem:[#allocation2 + $0x2d8] sm:$0xf]  ;;  %v2597_v44 = vld [vmem:[#allocation2 + $0x2dc] sm:$0xf] }
 0x483   : > { %v1959_v12 = vmul.f32 %v8798_v21, %v1808_v29  ;;  %2628 = vst [vmem:[#allocation3 + $0x3a8] sm:$0xf] %v2596_v26  ;;  %v3105_v29 = vld [vmem:[#allocation2 + $0x2d8] sm:$0xf]  ;;  %v3106_v46 = vld [vmem:[#allocation2 + $0x2dc] sm:$0xf] }
 0x484   : > { %2629 = vst [vmem:[#allocation3 + $0x3cc] sm:$0xf] %v2597_v44  ;;  %v7303_v54 = vld [vmem:[#allocation3 + $0x1c4] sm:$0xf] }
 0x485   : > { %v2091_v2 = vadd.f32 %v8819_v15, %v1959_v12  ;;  %3137 = vst [vmem:[#allocation3 + $0x260] sm:$0xf] %v3105_v29  ;;  %v2962_v12 = vld [vmem:[#allocation2 + $0x28c] sm:$0xf] }
 0x486   : > { %3138 = vst [vmem:[#allocation3 + $0x284] sm:$0xf] %v3106_v46 }
 0x487   : > { %v2219_v24 = vmax.f32 %v2091_v2, 0.0  ;;  %4950 = vmatmul.bf16.gmra.mxu3 %v6611_v34  ;;  %2994 = vst [vmem:[#allocation3 + $0x84] sm:$0xf] %v2962_v12  ;;  %v7407_v12 = vld [vmem:[%s9775_s4 + $0x80] sm:$0xff] }
 0x488   : > { %v1810_v39 = vpop.f32.mrf.mxu1  ;;  %4810 = vmatpush.bf16.msra.mxu2 %v7407_v12 }
 0x489   : > { %v7751_v0 = vpack.c.bf16 %v2219_v24, %v2218_v57  ;;  %v1811_v33 = vadd.f32 %v1810_v39, %v8649_v4 }
 0x48a   : > { %v8974_v1 = vpop.f32.mrf.mxu3  ;;  %v6706_v2 = vld [vmem:[#allocation3 + $0x3a8] sm:$0xf] }
 0x48b   : > { %7919 = vst [vmem:[#allocation2 + $0x2e0] sm:$0xff] %v7751_v0   ;;  %v1960_v61 = vmul.f32 %v8798_v21, %v1811_v33  ;;  %v7368_v8 = vld [vmem:[#allocation3 + $0x3c8] sm:$0xf0]  ;;  %v7347_v0 = vld [vmem:[#allocation3 + $0x324] sm:$0xf] }
 0x48c   : > { %9793 = vst [vmem:[#allocation18_spill] sm:$0xff] %v8974_v1  ;;  %v6707_v4 = vor.u32 %v7368_v8, %v6706_v2  ;;  %v6558_v44 = vld [vmem:[#allocation3 + $0x260] sm:$0xf]  ;;  %v2964_v8 = vld [vmem:[#allocation2 + $0x294] sm:$0xf] }
 0x48d   : > { %v2092_v24 = vadd.f32 %v8819_v15, %v1960_v61  ;;  %v7327_v39 = vld [vmem:[#allocation3 + $0x280] sm:$0xf0]  ;;  %2996 = vst [vmem:[#allocation3 + $0xcc] sm:$0xf] %v2964_v8  ;;  %v7294_v1 = vld [vmem:[#allocation3 + $0x17c] sm:$0xf] }
 0x48e   : > { %4698 = vmatmul.bf16.gmra.mxu2 %v6707_v4  ;;  %v6559_v33 = vor.u32 %v7327_v39, %v6558_v44  ;;  %v8995_v44 = vld [vmem:[%s9773_s2] ss:$0 sm:$0xff] }
 0x48f   : > { %v2220_v34 = vmax.f32 %v2092_v24, 0.0 }
 0x490   : > { %v1812_v53 = vpop.f32.mrf.mxu1  ;;  %5385 = vmatmul.bf16.gmra.mxu0 %v6559_v33 }
 0x491   : > { %v1813_v58 = vadd.f32 %v1812_v53, %v8658_v59  ;;  %v8977_v57 = vpop.f32.mrf.mxu2  ;;  %v6647_v53 = vor.u32 %v7347_v0, %v6644_v40 }
 0x492   : > { %v8982_v13 = vpop.f32.mrf.mxu3  ;;  %v2598_v46 = vld [vmem:[#allocation2 + $0x2e0] sm:$0xf]  ;;  %v2599_v59 = vld [vmem:[#allocation2 + $0x2e4] sm:$0xf] }
 0x493   : > { %v1961_v26 = vmul.f32 %v8798_v21, %v1813_v58  ;;  %9794 = vst [vmem:[#allocation19_spill] sm:$0xff] %v8982_v13  ;;  %v3107_v58 = vld [vmem:[#allocation2 + $0x2e0] sm:$0xf]  ;;  %v3108_v24 = vld [vmem:[#allocation2 + $0x2e4] sm:$0xf] }
 0x494   : > { %2630 = vst [vmem:[#allocation3 + $0x3f0] sm:$0xf] %v2598_v46 }
 0x495   : > { %v2093_v23 = vadd.f32 %v8819_v15, %v1961_v26  ;;  %2631 = vst [vmem:[#allocation3 + $0x414] sm:$0xf] %v2599_v59  ;;  %v2963_v15 = vld [vmem:[#allocation2 + $0x290] sm:$0xf] }
 0x496   : > { %2995 = vst [vmem:[#allocation3 + $0xa8] sm:$0xf] %v2963_v15 }
 0x497   : > { %v2221_v29 = vmax.f32 %v2093_v23, 0.0  ;;  %4955 = vmatmul.bf16.gmra.mxu3 %v6647_v53  ;;  %3139 = vst [vmem:[#allocation3 + $0x2a8] sm:$0xf] %v3107_v58 }
 0x498   : > { %v1815_v61 = vpop.f32.mrf.mxu1  ;;  %3140 = vst [vmem:[#allocation3 + $0x2cc] sm:$0xf] %v3108_v24 }
 0x499   : > { %v7756_v21 = vpack.c.bf16 %v2221_v29, %v2220_v34  ;;  %v8987_v2 = vpop.f32.mrf.mxu2  ;;  %v1816_v4 = vadd.f32 %v1815_v61, %v8665_v50  ;;  %v9004_v29 = vld [vmem:[%s9774_s3] ss:$0 sm:$0xff]  ;;  %v7356_v61 = vld [vmem:[#allocation3 + $0x36c] sm:$0xf] }
 0x49a   : > { %v8990_v26 = vpop.f32.mrf.mxu3 }
 0x49b   : > { %7920 = vst [vmem:[#allocation2 + $0x2e8] sm:$0xff] %v7756_v21   ;;  %v1962_v39 = vmul.f32 %v8995_v44, %v1816_v4  ;;  %v6742_v23 = vld [vmem:[#allocation3 + $0x3f0] sm:$0xf] }
 0x49c   : > { %9795 = vst [vmem:[#allocation20_spill] sm:$0xff] %v8990_v26  ;;  %v7377_v0 = vld [vmem:[#allocation3 + $0x410] sm:$0xf0]  ;;  %v6680_v21 = vld [vmem:[#allocation3 + $0x38c] sm:$0xf0] }
 0x49d   : > { %v6743_v34 = vor.u32 %v7377_v0, %v6742_v23  ;;  %v2094_v46 = vadd.f32 %v9004_v29, %v1962_v39  ;;  %v6683_v0 = vor.u32 %v7356_v61, %v6680_v21  ;;  %v2966_v61 = vld [vmem:[#allocation2 + $0x29c] sm:$0xf] }
 0x49e   : > { %v6594_v12 = vld [vmem:[#allocation3 + $0x2a8] sm:$0xf]  ;;  %2998 = vst [vmem:[#allocation3 + $0x114] sm:$0xf] %v2966_v61 }
 0x49f   : > { %4703 = vmatmul.bf16.gmra.mxu2 %v6743_v34  ;;  %v7336_v15 = vld [vmem:[#allocation3 + $0x2c8] sm:$0xf0]  ;;  %v2222_v4 = vmax.f32 %v2094_v46, 0.0  ;;  %v7438_v46 = vld [vmem:[%s9775_s4 + $0x178] sm:$0xff] }
 0x4a0   : > { %v1817_v40 = vpop.f32.mrf.mxu1  ;;  %v6595_v53 = vor.u32 %v7336_v15, %v6594_v12  ;;  %5070 = vmatpush.bf16.msrb.mxu3 %v7438_v46  ;;  %v6716_v46 = vld [vmem:[#allocation3 + $0x3d4] sm:$0xf0] }
 0x4a1   : > { %v1818_v50 = vadd.f32 %v1817_v40, %v8675_v5  ;;  %v8999_v33 = vpop.f32.mrf.mxu2 }
 0x4a2   : > { %v9009_v5 = vpop.f32.mrf.mxu3  ;;  %v2600_v24 = vld [vmem:[#allocation2 + $0x2e8] sm:$0xf]  ;;  %v2601_v23 = vld [vmem:[#allocation2 + $0x2ec] sm:$0xf]  ;;  %5390 = vmatmul.bf16.gmra.mxu0 %v6595_v53 }
 0x4a3   : > { %v1963_v59 = vmul.f32 %v8995_v44, %v1818_v50  ;;  %9796 = vst [vmem:[#allocation21_spill] sm:$0xff] %v9009_v5  ;;  %v2965_v50 = vld [vmem:[#allocation2 + $0x298] sm:$0xf]  ;;  %v3110_v12 = vld [vmem:[#allocation2 + $0x2ec] sm:$0xf] }
 0x4a4   : > { %2632 = vst [vmem:[#allocation3 + $0x438] sm:$0xf] %v2600_v24  ;;  %v7285_v5 = vld [vmem:[#allocation3 + $0x134] sm:$0xf] }
 0x4a5   : > { %v2095_v8 = vadd.f32 %v9004_v29, %v1963_v59  ;;  %2633 = vst [vmem:[#allocation3 + $0x45c] sm:$0xf] %v2601_v23  ;;  %v3109_v59 = vld [vmem:[#allocation2 + $0x2e8] sm:$0xf] }
 0x4a6   : > { %2997 = vst [vmem:[#allocation3 + $0xf0] sm:$0xf] %v2965_v50 }
 0x4a7   : > { %v2223_v58 = vmax.f32 %v2095_v8, 0.0  ;;  %4960 = vmatmul.bf16.gmra.mxu3 %v6683_v0  ;;  %3141 = vst [vmem:[#allocation3 + $0x2f0] sm:$0xf] %v3109_v59 }
 0x4a8   : > { %v1820_v40 = vpop.f32.mrf.mxu1  ;;  %3142 = vst [vmem:[#allocation3 + $0x314] sm:$0xf] %v3110_v12  ;;  %v7365_v12 = vld [vmem:[#allocation3 + $0x3b4] sm:$0xf] }
 0x4a9   : > { %v7761_v39 = vpack.c.bf16 %v2223_v58, %v2222_v4  ;;  %v9011_v34 = vpop.f32.mrf.mxu2  ;;  %v1821_v26 = vadd.f32 %v1820_v40, %v8628_v6  ;;  %v7437_v6 = vld [vmem:[%s9775_s4 + $0x170] sm:$0xff] }
 0x4aa   : > { %v9018_v15 = vpop.f32.mrf.mxu3  ;;  %5071 = vmatpush.bf16.msrb.mxu3 %v7437_v6  ;;  %v7435_v6 = vld [vmem:[%s9775_s4 + $0x160] sm:$0xff] }
 0x4ab   : > { %7921 = vst [vmem:[#allocation2 + $0x2f0] sm:$0xff] %v7761_v39   ;;  %v1964_v21 = vmul.f32 %v8995_v44, %v1821_v26  ;;  %v6778_v8 = vld [vmem:[#allocation3 + $0x438] sm:$0xf]  ;;  %v7436_v26 = vld [vmem:[%s9775_s4 + $0x168] sm:$0xff] }
 0x4ac   : > { %9797 = vst [vmem:[#allocation22_spill] sm:$0xff] %v9018_v15  ;;  %v7386_v53 = vld [vmem:[#allocation3 + $0x458] sm:$0xf0] }
 0x4ad   : > { %v6779_v58 = vor.u32 %v7386_v53, %v6778_v8  ;;  %v2096_v0 = vadd.f32 %v9004_v29, %v1964_v21  ;;  %v2700_v53 = vld [vmem:[#allocation2 + $0x260] sm:$0xf] }
 0x4ae   : > { %v6630_v39 = vld [vmem:[#allocation3 + $0x2f0] sm:$0xf]  ;;  %5072 = vmatpush.bf16.msrb.mxu3 %v7436_v26  ;;  %2732 = vst [vmem:[#allocation3 + $0x8] sm:$0xf] %v2700_v53 }
 0x4af   : > { %4708 = vmatmul.bf16.gmra.mxu2 %v6779_v58  ;;  %v7345_v50 = vld [vmem:[#allocation3 + $0x310] sm:$0xf0]  ;;  %v2224_v61 = vmax.f32 %v2096_v0, 0.0  ;;  %v6719_v0 = vor.u32 %v7365_v12, %v6716_v46 }
 0x4b0   : > { %v1822_v4 = vpop.f32.mrf.mxu1 }
 0x4b1   : > { %v1823_v24 = vadd.f32 %v1822_v4, %v8635_v32  ;;  %v9024_v23 = vpop.f32.mrf.mxu2  ;;  %v6631_v32 = vor.u32 %v7345_v50, %v6630_v39  ;;  %v2701_v4 = vld [vmem:[#allocation2 + $0x264] sm:$0xf]  ;;  %v7430_v39 = vld [vmem:[%s9775_s4 + $0x138] sm:$0xff] }
 0x4b2   : > { %v9032_v8 = vpop.f32.mrf.mxu3  ;;  %2733 = vst [vmem:[#allocation3 + $0x2c] sm:$0xf] %v2701_v4  ;;  %5073 = vmatpush.bf16.msrb.mxu3 %v7435_v6  ;;  %v3111_v50 = vld [vmem:[#allocation2 + $0x2f0] sm:$0xf]  ;;  %4981 = vmatpush.bf16.msrb.mxu2 %v7430_v39  ;;  %v7432_v39 = vld [vmem:[%s9775_s4 + $0x148] sm:$0xff] }
 0x4b3   : > { %v1965_v40 = vmul.f32 %v8995_v44, %v1823_v24  ;;  %9798 = vst [vmem:[#allocation23_spill] sm:$0xff] %v9032_v8  ;;  %5395 = vmatmul.bf16.gmra.mxu0 %v6631_v32  ;;  %v2715_v32 = vld [vmem:[#allocation2 + $0x2a4] sm:$0xf] }
 0x4b4   : > { %3143 = vst [vmem:[#allocation3 + $0x338] sm:$0xf] %v3111_v50 }
 0x4b5   : > { %v2097_v59 = vadd.f32 %v9004_v29, %v1965_v40  ;;  %v2714_v40 = vld [vmem:[#allocation2 + $0x2a0] sm:$0xf]  ;;  %v6246_v46 = vld [vmem:[#allocation3 + $0x8] sm:$0xf]  ;;  %2747 = vst [vmem:[#allocation3 + $0x224] sm:$0xf] %v2715_v32 }
 0x4b6   : > { %2746 = vst [vmem:[#allocation3 + $0x200] sm:$0xf] %v2714_v40  ;;  %v9055_v40 = vpop.f32.mrf.mxu0  ;;  %v7374_v32 = vld [vmem:[#allocation3 + $0x3fc] sm:$0xf] }
 0x4b7   : > { %v2225_v21 = vmax.f32 %v2097_v59, 0.0  ;;  %4965 = vmatmul.bf16.gmra.mxu3 %v6719_v0  ;;  %v3112_v59 = vld [vmem:[#allocation2 + $0x2f4] sm:$0xf]  ;;  %9800 = vst [vmem:[#allocation25_spill] sm:$0xff] %v9055_v40 }
 0x4b8   : > { %v1825_v58 = vpop.f32.mrf.mxu1  ;;  %3144 = vst [vmem:[#allocation3 + $0x35c] sm:$0xf] %v3112_v59 }
 0x4b9   : > { %v7766_v24 = vpack.c.bf16 %v2225_v21, %v2224_v61  ;;  %v9037_v15 = vpop.f32.mrf.mxu2  ;;  %v1826_v26 = vadd.f32 %v1825_v58, %v8646_v47  ;;  %v7434_v61 = vld [vmem:[%s9775_s4 + $0x158] sm:$0xff]  ;;  %v7433_v21 = vld [vmem:[%s9775_s4 + $0x150] sm:$0xff]  ;;  %v7252_v6 = vld [vmem:[#allocation3 + $0x28] sm:$0xf0] }
 0x4ba   : > { %v9047_v47 = vpop.f32.mrf.mxu3  ;;  %5074 = vmatpush.bf16.msrb.mxu3 %v7434_v61  ;;  %v6247_v4 = vor.u32 %v7252_v6, %v6246_v46 }
 0x4bb   : > { %7922 = vst [vmem:[#allocation2 + $0x300] sm:$0xff] %v7766_v24   ;;  %v1966_v12 = vmul.f32 %v8995_v44, %v1826_v26  ;;  %v6666_v50 = vld [vmem:[#allocation3 + $0x338] sm:$0xf] }
 0x4bc   : > { %9799 = vst [vmem:[#allocation24_spill] sm:$0xff] %v9047_v47 }
 0x4bd   : > { %v2098_v0 = vadd.f32 %v9004_v29, %v1966_v12  ;;  %v7431_v12 = vld [vmem:[%s9775_s4 + $0x140] sm:$0xff] }
 0x4be   : > { %5075 = vmatpush.bf16.msrb.mxu3 %v7433_v21  ;;  %v2702_v21 = vld [vmem:[#allocation2 + $0x268] sm:$0xf] }
 0x4bf   : > { %4811 = vmatmul.bf16.vlgmr.msra.gmra.mxu2 %v6247_v4  ;;  %v7354_v59 = vld [vmem:[#allocation3 + $0x358] sm:$0xf0]  ;;  %v2226_v46 = vmax.f32 %v2098_v0, 0.0  ;;  %v2703_v4 = vld [vmem:[#allocation2 + $0x26c] sm:$0xf] }
 0x4c0   : > { %v1827_v53 = vpop.f32.mrf.mxu1  ;;  %v6667_v6 = vor.u32 %v7354_v59, %v6666_v50  ;;  %2734 = vst [vmem:[#allocation3 + $0x50] sm:$0xf] %v2702_v21  ;;  %v2717_v0 = vld [vmem:[#allocation2 + $0x2b4] sm:$0xf] }
 0x4c1   : > { %v1828_v58 = vadd.f32 %v1827_v53, %v8651_v11  ;;  %v9053_v24 = vpop.f32.mrf.mxu2  ;;  %v6752_v11 = vld [vmem:[#allocation3 + $0x41c] sm:$0xf0]  ;;  %2735 = vst [vmem:[#allocation3 + $0x74] sm:$0xf] %v2703_v4 }
 0x4c2   : > { %v9063_v53 = vpop.f32.mrf.mxu3  ;;  %5076 = vmatpush.bf16.msrb.mxu3 %v7432_v39  ;;  %v6755_v50 = vor.u32 %v7374_v32, %v6752_v11  ;;  %v2969_v39 = vld [vmem:[#allocation2 + $0x2b0] sm:$0xf]  ;;  %2749 = vst [vmem:[#allocation3 + $0x26c] sm:$0xf] %v2717_v0 }
 0x4c3   : > { %v1967_v26 = vmul.f32 %v8995_v44, %v1828_v58  ;;  %9801 = vst [vmem:[#allocation26_spill] sm:$0xff] %v9063_v53  ;;  %5400 = vmatmul.bf16.gmra.mxu0 %v6667_v6  ;;  %v3113_v53 = vld [vmem:[#allocation2 + $0x300] sm:$0xf]  ;;  %v3114_v6 = vld [vmem:[#allocation2 + $0x304] sm:$0xf] }
 0x4c4   : > { %3145 = vst [vmem:[#allocation3 + $0x380] sm:$0xf] %v3113_v53 }
 0x4c5   : > { %v2099_v61 = vadd.f32 %v9004_v29, %v1967_v26  ;;  %v2716_v26 = vld [vmem:[#allocation2 + $0x2b0] sm:$0xf]  ;;  %3146 = vst [vmem:[#allocation3 + $0x3a4] sm:$0xf] %v3114_v6  ;;  %v6788_v6 = vld [vmem:[#allocation3 + $0x464] sm:$0xf0] }
 0x4c6   : > { %2748 = vst [vmem:[#allocation3 + $0x248] sm:$0xf] %v2716_v26  ;;  %5077 = vmatpush.bf16.msrb.mxu3 %v7431_v12 }
 0x4c7   : > { %v2227_v40 = vmax.f32 %v2099_v61, 0.0  ;;  %v9071_v61 = vpop.f32.mrf.mxu0  ;;  %4970 = vmatmul.bf16.gmra.mxu3 %v6755_v50  ;;  %v6282_v32 = vld [vmem:[#allocation3 + $0x50] sm:$0xf]  ;;  %3001 = vst [vmem:[#allocation3 + $0x180] sm:$0xf] %v2969_v39 }
 0x4c8   : > { %v1830_v58 = vpop.f32.mrf.mxu1  ;;  %9802 = vst [vmem:[#allocation27_spill] sm:$0xff] %v9071_v61  ;;  %v7383_v39 = vld [vmem:[#allocation3 + $0x444] sm:$0xf] }
 0x4c9   : > { %v7771_v47 = vpack.c.bf16 %v2227_v40, %v2226_v46  ;;  %v9068_v8 = vpop.f32.mrf.mxu2  ;;  %v1831_v59 = vadd.f32 %v1830_v58, %v8663_v36  ;;  %v2970_v40 = vld [vmem:[#allocation2 + $0x2b4] sm:$0xf] }
 0x4ca   : > { %v9074_v21 = vpop.f32.mrf.mxu3  ;;  %v7261_v36 = vld [vmem:[#allocation3 + $0x70] sm:$0xf0]  ;;  %3002 = vst [vmem:[#allocation3 + $0x1a4] sm:$0xf] %v2970_v40 }
 0x4cb   : > { %7923 = vst [vmem:[#allocation2 + $0x308] sm:$0xff] %v7771_v47   ;;  %v1968_v46 = vmul.f32 %v8995_v44, %v1831_v59  ;;  %v6283_v47 = vor.u32 %v7261_v36, %v6282_v32  ;;  %v6702_v26 = vld [vmem:[#allocation3 + $0x380] sm:$0xf]  ;;  %v2704_v36 = vld [vmem:[#allocation2 + $0x270] sm:$0xf] }
 0x4cc   : > { %9803 = vst [vmem:[#allocation28_spill] sm:$0xff] %v9074_v21  ;;  %v7363_v0 = vld [vmem:[#allocation3 + $0x3a0] sm:$0xf0] }
 0x4cd   : > { %v2100_v58 = vadd.f32 %v9004_v29, %v1968_v46  ;;  %v6703_v40 = vor.u32 %v7363_v0, %v6702_v26  ;;  %v7429_v46 = vld [vmem:[%s9775_s4 + $0x130] sm:$0xff]  ;;  %2736 = vst [vmem:[#allocation3 + $0x98] sm:$0xf] %v2704_v36  ;;  %v6791_v26 = vor.u32 %v7383_v39, %v6788_v6 }
 0x4ce   : > { %4982 = vmatpush.bf16.msrb.mxu2 %v7429_v46 }
 0x4cf   : > { %4816 = vmatmul.bf16.gmra.mxu2 %v6283_v47  ;;  %v9082_v59 = vpop.f32.mrf.mxu0  ;;  %v2228_v61 = vmax.f32 %v2100_v58, 0.0  ;;  %v2719_v58 = vld [vmem:[#allocation2 + $0x2bc] sm:$0xf] }
 0x4d0   : > { %v1832_v11 = vpop.f32.mrf.mxu1  ;;  %9804 = vst [vmem:[#allocation29_spill] sm:$0xff] %v9082_v59  ;;  %v2718_v59 = vld [vmem:[#allocation2 + $0x2b8] sm:$0xf] }
 0x4d1   : > { %v1833_v12 = vadd.f32 %v1832_v11, %v8670_v30  ;;  %v9077_v4 = vpop.f32.mrf.mxu2  ;;  %v2705_v11 = vld [vmem:[#allocation2 + $0x274] sm:$0xf]  ;;  %2750 = vst [vmem:[#allocation3 + $0x290] sm:$0xf] %v2718_v59 }
 0x4d2   : > { %v9084_v32 = vpop.f32.mrf.mxu3  ;;  %2737 = vst [vmem:[#allocation3 + $0xbc] sm:$0xf] %v2705_v11  ;;  %v3116_v21 = vld [vmem:[#allocation2 + $0x30c] sm:$0xf] }
 0x4d3   : > { %v1969_v53 = vmul.f32 %v8995_v44, %v1833_v12  ;;  %9805 = vst [vmem:[#allocation30_spill] sm:$0xff] %v9084_v32  ;;  %5405 = vmatmul.bf16.gmra.mxu0 %v6703_v40  ;;  %v3115_v32 = vld [vmem:[#allocation2 + $0x308] sm:$0xf]  ;;  %v2972_v40 = vld [vmem:[#allocation2 + $0x2bc] sm:$0xf] }
 0x4d4   : > { %2751 = vst [vmem:[#allocation3 + $0x2b4] sm:$0xf] %v2719_v58  ;;  %v6318_v36 = vld [vmem:[#allocation3 + $0x98] sm:$0xf] }
 0x4d5   : > { %v2101_v50 = vadd.f32 %v9004_v29, %v1969_v53  ;;  %3147 = vst [vmem:[#allocation3 + $0x3c8] sm:$0xf] %v3115_v32 }
 0x4d6   : > { %3148 = vst [vmem:[#allocation3 + $0x3ec] sm:$0xf] %v3116_v21 }
 0x4d7   : > { %v2229_v30 = vmax.f32 %v2101_v50, 0.0  ;;  %v2971_v50 = vld [vmem:[#allocation2 + $0x2b8] sm:$0xf]  ;;  %4975 = vmatmul.bf16.gmra.mxu3 %v6791_v26  ;;  %v9095_v11 = vpop.f32.mrf.mxu0  ;;  %3004 = vst [vmem:[#allocation3 + $0x1ec] sm:$0xf] %v2972_v40 }
 0x4d8   : > { %v1835_v47 = vpop.f32.mrf.mxu1  ;;  %3003 = vst [vmem:[#allocation3 + $0x1c8] sm:$0xf] %v2971_v50  ;;  %v7249_v26 = vld [vmem:[#allocation3 + $0x14] sm:$0xf] }
 0x4d9   : > { %v7776_v12 = vpack.c.bf16 %v2229_v30, %v2228_v61  ;;  %v9089_v53 = vpop.f32.mrf.mxu2  ;;  %v1836_v0 = vadd.f32 %v1835_v47, %v8679_v42  ;;  %9807 = vst [vmem:[#allocation32_spill] sm:$0xff] %v9095_v11  ;;  %v7270_v59 = vld [vmem:[#allocation3 + $0xb8] sm:$0xf0] }
 0x4da   : > { %v9092_v61 = vpop.f32.mrf.mxu3  ;;  %v6319_v42 = vor.u32 %v7270_v59, %v6318_v36  ;;  %v2706_v59 = vld [vmem:[#allocation2 + $0x278] sm:$0xf] }
 0x4db   : > { %7924 = vst [vmem:[#allocation2 + $0x310] sm:$0xff] %v7776_v12   ;;  %v1970_v30 = vmul.f32 %v8995_v44, %v1836_v0  ;;  %v6256_v0 = vld [vmem:[#allocation3 + $0x34] sm:$0xf0] }
 0x4dc   : > { %9806 = vst [vmem:[#allocation31_spill] sm:$0xff] %v9092_v61  ;;  %v6738_v47 = vld [vmem:[#allocation3 + $0x3c8] sm:$0xf] }
 0x4dd   : > { %v2102_v32 = vadd.f32 %v9004_v29, %v1970_v30  ;;  %v7372_v12 = vld [vmem:[#allocation3 + $0x3e8] sm:$0xf0]  ;;  %2738 = vst [vmem:[#allocation3 + $0xe0] sm:$0xf] %v2706_v59 }
 0x4de   : > { %v6739_v50 = vor.u32 %v7372_v12, %v6738_v47  ;;  %v2974_v12 = vld [vmem:[#allocation2 + $0x2c4] sm:$0xf] }
 0x4df   : > { %4821 = vmatmul.bf16.gmra.mxu2 %v6319_v42  ;;  %v2230_v40 = vmax.f32 %v2102_v32, 0.0  ;;  %v2721_v42 = vld [vmem:[#allocation2 + $0x2c4] sm:$0xf]  ;;  %3006 = vst [vmem:[#allocation3 + $0x234] sm:$0xf] %v2974_v12 }
 0x4e0   : > { %v1837_v39 = vpop.f32.mrf.mxu1  ;;  %2753 = vst [vmem:[#allocation3 + $0x2fc] sm:$0xf] %v2721_v42  ;;  %v7258_v42 = vld [vmem:[#allocation3 + $0x5c] sm:$0xf] }
 0x4e1   : > { %v1838_v6 = vadd.f32 %v1837_v39, %v8687_v14  ;;  %v9098_v46 = vpop.f32.mrf.mxu2  ;;  %v2707_v14 = vld [vmem:[#allocation2 + $0x27c] sm:$0xf] }
 0x4e2   : > { %v9103_v11 = vpop.f32.mrf.mxu3  ;;  %2739 = vst [vmem:[#allocation3 + $0x104] sm:$0xf] %v2707_v14  ;;  %v3117_v47 = vld [vmem:[#allocation2 + $0x310] sm:$0xf]  ;;  %v3118_v32 = vld [vmem:[#allocation2 + $0x314] sm:$0xf] }
 0x4e3   : > { %v1971_v21 = vmul.f32 %v8995_v44, %v1838_v6  ;;  %9808 = vst [vmem:[#allocation33_spill] sm:$0xff] %v9103_v11  ;;  %5410 = vmatmul.bf16.gmra.mxu0 %v6739_v50  ;;  %v2720_v44 = vld [vmem:[#allocation2 + $0x2c0] sm:$0xf]  ;;  %v9107_v6 = vpop.f32.mrf.mxu0  ;;  %v2977_v11 = vld [vmem:[#allocation2 + $0x2d8] sm:$0xf] }
 0x4e4   : > { %9809 = vst [vmem:[#allocation34_spill] sm:$0xff] %v9107_v6  ;;  %v6354_v50 = vld [vmem:[#allocation3 + $0xe0] sm:$0xf] }
 0x4e5   : > { %v2103_v58 = vadd.f32 %v9004_v29, %v1971_v21  ;;  %v6259_v29 = vor.u32 %v7249_v26, %v6256_v0  ;;  %2752 = vst [vmem:[#allocation3 + $0x2d8] sm:$0xf] %v2720_v44  ;;  %v2973_v21 = vld [vmem:[#allocation2 + $0x2c0] sm:$0xf] }
 0x4e6   : > { %3149 = vst [vmem:[#allocation3 + $0x410] sm:$0xf] %v3117_v47  ;;  %v7428_v47 = vld [vmem:[%s9775_s4 + $0x128] sm:$0xff] }
 0x4e7   : > { %v2231_v36 = vmax.f32 %v2103_v58, 0.0  ;;  %5078 = vmatmul.bf16.vlgmr.msrb.gmra.mxu3 %v6259_v29  ;;  %3150 = vst [vmem:[#allocation3 + $0x434] sm:$0xf] %v3118_v32  ;;  %v6292_v29 = vld [vmem:[#allocation3 + $0x7c] sm:$0xf0]  ;;  %4983 = vmatpush.bf16.msrb.mxu2 %v7428_v47 }
 0x4e8   : > { %3005 = vst [vmem:[#allocation3 + $0x210] sm:$0xf] %v2973_v21  ;;  %v2722_v21 = vld [vmem:[#allocation2 + $0x2c8] sm:$0xf]  ;;  %v2723_v32 = vld [vmem:[#allocation2 + $0x2cc] sm:$0xf]  ;;  %v6295_v12 = vor.u32 %v7258_v42, %v6292_v29 }
 0x4e9   : > { %v7781_v39 = vpack.c.bf16 %v2231_v36, %v2230_v40  ;;  %v9105_v30 = vpop.f32.mrf.mxu2  ;;  %v7279_v40 = vld [vmem:[#allocation3 + $0x100] sm:$0xf0]  ;;  %2754 = vst [vmem:[#allocation3 + $0x320] sm:$0xf] %v2722_v21 }
 0x4ea   : > { %v9109_v58 = vpop.f32.mrf.mxu3  ;;  %v6355_v36 = vor.u32 %v7279_v40, %v6354_v50  ;;  %2755 = vst [vmem:[#allocation3 + $0x344] sm:$0xf] %v2723_v32  ;;  %v7267_v32 = vld [vmem:[#allocation3 + $0xa4] sm:$0xf] }
 0x4eb   : > { %7925 = vst [vmem:[#allocation2 + $0x318] sm:$0xff] %v7781_v39   ;;  %v9113_v26 = vpop.f32.mrf.mxu0 }
 0x4ec   : > { %9810 = vst [vmem:[#allocation35_spill] sm:$0xff] %v9109_v58 }
 0x4ed   : > { %9811 = vst [vmem:[#allocation36_spill] sm:$0xff] %v9113_v26  ;;  %v6774_v0 = vld [vmem:[#allocation3 + $0x410] sm:$0xf]  ;;  %v7288_v26 = vld [vmem:[#allocation3 + $0x148] sm:$0xf0] }
 0x4ee   : > { %v7381_v14 = vld [vmem:[#allocation3 + $0x430] sm:$0xf0]  ;;  %3009 = vst [vmem:[#allocation3 + $0x2a0] sm:$0xf] %v2977_v11  ;;  %v2726_v11 = vld [vmem:[#allocation2 + $0x2e0] sm:$0xf] }
 0x4ef   : > { %4826 = vmatmul.bf16.gmra.mxu2 %v6355_v36  ;;  %v6775_v39 = vor.u32 %v7381_v14, %v6774_v0  ;;  %v6390_v14 = vld [vmem:[#allocation3 + $0x128] sm:$0xf]  ;;  %2758 = vst [vmem:[#allocation3 + $0x3b0] sm:$0xf] %v2726_v11  ;;  %v2729_v11 = vld [vmem:[#allocation2 + $0x2ec] sm:$0xf] }
 0x4f0   : > { %2761 = vst [vmem:[#allocation3 + $0x41c] sm:$0xf] %v2729_v11  ;;  %v2731_v11 = vld [vmem:[#allocation2 + $0x2f4] sm:$0xf] }
 0x4f1   : > { %v9111_v59 = vpop.f32.mrf.mxu2  ;;  %2763 = vst [vmem:[#allocation3 + $0x464] sm:$0xf] %v2731_v11  ;;  %v4726_v11 = vadd.f32 %v8701_v48, %v8691_v55  ;;  %v7425_v55 = vld [vmem:[%s9775_s4 + $0x110] sm:$0xff]  ;;  %v2987_v48 = vld [vmem:[#allocation2 + $0x308] sm:$0xf] }
 0x4f2   : > { %v9115_v44 = vpop.f32.mrf.mxu3  ;;  %v3119_v40 = vld [vmem:[#allocation2 + $0x318] sm:$0xf]  ;;  %v3120_v36 = vld [vmem:[#allocation2 + $0x31c] sm:$0xf]  ;;  %3019 = vst [vmem:[#allocation3 + $0x408] sm:$0xf] %v2987_v48 }
 0x4f3   : > { %9812 = vst [vmem:[#allocation37_spill] sm:$0xff] %v9115_v44  ;;  %5415 = vmatmul.bf16.gmra.mxu0 %v6775_v39  ;;  %v9122_v0 = vpop.f32.mrf.mxu0  ;;  %v6391_v39 = vor.u32 %v7288_v26, %v6390_v14  ;;  %v7297_v14 = vld [vmem:[#allocation3 + $0x190] sm:$0xf0]  ;;  %v2989_v48 = vld [vmem:[#allocation2 + $0x310] sm:$0xf] }
 0x4f4   : > { %3151 = vst [vmem:[#allocation3 + $0x458] sm:$0xf] %v3119_v40  ;;  %v2724_v40 = vld [vmem:[#allocation2 + $0x2d8] sm:$0xf] }
 0x4f5   : > { %9813 = vst [vmem:[#allocation38_spill] sm:$0xff] %v9122_v0  ;;  %v2725_v0 = vld [vmem:[#allocation2 + $0x2dc] sm:$0xf] }
 0x4f6   : > { %3152 = vst [vmem:[#allocation3 + $0x47c] sm:$0xf] %v3120_v36 }
 0x4f7   : > { %5083 = vmatmul.bf16.gmra.mxu3 %v6295_v12  ;;  %v6328_v12 = vld [vmem:[#allocation3 + $0xc4] sm:$0xf0]  ;;  %2756 = vst [vmem:[#allocation3 + $0x368] sm:$0xf] %v2724_v40 }
 0x4f8   : > { %v6331_v36 = vor.u32 %v7267_v32, %v6328_v12  ;;  %2757 = vst [vmem:[#allocation3 + $0x38c] sm:$0xf] %v2725_v0  ;;  %v6364_v32 = vld [vmem:[#allocation3 + $0x10c] sm:$0xf0]  ;;  %v7427_v0 = vld [vmem:[%s9775_s4 + $0x120] sm:$0xff] }
 0x4f9   : > { %v9120_v50 = vpop.f32.mrf.mxu2  ;;  %4984 = vmatpush.bf16.msrb.mxu2 %v7427_v0  ;;  %v2979_v12 = vld [vmem:[#allocation2 + $0x2e0] sm:$0xf]  ;;  %3021 = vst [vmem:[#allocation3 + $0x450] sm:$0xf] %v2989_v48  ;;  %v4741_v48 = vadd.f32 %v8744_v35, %v8741_v16  ;;  %v4746_v16 = vadd.f32 %v8763_v41, %v8970_v37 }
 0x4fa   : > { %v9124_v6 = vpop.f32.mrf.mxu3  ;;  %3011 = vst [vmem:[#allocation3 + $0x2e8] sm:$0xf] %v2979_v12  ;;  %v2982_v12 = vld [vmem:[#allocation2 + $0x2ec] sm:$0xf]  ;;  %v7423_v41 = vld [vmem:[%s9775_s4 + $0x100] sm:$0xff] }
 0x4fb   : > { %9814 = vst [vmem:[#allocation39_spill] sm:$0xff] %v9124_v6  ;;  %v6810_v47 = vld [vmem:[#allocation3 + $0x458] sm:$0xf]  ;;  %v9130_v58 = vpop.f32.mrf.mxu0  ;;  %v2978_v6 = vld [vmem:[#allocation2 + $0x2dc] sm:$0xf] }
 0x4fc   : > { %9816 = vst [vmem:[#allocation41_spill] sm:$0xff] %v9130_v58 }
 0x4fd   : > { %v7390_v44 = vld [vmem:[#allocation3 + $0x478] sm:$0xf0]  ;;  %3010 = vst [vmem:[#allocation3 + $0x2c4] sm:$0xf] %v2978_v6  ;;  %v2727_v6 = vld [vmem:[#allocation2 + $0x2e4] sm:$0xf] }
 0x4fe   : > { %v6811_v42 = vor.u32 %v7390_v44, %v6810_v47  ;;  %v6426_v44 = vld [vmem:[#allocation3 + $0x170] sm:$0xf]  ;;  %2759 = vst [vmem:[#allocation3 + $0x3d4] sm:$0xf] %v2727_v6  ;;  %v2981_v6 = vld [vmem:[#allocation2 + $0x2e8] sm:$0xf] }
 0x4ff   : > { %4831 = vmatmul.bf16.gmra.mxu2 %v6391_v39  ;;  %v6427_v47 = vor.u32 %v7297_v14, %v6426_v44  ;;  %v6462_v14 = vld [vmem:[#allocation3 + $0x1b8] sm:$0xf]  ;;  %3013 = vst [vmem:[#allocation3 + $0x330] sm:$0xf] %v2981_v6 }
 0x500   : > { %3014 = vst [vmem:[#allocation3 + $0x354] sm:$0xf] %v2982_v12  ;;  %v7324_v12 = vld [vmem:[#allocation3 + $0x268] sm:$0xf0] }
 0x501   : > { %v9126_v29 = vpop.f32.mrf.mxu2 }
 0x502   : > { %v9128_v21 = vpop.f32.mrf.mxu3 }
 0x503   : > { %9815 = vst [vmem:[#allocation40_spill] sm:$0xff] %v9128_v21  ;;  %5420 = vmatmul.bf16.gmra.mxu0 %v6811_v42  ;;  %v7276_v21 = vld [vmem:[#allocation3 + $0xec] sm:$0xf] }
 0x504   : > { %v6367_v40 = vor.u32 %v7276_v21, %v6364_v32  ;;  %v6400_v21 = vld [vmem:[#allocation3 + $0x154] sm:$0xf0]  ;;  %v2728_v32 = vld [vmem:[#allocation2 + $0x2e8] sm:$0xf] }
 0x505   : > { %2760 = vst [vmem:[#allocation3 + $0x3f8] sm:$0xf] %v2728_v32  ;;  %v2730_v32 = vld [vmem:[#allocation2 + $0x2f0] sm:$0xf] }
 0x506   : > { %2762 = vst [vmem:[#allocation3 + $0x440] sm:$0xf] %v2730_v32  ;;  %v6475_v32 = vor.u32 %v7303_v54, %v6472_v51  ;;  %v6508_v51 = vld [vmem:[#allocation3 + $0x22c] sm:$0xf0] }
 0x507   : > { %5088 = vmatmul.bf16.gmra.mxu3 %v6331_v36  ;;  %v2980_v36 = vld [vmem:[#allocation2 + $0x2e4] sm:$0xf] }
 0x508   : > { %3012 = vst [vmem:[#allocation3 + $0x30c] sm:$0xf] %v2980_v36 }
 0x509   : > { %v9132_v26 = vpop.f32.mrf.mxu2 }
 0x50a   : > { %v9134_v39 = vpop.f32.mrf.mxu3 }
 0x50b   : > { %9817 = vst [vmem:[#allocation42_spill] sm:$0xff] %v9134_v39 }
 0x50f   : > { %4836 = vmatmul.bf16.gmra.mxu2 %v6427_v47  ;;  %v7306_v47 = vld [vmem:[#allocation3 + $0x1d8] sm:$0xf0] }
 0x510   : > { %v6463_v39 = vor.u32 %v7306_v47, %v6462_v14  ;;  %v6498_v14 = vld [vmem:[#allocation3 + $0x200] sm:$0xf] }
 0x511   : > { %v9136_v58 = vpop.f32.mrf.mxu2 }
 0x512   : > { %v9138_v42 = vpop.f32.mrf.mxu3 }
 0x513   : > { %9818 = vst [vmem:[#allocation43_spill] sm:$0xff] %v9138_v42 }
 0x517   : > { %5093 = vmatmul.bf16.gmra.mxu3 %v6367_v40  ;;  %v6403_v40 = vor.u32 %v7285_v5, %v6400_v21  ;;  %v6436_v5 = vld [vmem:[#allocation3 + $0x19c] sm:$0xf0]  ;;  %v7426_v21 = vld [vmem:[%s9775_s4 + $0x118] sm:$0xff] }
 0x518   : > { %4985 = vmatpush.bf16.msrb.mxu2 %v7426_v21  ;;  %v6439_v6 = vor.u32 %v7294_v1, %v6436_v5  ;;  %v2985_v1 = vld [vmem:[#allocation2 + $0x300] sm:$0xf]  ;;  %v2986_v5 = vld [vmem:[#allocation2 + $0x304] sm:$0xf] }
 0x519   : > { %v9143_v44 = vpop.f32.mrf.mxu2  ;;  %3017 = vst [vmem:[#allocation3 + $0x3c0] sm:$0xf] %v2985_v1  ;;  %v2988_v1 = vld [vmem:[#allocation2 + $0x30c] sm:$0xf] }
 0x51a   : > { %v9145_v42 = vpop.f32.mrf.mxu3  ;;  %3018 = vst [vmem:[#allocation3 + $0x3e4] sm:$0xf] %v2986_v5  ;;  %v6511_v5 = vor.u32 %v7312_v3, %v6508_v51  ;;  %v6544_v3 = vld [vmem:[#allocation3 + $0x274] sm:$0xf0] }
 0x51b   : > { %9819 = vst [vmem:[#allocation44_spill] sm:$0xff] %v9145_v42 }
 0x51c   : > { %4986 = vmatpush.bf16.msrb.mxu2 %v7425_v55  ;;  %3020 = vst [vmem:[#allocation3 + $0x42c] sm:$0xf] %v2988_v1  ;;  %v2990_v1 = vld [vmem:[#allocation2 + $0x314] sm:$0xf] }
 0x51d   : > { %3022 = vst [vmem:[#allocation3 + $0x474] sm:$0xf] %v2990_v1 }
 0x51f   : > { %4841 = vmatmul.bf16.gmra.mxu2 %v6463_v39  ;;  %v7315_v39 = vld [vmem:[#allocation3 + $0x220] sm:$0xf0] }
 0x520   : > { %v6499_v42 = vor.u32 %v7315_v39, %v6498_v14 }
 0x522   : > { %v9147_v61 = vpop.f32.mrf.mxu2  ;;  %v9149_v0 = vpop.f32.mrf.mxu3 }
 0x523   : > { %9820 = vst [vmem:[#allocation45_spill] sm:$0xff] %v9149_v0 }
 0x527   : > { %5098 = vmatmul.bf16.gmra.mxu3 %v6403_v40 }
 0x52a   : > { %v9151_v36 = vpop.f32.mrf.mxu2  ;;  %v9153_v47 = vpop.f32.mrf.mxu3 }
 0x52b   : > { %9821 = vst [vmem:[#allocation46_spill] sm:$0xff] %v9153_v47 }
 0x52f   : > { %4846 = vmatmul.bf16.gmra.mxu2 %v6499_v42  ;;  %v6534_v42 = vld [vmem:[#allocation3 + $0x248] sm:$0xf] }
 0x530   : > { %v6535_v39 = vor.u32 %v7324_v12, %v6534_v42  ;;  %v6570_v42 = vld [vmem:[#allocation3 + $0x290] sm:$0xf]  ;;  %v7333_v12 = vld [vmem:[#allocation3 + $0x2b0] sm:$0xf0] }
 0x532   : > { %v9155_v0 = vpop.f32.mrf.mxu2  ;;  %v9157_v13 = vpop.f32.mrf.mxu3 }
 0x533   : > { %9822 = vst [vmem:[#allocation47_spill] sm:$0xff] %v9157_v13 }
 0x537   : > { %5103 = vmatmul.bf16.gmra.mxu3 %v6439_v6 }
 0x53a   : > { %v9162_v40 = vpop.f32.mrf.mxu2  ;;  %v9164_v14 = vpop.f32.mrf.mxu3 }
 0x53b   : > { %9823 = vst [vmem:[#allocation48_spill] sm:$0xff] %v9164_v14  ;;  %v6571_v14 = vor.u32 %v7333_v12, %v6570_v42 }
 0x53f   : > { %4851 = vmatmul.bf16.gmra.mxu2 %v6535_v39 }
 0x542   : > { %v4812_v13 = vpop.f32.mrf.mxu2  ;;  %v9166_v47 = vpop.f32.mrf.mxu3 }
 0x543   : > { %9824 = vst [vmem:[#allocation49_spill] sm:$0xff] %v9166_v47  ;;  %v9169_v21 = vadd.f32 %v4812_v13, %v8696_v63 }
 0x547   : > { %5108 = vmatmul.bf16.gmra.mxu3 %v6475_v32 }
 0x54a   : > { %v4814_v6 = vpop.f32.mrf.mxu2  ;;  %v9173_v39 = vpop.f32.mrf.mxu3 }
 0x54b   : > { %v9175_v47 = vadd.f32 %v4814_v6, %v4726_v11  ;;  %v6606_v11 = vld [vmem:[#allocation3 + $0x2d8] sm:$0xf]  ;;  %v7342_v6 = vld [vmem:[#allocation3 + $0x2f8] sm:$0xf0] }
 0x54c   : > { %v6607_v12 = vor.u32 %v7342_v6, %v6606_v11 }
 0x54f   : > { %4856 = vmatmul.bf16.gmra.mxu2 %v6571_v14  ;;  %v4731_v14 = vadd.f32 %v8718_v9, %v8705_v43  ;;  %v4736_v9 = vadd.f32 %v8730_v19, %v8723_v62  ;;  %v7424_v62 = vld [vmem:[%s9775_s4 + $0x108] sm:$0xff] }
 0x550   : > { %4987 = vmatpush.bf16.msrb.mxu2 %v7424_v62  ;;  %v6714_v62 = vld [vmem:[#allocation3 + $0x3b0] sm:$0xf] }
 0x552   : > { %v4817_v63 = vpop.f32.mrf.mxu2  ;;  %v9177_v13 = vpop.f32.mrf.mxu3 }
 0x553   : > { %9825 = vst [vmem:[#allocation50_spill] sm:$0xff] %v9177_v13  ;;  %v9180_v54 = vadd.f32 %v4817_v63, %v8710_v52  ;;  %v7321_v13 = vld [vmem:[#allocation3 + $0x254] sm:$0xf] }
 0x554   : > { %v6547_v43 = vor.u32 %v7321_v13, %v6544_v3  ;;  %v6580_v13 = vld [vmem:[#allocation3 + $0x2bc] sm:$0xf0]  ;;  %4988 = vmatpush.bf16.msrb.mxu2 %v7423_v41 }
 0x557   : > { %5113 = vmatmul.bf16.gmra.mxu3 %v6511_v5 }
 0x55a   : > { %v4819_v32 = vpop.f32.mrf.mxu2  ;;  %v9187_v42 = vpop.f32.mrf.mxu3 }
 0x55b   : > { %v9189_v52 = vadd.f32 %v4819_v32, %v4731_v14  ;;  %v6642_v14 = vld [vmem:[#allocation3 + $0x320] sm:$0xf]  ;;  %v7351_v32 = vld [vmem:[#allocation3 + $0x340] sm:$0xf0] }
 0x55f   : > { %4861 = vmatmul.bf16.gmra.mxu2 %v6607_v12  ;;  %v6643_v12 = vor.u32 %v7351_v32, %v6642_v14 }
 0x562   : > { %v4822_v63 = vpop.f32.mrf.mxu2  ;;  %v9191_v55 = vpop.f32.mrf.mxu3 }
 0x563   : > { %9826 = vst [vmem:[#allocation51_spill] sm:$0xff] %v9191_v55  ;;  %v9194_v51 = vadd.f32 %v4822_v63, %v8725_v7  ;;  %v7330_v55 = vld [vmem:[#allocation3 + $0x29c] sm:$0xf] }
 0x564   : > { %v6583_v19 = vor.u32 %v7330_v55, %v6580_v13 }
 0x567   : > { %5118 = vmatmul.bf16.gmra.mxu3 %v6547_v43  ;;  %v6678_v43 = vld [vmem:[#allocation3 + $0x368] sm:$0xf] }
 0x56a   : > { %v4824_v5 = vpop.f32.mrf.mxu2  ;;  %v9198_v11 = vpop.f32.mrf.mxu3 }
 0x56b   : > { %v9200_v6 = vadd.f32 %v4824_v5, %v4736_v9  ;;  %v7360_v9 = vld [vmem:[#allocation3 + $0x388] sm:$0xf0] }
 0x56c   : > { %v6679_v32 = vor.u32 %v7360_v9, %v6678_v43  ;;  %v4749_v9 = vadd.f32 %v8777_v17, %v8977_v57  ;;  %v7378_v17 = vld [vmem:[#allocation3 + $0x418] sm:$0xf0] }
 0x56f   : > { %4866 = vmatmul.bf16.gmra.mxu2 %v6643_v12 }
 0x572   : > { %v4827_v7 = vpop.f32.mrf.mxu2  ;;  %v9202_v63 = vpop.f32.mrf.mxu3 }
 0x573   : > { %9827 = vst [vmem:[#allocation52_spill] sm:$0xff] %v9202_v63  ;;  %v9205_v3 = vadd.f32 %v4827_v7, %v8737_v56  ;;  %v7339_v7 = vld [vmem:[#allocation3 + $0x2e4] sm:$0xf]  ;;  %v6616_v63 = vld [vmem:[#allocation3 + $0x304] sm:$0xf0] }
 0x574   : > { %v6619_v13 = vor.u32 %v7339_v7, %v6616_v63  ;;  %v7348_v63 = vld [vmem:[#allocation3 + $0x32c] sm:$0xf] }
 0x577   : > { %5123 = vmatmul.bf16.gmra.mxu3 %v6583_v19  ;;  %v7369_v19 = vld [vmem:[#allocation3 + $0x3d0] sm:$0xf0] }
 0x578   : > { %v6715_v43 = vor.u32 %v7369_v19, %v6714_v62 }
 0x57a   : > { %v4829_v1 = vpop.f32.mrf.mxu2  ;;  %v9212_v5 = vpop.f32.mrf.mxu3 }
 0x57b   : > { %v9214_v14 = vadd.f32 %v4829_v1, %v4741_v48 }
 0x57f   : > { %4871 = vmatmul.bf16.gmra.mxu2 %v6679_v32 }
 0x582   : > { %v4832_v56 = vpop.f32.mrf.mxu2  ;;  %v9216_v12 = vpop.f32.mrf.mxu3 }
 0x583   : > { %v9219_v55 = vadd.f32 %v4832_v56, %v8755_v45  ;;  %v6652_v56 = vld [vmem:[#allocation3 + $0x34c] sm:$0xf0] }
 0x584   : > { %v6655_v37 = vor.u32 %v7348_v63, %v6652_v56  ;;  %v7357_v63 = vld [vmem:[#allocation3 + $0x374] sm:$0xf]  ;;  %v6688_v56 = vld [vmem:[#allocation3 + $0x394] sm:$0xf0] }
 0x587   : > { %5128 = vmatmul.bf16.gmra.mxu3 %v6619_v13  ;;  %v4751_v13 = vadd.f32 %v8788_v49, %v8987_v2  ;;  %v6691_v49 = vor.u32 %v7357_v63, %v6688_v56  ;;  %v7454_v2 = vld [vmem:[%s9775_s4 + $0x1f8] sm:$0xff] }
 0x588   : > { %5248 = vmatpush.bf16.msra.mxu3 %v7454_v2  ;;  %v7366_v2 = vld [vmem:[#allocation3 + $0x3bc] sm:$0xf] }
 0x58a   : > { %v4834_v35 = vpop.f32.mrf.mxu2  ;;  %v9223_v48 = vpop.f32.mrf.mxu3 }
 0x58b   : > { %v9225_v1 = vadd.f32 %v4834_v35, %v4746_v16  ;;  %v6750_v35 = vld [vmem:[#allocation3 + $0x3f8] sm:$0xf] }
 0x58c   : > { %v6751_v19 = vor.u32 %v7378_v17, %v6750_v35  ;;  %v6786_v35 = vld [vmem:[#allocation3 + $0x440] sm:$0xf]  ;;  %v7387_v17 = vld [vmem:[#allocation3 + $0x460] sm:$0xf0] }
 0x58f   : > { %4876 = vmatmul.bf16.gmra.mxu2 %v6715_v43  ;;  %v9830_v43 = vld [vmem:[#allocation4_spill] sm:$0xff] }
 0x592   : > { %v4837_v32 = vpop.f32.mrf.mxu2  ;;  %v9229_v45 = vpop.f32.mrf.mxu3 }
 0x593   : > { %9828 = vst [vmem:[#allocation53_spill] sm:$0xff] %v9229_v45  ;;  %v9231_v7 = vadd.f32 %v4837_v32, %v4749_v9  ;;  %v4754_v9 = vadd.f32 %v9830_v43, %v8999_v33  ;;  %v7453_v43 = vld [vmem:[%s9775_s4 + $0x1f0] sm:$0xff] }
 0x594   : > { %5249 = vmatpush.bf16.msra.mxu3 %v7453_v43  ;;  %v9836_v43 = vld [vmem:[#allocation7_spill] sm:$0xff] }
 0x597   : > { %5133 = vmatmul.bf16.gmra.mxu3 %v6655_v37  ;;  %v9832_v37 = vld [vmem:[#allocation5_spill] sm:$0xff] }
 0x59a   : > { %v4839_v16 = vpop.f32.mrf.mxu2  ;;  %v9238_v57 = vpop.f32.mrf.mxu3 }
 0x59b   : > { %9829 = vst [vmem:[#allocation54_spill] sm:$0xff] %v9238_v57  ;;  %v9240_v62 = vadd.f32 %v4839_v16, %v4751_v13  ;;  %v4756_v13 = vadd.f32 %v9832_v37, %v9011_v34  ;;  %v9834_v34 = vld [vmem:[#allocation6_spill] sm:$0xff]  ;;  %v6724_v37 = vld [vmem:[#allocation3 + $0x3dc] sm:$0xf0]  ;;  %v7384_v57 = vld [vmem:[#allocation3 + $0x44c] sm:$0xf] }
 0x59c   : > { %v4759_v63 = vadd.f32 %v9834_v34, %v9024_v23  ;;  %v7450_v23 = vld [vmem:[%s9775_s4 + $0x1d8] sm:$0xff]  ;;  %v6254_v34 = vld [vmem:[#allocation3 + $0x10] sm:$0xf] }
 0x59f   : > { %4881 = vmatmul.bf16.gmra.mxu2 %v6751_v19 }
 0x5a2   : > { %v4842_v32 = vpop.f32.mrf.mxu2  ;;  %v9244_v45 = vpop.f32.mrf.mxu3 }
 0x5a3   : > { %9831 = vst [vmem:[#allocation4_spill] sm:$0xff] %v9244_v45  ;;  %v9246_v41 = vadd.f32 %v4842_v32, %v4754_v9  ;;  %v6787_v9 = vor.u32 %v7387_v17, %v6786_v35  ;;  %v7452_v32 = vld [vmem:[%s9775_s4 + $0x1e8] sm:$0xff]  ;;  %v6727_v35 = vor.u32 %v7366_v2, %v6724_v37  ;;  %v7446_v17 = vld [vmem:[%s9775_s4 + $0x1b8] sm:$0xff]  ;;  %v7449_v37 = vld [vmem:[%s9775_s4 + $0x1d0] sm:$0xff] }
 0x5a4   : > { %5250 = vmatpush.bf16.msra.mxu3 %v7452_v32  ;;  %5159 = vmatpush.bf16.msra.mxu2 %v7446_v17 }
 0x5a7   : > { %5138 = vmatmul.bf16.gmra.mxu3 %v6691_v49 }
 0x5aa   : > { %v4844_v16 = vpop.f32.mrf.mxu2  ;;  %v9253_v33 = vpop.f32.mrf.mxu3 }
 0x5ab   : > { %9833 = vst [vmem:[#allocation5_spill] sm:$0xff] %v9253_v33  ;;  %v9255_v19 = vadd.f32 %v4844_v16, %v4756_v13  ;;  %v7451_v16 = vld [vmem:[%s9775_s4 + $0x1e0] sm:$0xff] }
 0x5ac   : > { %5251 = vmatpush.bf16.msra.mxu3 %v7451_v16 }
 0x5af   : > { %4886 = vmatmul.bf16.gmra.mxu2 %v6787_v9  ;;  %v4761_v9 = vadd.f32 %v9836_v43, %v9037_v15  ;;  %v9838_v15 = vld [vmem:[#allocation8_spill] sm:$0xff] }
 0x5b0   : > { %5252 = vmatpush.bf16.msra.mxu3 %v7450_v23  ;;  %v4764_v43 = vadd.f32 %v9838_v15, %v9053_v24  ;;  %v6290_v24 = vld [vmem:[#allocation3 + $0x58] sm:$0xf]  ;;  %v7262_v15 = vld [vmem:[#allocation3 + $0x78] sm:$0xf0] }
 0x5b1   : > { %v6291_v33 = vor.u32 %v7262_v15, %v6290_v24 }
 0x5b2   : > { %v4847_v56 = vpop.f32.mrf.mxu2  ;;  %v9265_v49 = vpop.f32.mrf.mxu3 }
 0x5b3   : > { %9835 = vst [vmem:[#allocation6_spill] sm:$0xff] %v9265_v49  ;;  %v9267_v13 = vadd.f32 %v4847_v56, %v4759_v63  ;;  %v7253_v63 = vld [vmem:[#allocation3 + $0x30] sm:$0xf0] }
 0x5b4   : > { %v6255_v16 = vor.u32 %v7253_v63, %v6254_v34  ;;  %5253 = vmatpush.bf16.msra.mxu3 %v7449_v37  ;;  %v7447_v34 = vld [vmem:[%s9775_s4 + $0x1c0] sm:$0xff]  ;;  %v9840_v37 = vld [vmem:[#allocation9_spill] sm:$0xff] }
 0x5b7   : > { %5143 = vmatmul.bf16.gmra.mxu3 %v6727_v35  ;;  %v7448_v35 = vld [vmem:[%s9775_s4 + $0x1c8] sm:$0xff] }
 0x5b8   : > { %5254 = vmatpush.bf16.msra.mxu3 %v7448_v35 }
 0x5ba   : > { %v4849_v32 = vpop.f32.mrf.mxu2  ;;  %v9280_v56 = vpop.f32.mrf.mxu3 }
 0x5bb   : > { %9837 = vst [vmem:[#allocation7_spill] sm:$0xff] %v9280_v56  ;;  %v9282_v2 = vadd.f32 %v4849_v32, %v4761_v9  ;;  %v7375_v9 = vld [vmem:[#allocation3 + $0x404] sm:$0xf]  ;;  %v6760_v32 = vld [vmem:[#allocation3 + $0x424] sm:$0xf0] }
 0x5bc   : > { %v6763_v63 = vor.u32 %v7375_v9, %v6760_v32  ;;  %5255 = vmatpush.bf16.msra.mxu3 %v7447_v34  ;;  %v6796_v9 = vld [vmem:[#allocation3 + $0x46c] sm:$0xf0] }
 0x5bf   : > { %4989 = vmatmul.bf16.vlgmr.msrb.gmra.mxu2 %v6255_v16  ;;  %v4766_v16 = vadd.f32 %v9840_v37, %v9068_v8  ;;  %v7445_v8 = vld [vmem:[%s9775_s4 + $0x1b0] sm:$0xff] }
 0x5c0   : > { %5160 = vmatpush.bf16.msra.mxu2 %v7445_v8  ;;  %v6264_v8 = vld [vmem:[#allocation3 + $0x3c] sm:$0xf0] }
 0x5c2   : > { %v4852_v17 = vpop.f32.mrf.mxu2  ;;  %v9292_v23 = vpop.f32.mrf.mxu3 }
 0x5c3   : > { %9839 = vst [vmem:[#allocation8_spill] sm:$0xff] %v9292_v23  ;;  %v9294_v56 = vadd.f32 %v4852_v17, %v4764_v43  ;;  %v9842_v43 = vld [vmem:[#allocation10_spill] sm:$0xff] }
 0x5c4   : > { %v4769_v17 = vadd.f32 %v9842_v43, %v9077_v4  ;;  %v7271_v4 = vld [vmem:[#allocation3 + $0xc0] sm:$0xf0] }
 0x5c5   : > { %v9845_v43 = vld [vmem:[#allocation12_spill] sm:$0xff] }
 0x5c7   : > { %5148 = vmatmul.bf16.gmra.mxu3 %v6763_v63  ;;  %v6799_v63 = vor.u32 %v7384_v57, %v6796_v9 }
 0x5ca   : > { %v4854_v49 = vpop.f32.mrf.mxu2  ;;  %v9301_v35 = vpop.f32.mrf.mxu3 }
 0x5cb   : > { %9841 = vst [vmem:[#allocation9_spill] sm:$0xff] %v9301_v35  ;;  %v9303_v23 = vadd.f32 %v4854_v49, %v4766_v16  ;;  %v9844_v49 = vld [vmem:[#allocation11_spill] sm:$0xff]  ;;  %v6326_v16 = vld [vmem:[#allocation3 + $0xa0] sm:$0xf] }
 0x5cc   : > { %v6327_v15 = vor.u32 %v7271_v4, %v6326_v16  ;;  %v7280_v16 = vld [vmem:[#allocation3 + $0x108] sm:$0xf0] }
 0x5cf   : > { %4994 = vmatmul.bf16.gmra.mxu2 %v6291_v33  ;;  %v4771_v33 = vadd.f32 %v9844_v49, %v9089_v53  ;;  %v9846_v53 = vld [vmem:[#allocation13_spill] sm:$0xff] }
 0x5d0   : > { %v4776_v49 = vadd.f32 %v9846_v53, %v9105_v30  ;;  %v7444_v30 = vld [vmem:[%s9775_s4 + $0x1a8] sm:$0xff]  ;;  %v4781_v53 = vadd.f32 %v8891_v25, %v9120_v50  ;;  %v4786_v50 = vadd.f32 %v8903_v31, %v9132_v26  ;;  %v7443_v31 = vld [vmem:[%s9775_s4 + $0x1a0] sm:$0xff] }
 0x5d1   : > { %5161 = vmatpush.bf16.msra.mxu2 %v7444_v30  ;;  %v6336_v30 = vld [vmem:[#allocation3 + $0xcc] sm:$0xf0] }
 0x5d2   : > { %v4857_v45 = vpop.f32.mrf.mxu2  ;;  %v9312_v34 = vpop.f32.mrf.mxu3 }
 0x5d3   : > { %v9307_v32 = vadd.f32 %v4857_v45, %v4769_v17  ;;  %9843 = vst [vmem:[#allocation10_spill] sm:$0xff] %v9312_v34  ;;  %v4774_v17 = vadd.f32 %v9845_v43, %v9098_v46  ;;  %v7250_v34 = vld [vmem:[#allocation3 + $0x1c] sm:$0xf]  ;;  %v4779_v46 = vadd.f32 %v8885_v60, %v9111_v59  ;;  %v7289_v60 = vld [vmem:[#allocation3 + $0x150] sm:$0xf0] }
 0x5d4   : > { %v6267_v9 = vor.u32 %v7250_v34, %v6264_v8  ;;  %v7259_v34 = vld [vmem:[#allocation3 + $0x64] sm:$0xf] }
 0x5d5   : > { %5162 = vmatpush.bf16.msra.mxu2 %v7443_v31 }
 0x5d7   : > { %5153 = vmatmul.bf16.gmra.mxu3 %v6799_v63 }
 0x5da   : > { %v4859_v37 = vpop.f32.mrf.mxu2  ;;  %v9318_v45 = vpop.f32.mrf.mxu3 }
 0x5db   : > { %v9316_v24 = vadd.f32 %v4859_v37, %v4771_v33  ;;  %v6362_v37 = vld [vmem:[#allocation3 + $0xe8] sm:$0xf] }
 0x5df   : > { %4999 = vmatmul.bf16.gmra.mxu2 %v6327_v15  ;;  %v6363_v15 = vor.u32 %v7280_v16, %v6362_v37 }
 0x5e2   : > { %v4862_v35 = vpop.f32.mrf.mxu2  ;;  %v9324_v63 = vpop.f32.mrf.mxu3 }
 0x5e3   : > { %v9322_v57 = vadd.f32 %v4862_v35, %v4774_v17  ;;  %v6300_v17 = vld [vmem:[#allocation3 + $0x84] sm:$0xf0] }
 0x5e7   : > { %5256 = vmatmul.bf16.vlgmr.msra.gmra.mxu3 %v6267_v9  ;;  %v6303_v9 = vor.u32 %v7259_v34, %v6300_v17 }
 0x5ea   : > { %v4864_v33 = vpop.f32.mrf.mxu2  ;;  %v9332_v43 = vpop.f32.mrf.mxu3 }
 0x5eb   : > { %v9328_v4 = vadd.f32 %v4864_v33, %v4776_v49  ;;  %v6398_v33 = vld [vmem:[#allocation3 + $0x130] sm:$0xf] }
 0x5ec   : > { %v6399_v16 = vor.u32 %v7289_v60, %v6398_v33 }
 0x5ef   : > { %5004 = vmatmul.bf16.gmra.mxu2 %v6363_v15  ;;  %v4784_v15 = vadd.f32 %v8897_v28, %v9126_v29  ;;  %v4789_v29 = vadd.f32 %v8911_v38, %v9136_v58  ;;  %v7307_v38 = vld [vmem:[#allocation3 + $0x1e0] sm:$0xf0] }
 0x5f2   : > { %v4867_v35 = vpop.f32.mrf.mxu2  ;;  %v9343_v37 = vpop.f32.mrf.mxu3 }
 0x5f3   : > { %v9334_v8 = vadd.f32 %v4867_v35, %v4779_v46  ;;  %9847 = vst [vmem:[#allocation11_spill] sm:$0xff] %v9343_v37  ;;  %v7268_v35 = vld [vmem:[#allocation3 + $0xac] sm:$0xf] }
 0x5f4   : > { %v6339_v25 = vor.u32 %v7268_v35, %v6336_v30  ;;  %v4791_v30 = vadd.f32 %v8918_v22, %v9143_v44  ;;  %v9852_v44 = vld [vmem:[#allocation14_spill] sm:$0xff] }
 0x5f5   : > { %v4796_v31 = vadd.f32 %v9852_v44, %v9151_v36  ;;  %v7442_v36 = vld [vmem:[%s9775_s4 + $0x198] sm:$0xff]  ;;  %v4801_v44 = vadd.f32 %v8945_v18, %v9162_v40 }
 0x5f6   : > { %5163 = vmatpush.bf16.msra.mxu2 %v7442_v36  ;;  %v9856_v18 = vld [vmem:[#allocation15_spill] sm:$0xff] }
 0x5f7   : > { %5261 = vmatmul.bf16.gmra.mxu3 %v6303_v9  ;;  %v4904_v40 = vadd.f32 %v9856_v18, %v9175_v47  ;;  %v7441_v47 = vld [vmem:[%s9775_s4 + $0x190] sm:$0xff]  ;;  %v9860_v18 = vld [vmem:[#allocation17_spill] sm:$0xff] }
 0x5fa   : > { %v4869_v49 = vpop.f32.mrf.mxu2  ;;  %v9349_v17 = vpop.f32.mrf.mxu3  ;;  %5164 = vmatpush.bf16.msra.mxu2 %v7441_v47 }
 0x5fb   : > { %v9341_v59 = vadd.f32 %v4869_v49, %v4781_v53  ;;  %9848 = vst [vmem:[#allocation12_spill] sm:$0xff] %v9349_v17  ;;  %v6434_v53 = vld [vmem:[#allocation3 + $0x178] sm:$0xf]  ;;  %v7298_v49 = vld [vmem:[#allocation3 + $0x198] sm:$0xf0] }
 0x5fc   : > { %v6435_v60 = vor.u32 %v7298_v49, %v6434_v53  ;;  %v4794_v49 = vadd.f32 %v8924_v10, %v9147_v61  ;;  %v4799_v10 = vadd.f32 %v8938_v20, %v9155_v0  ;;  %v7325_v20 = vld [vmem:[#allocation3 + $0x270] sm:$0xf0]  ;;  %v6804_v17 = vld [vmem:[#allocation3 + $0x474] sm:$0xf0] }
 0x5ff   : > { %5009 = vmatmul.bf16.gmra.mxu2 %v6399_v16 }
 0x602   : > { %v4872_v46 = vpop.f32.mrf.mxu2  ;;  %v9355_v28 = vpop.f32.mrf.mxu3 }
 0x603   : > { %v9347_v34 = vadd.f32 %v4872_v46, %v4784_v15  ;;  %9849 = vst [vmem:[#allocation13_spill] sm:$0xff] %v9355_v28  ;;  %v7277_v15 = vld [vmem:[#allocation3 + $0xf4] sm:$0xf]  ;;  %v6372_v46 = vld [vmem:[#allocation3 + $0x114] sm:$0xf0] }
 0x604   : > { %v6375_v26 = vor.u32 %v7277_v15, %v6372_v46  ;;  %v7263_v28 = vld [vmem:[#allocation3 + $0x80] sm:$0xf0] }
 0x607   : > { %5266 = vmatmul.bf16.gmra.mxu3 %v6339_v25 }
 0x60a   : > { %v4874_v9 = vpop.f32.mrf.mxu2  ;;  %v9366_v25 = vpop.f32.mrf.mxu3 }
 0x60b   : > { %v9353_v33 = vadd.f32 %v4874_v9, %v4786_v50  ;;  %9850 = vst [vmem:[#allocation55_spill] sm:$0xff] %v9366_v25  ;;  %v6470_v9 = vld [vmem:[#allocation3 + $0x1c0] sm:$0xf] }
 0x60c   : > { %v6471_v53 = vor.u32 %v7307_v38, %v6470_v9 }
 0x60f   : > { %5014 = vmatmul.bf16.gmra.mxu2 %v6435_v60 }
 0x612   : > { %v4877_v16 = vpop.f32.mrf.mxu2  ;;  %v9374_v46 = vpop.f32.mrf.mxu3 }
 0x613   : > { %v9359_v35 = vadd.f32 %v4877_v16, %v4789_v29  ;;  %v7286_v29 = vld [vmem:[#allocation3 + $0x13c] sm:$0xf]  ;;  %v6408_v16 = vld [vmem:[#allocation3 + $0x15c] sm:$0xf0]  ;;  %9851 = vst [vmem:[#allocation56_spill] sm:$0xff] %v9374_v46 }
 0x614   : > { %v6411_v22 = vor.u32 %v7286_v29, %v6408_v16  ;;  %v6732_v46 = vld [vmem:[#allocation3 + $0x3e4] sm:$0xf0] }
 0x617   : > { %5271 = vmatmul.bf16.gmra.mxu3 %v6375_v26 }
 0x61a   : > { %v4879_v50 = vpop.f32.mrf.mxu2 }
 0x61b   : > { %v9368_v58 = vadd.f32 %v4879_v50, %v4791_v30  ;;  %v6506_v30 = vld [vmem:[#allocation3 + $0x208] sm:$0xf]  ;;  %v7316_v50 = vld [vmem:[#allocation3 + $0x228] sm:$0xf0] }
 0x61c   : > { %v6507_v38 = vor.u32 %v7316_v50, %v6506_v30  ;;  %v4902_v50 = vadd.f32 %v8949_v27, %v9169_v21  ;;  %v9858_v21 = vld [vmem:[#allocation16_spill] sm:$0xff] }
 0x61f   : > { %5019 = vmatmul.bf16.gmra.mxu2 %v6471_v53  ;;  %v9380_v53 = vpop.f32.mrf.mxu3 }
 0x620   : > { %9853 = vst [vmem:[#allocation14_spill] sm:$0xff] %v9380_v53  ;;  %v7388_v53 = vld [vmem:[#allocation3 + $0x468] sm:$0xf0] }
 0x622   : > { %v4882_v60 = vpop.f32.mrf.mxu2 }
 0x623   : > { %v9372_v15 = vadd.f32 %v4882_v60, %v4794_v49  ;;  %v7295_v49 = vld [vmem:[#allocation3 + $0x184] sm:$0xf]  ;;  %v6444_v60 = vld [vmem:[#allocation3 + $0x1a4] sm:$0xf0] }
 0x624   : > { %v6447_v16 = vor.u32 %v7295_v49, %v6444_v60  ;;  %v6480_v49 = vld [vmem:[#allocation3 + $0x1ec] sm:$0xf0] }
 0x627   : > { %5276 = vmatmul.bf16.gmra.mxu3 %v6411_v22  ;;  %v9389_v22 = vpop.f32.mrf.mxu3 }
 0x628   : > { %9854 = vst [vmem:[#allocation57_spill] sm:$0xff] %v9389_v22  ;;  %v7358_v22 = vld [vmem:[#allocation3 + $0x37c] sm:$0xf] }
 0x62a   : > { %v4884_v26 = vpop.f32.mrf.mxu2 }
 0x62b   : > { %v9378_v9 = vadd.f32 %v4884_v26, %v4796_v31  ;;  %v6542_v26 = vld [vmem:[#allocation3 + $0x250] sm:$0xf] }
 0x62c   : > { %v6543_v30 = vor.u32 %v7325_v20, %v6542_v26 }
 0x62f   : > { %5024 = vmatmul.bf16.gmra.mxu2 %v6507_v38  ;;  %v9397_v38 = vpop.f32.mrf.mxu3 }
 0x630   : > { %9855 = vst [vmem:[#allocation58_spill] sm:$0xff] %v9397_v38 }
 0x632   : > { %v4887_v61 = vpop.f32.mrf.mxu2 }
 0x633   : > { %v9384_v29 = vadd.f32 %v4887_v61, %v4799_v10  ;;  %v7304_v61 = vld [vmem:[#allocation3 + $0x1cc] sm:$0xf] }
 0x634   : > { %v6483_v36 = vor.u32 %v7304_v61, %v6480_v49 }
 0x637   : > { %5281 = vmatmul.bf16.gmra.mxu3 %v6447_v16  ;;  %v9405_v20 = vpop.f32.mrf.mxu3 }
 0x638   : > { %9857 = vst [vmem:[#allocation15_spill] sm:$0xff] %v9405_v20  ;;  %v7322_v20 = vld [vmem:[#allocation3 + $0x25c] sm:$0xf] }
 0x63a   : > { %v4889_v31 = vpop.f32.mrf.mxu2 }
 0x63b   : > { %v9393_v0 = vadd.f32 %v4889_v31, %v4801_v44  ;;  %v6578_v44 = vld [vmem:[#allocation3 + $0x298] sm:$0xf]  ;;  %v7334_v31 = vld [vmem:[#allocation3 + $0x2b8] sm:$0xf0] }
 0x63c   : > { %v6579_v27 = vor.u32 %v7334_v31, %v6578_v44  ;;  %v6614_v44 = vld [vmem:[#allocation3 + $0x2e0] sm:$0xf] }
 0x63f   : > { %5029 = vmatmul.bf16.gmra.mxu2 %v6543_v30  ;;  %v4907_v30 = vadd.f32 %v9858_v21, %v9180_v54  ;;  %v9414_v49 = vpop.f32.mrf.mxu3  ;;  %v7343_v54 = vld [vmem:[#allocation3 + $0x300] sm:$0xf0]  ;;  %v9862_v21 = vld [vmem:[#allocation18_spill] sm:$0xff] }
 0x640   : > { %9859 = vst [vmem:[#allocation16_spill] sm:$0xff] %v9414_v49  ;;  %v6552_v49 = vld [vmem:[#allocation3 + $0x27c] sm:$0xf0] }
 0x642   : > { %v4990_v10 = vpop.f32.mrf.mxu2 }
 0x643   : > { %v9399_v60 = vadd.f32 %v4990_v10, %v4902_v50  ;;  %v7313_v50 = vld [vmem:[#allocation3 + $0x214] sm:$0xf]  ;;  %v6516_v10 = vld [vmem:[#allocation3 + $0x234] sm:$0xf0] }
 0x647   : > { %5286 = vmatmul.bf16.gmra.mxu3 %v6483_v36  ;;  %v6519_v36 = vor.u32 %v7313_v50, %v6516_v10  ;;  %v6555_v10 = vor.u32 %v7322_v20, %v6552_v49 }
 0x64a   : > { %v4992_v16 = vpop.f32.mrf.mxu2 }
 0x64b   : > { %v9403_v26 = vadd.f32 %v4992_v16, %v4904_v40  ;;  %v4909_v40 = vadd.f32 %v9860_v18, %v9189_v52  ;;  %v9863_v52 = vld [vmem:[#allocation19_spill] sm:$0xff] }
 0x64f   : > { %5034 = vmatmul.bf16.gmra.mxu2 %v6579_v27  ;;  %v6615_v27 = vor.u32 %v7343_v54, %v6614_v44  ;;  %v7352_v44 = vld [vmem:[#allocation3 + $0x348] sm:$0xf0] }
 0x652   : > { %v4995_v38 = vpop.f32.mrf.mxu2 }
 0x653   : > { %v9409_v61 = vadd.f32 %v4995_v38, %v4907_v30  ;;  %v9420_v38 = vpop.f32.mrf.mxu3  ;;  %v4912_v30 = vadd.f32 %v9862_v21, %v9194_v51  ;;  %v9865_v51 = vld [vmem:[#allocation20_spill] sm:$0xff] }
 0x654   : > { %9861 = vst [vmem:[#allocation17_spill] sm:$0xff] %v9420_v38  ;;  %v4917_v21 = vadd.f32 %v9865_v51, %v9205_v3  ;;  %v7361_v3 = vld [vmem:[#allocation3 + $0x390] sm:$0xf0] }
 0x655   : > { %v9869_v51 = vld [vmem:[#allocation22_spill] sm:$0xff] }
 0x657   : > { %5291 = vmatmul.bf16.gmra.mxu3 %v6519_v36  ;;  %v4914_v36 = vadd.f32 %v9863_v52, %v9200_v6  ;;  %v7440_v6 = vld [vmem:[%s9775_s4 + $0x188] sm:$0xff] }
 0x658   : > { %5165 = vmatpush.bf16.msra.mxu2 %v7440_v6  ;;  %v9867_v52 = vld [vmem:[#allocation21_spill] sm:$0xff]  ;;  %v6624_v6 = vld [vmem:[#allocation3 + $0x30c] sm:$0xf0] }
 0x65a   : > { %v4997_v16 = vpop.f32.mrf.mxu2 }
 0x65b   : > { %v9418_v31 = vadd.f32 %v4997_v16, %v4909_v40  ;;  %v9428_v18 = vpop.f32.mrf.mxu3  ;;  %v6650_v16 = vld [vmem:[#allocation3 + $0x328] sm:$0xf] }
 0x65c   : > { %9864 = vst [vmem:[#allocation18_spill] sm:$0xff] %v9428_v18 }
 0x65f   : > { %5039 = vmatmul.bf16.gmra.mxu2 %v6615_v27  ;;  %v6651_v27 = vor.u32 %v7352_v44, %v6650_v16  ;;  %v6686_v16 = vld [vmem:[#allocation3 + $0x370] sm:$0xf] }
 0x662   : > { %v5000_v47 = vpop.f32.mrf.mxu2 }
 0x663   : > { %v9424_v50 = vadd.f32 %v5000_v47, %v4912_v30  ;;  %v7331_v30 = vld [vmem:[#allocation3 + $0x2a4] sm:$0xf]  ;;  %v6588_v47 = vld [vmem:[#allocation3 + $0x2c4] sm:$0xf0]  ;;  %v9439_v49 = vpop.f32.mrf.mxu3 }
 0x664   : > { %9866 = vst [vmem:[#allocation19_spill] sm:$0xff] %v9439_v49  ;;  %v7340_v49 = vld [vmem:[#allocation3 + $0x2ec] sm:$0xf] }
 0x667   : > { %5296 = vmatmul.bf16.gmra.mxu3 %v6555_v10  ;;  %v6591_v10 = vor.u32 %v7331_v30, %v6588_v47  ;;  %v6627_v47 = vor.u32 %v7340_v49, %v6624_v6  ;;  %v7349_v49 = vld [vmem:[#allocation3 + $0x334] sm:$0xf] }
 0x66a   : > { %v5002_v40 = vpop.f32.mrf.mxu2 }
 0x66b   : > { %v9430_v54 = vadd.f32 %v5002_v40, %v4914_v36  ;;  %v4919_v36 = vadd.f32 %v9867_v52, %v9214_v14  ;;  %v9871_v14 = vld [vmem:[#allocation23_spill] sm:$0xff] }
 0x66c   : > { %v4924_v52 = vadd.f32 %v9871_v14, %v9225_v1  ;;  %v7439_v1 = vld [vmem:[%s9775_s4 + $0x180] sm:$0xff]  ;;  %v9873_v14 = vld [vmem:[#allocation26_spill] sm:$0xff] }
 0x66d   : > { %5166 = vmatpush.bf16.msra.mxu2 %v7439_v1  ;;  %v6696_v1 = vld [vmem:[#allocation3 + $0x39c] sm:$0xf0] }
 0x66f   : > { %5044 = vmatmul.bf16.gmra.mxu2 %v6651_v27  ;;  %v6687_v27 = vor.u32 %v7361_v3, %v6686_v16  ;;  %v7370_v16 = vld [vmem:[#allocation3 + $0x3d8] sm:$0xf0] }
 0x672   : > { %v5005_v38 = vpop.f32.mrf.mxu2 }
 0x673   : > { %v9434_v20 = vadd.f32 %v5005_v38, %v4917_v21  ;;  %v9445_v38 = vpop.f32.mrf.mxu3  ;;  %v4922_v21 = vadd.f32 %v9869_v51, %v9219_v55  ;;  %v9872_v55 = vld [vmem:[#allocation24_spill] sm:$0xff] }
 0x674   : > { %9868 = vst [vmem:[#allocation20_spill] sm:$0xff] %v9445_v38  ;;  %v4927_v51 = vadd.f32 %v9872_v55, %v9231_v7  ;;  %v7379_v7 = vld [vmem:[#allocation3 + $0x420] sm:$0xf0] }
 0x677   : > { %5301 = vmatmul.bf16.gmra.mxu3 %v6591_v10 }
 0x67a   : > { %v5007_v40 = vpop.f32.mrf.mxu2 }
 0x67b   : > { %v9443_v44 = vadd.f32 %v5007_v40, %v4919_v36  ;;  %v9451_v10 = vpop.f32.mrf.mxu3  ;;  %v6722_v40 = vld [vmem:[#allocation3 + $0x3b8] sm:$0xf] }
 0x67c   : > { %9870 = vst [vmem:[#allocation21_spill] sm:$0xff] %v9451_v10 }
 0x67f   : > { %5049 = vmatmul.bf16.gmra.mxu2 %v6687_v27  ;;  %v6723_v27 = vor.u32 %v7370_v16, %v6722_v40  ;;  %v6758_v40 = vld [vmem:[#allocation3 + $0x400] sm:$0xf] }
 0x680   : > { %v6759_v55 = vor.u32 %v7379_v7, %v6758_v40 }
 0x682   : > { %v5010_v18 = vpop.f32.mrf.mxu2 }
 0x683   : > { %v9449_v30 = vadd.f32 %v5010_v18, %v4922_v21  ;;  %v9459_v38 = vpop.f32.mrf.mxu3  ;;  %v6660_v21 = vld [vmem:[#allocation3 + $0x354] sm:$0xf0] }
 0x687   : > { %5306 = vmatmul.bf16.gmra.mxu3 %v6627_v47  ;;  %v6663_v47 = vor.u32 %v7349_v49, %v6660_v21 }
 0x68a   : > { %v5012_v36 = vpop.f32.mrf.mxu2 }
 0x68b   : > { %v9455_v3 = vadd.f32 %v5012_v36, %v4924_v52  ;;  %v4929_v52 = vadd.f32 %v9873_v14, %v9240_v62  ;;  %v6699_v62 = vor.u32 %v7358_v22, %v6696_v1  ;;  %v2959_v1 = vld [vmem:[#allocation2 + $0x280] sm:$0xf] }
 0x68c   : > { %2991 = vst [vmem:[#allocation3 + $0x18] sm:$0xf] %v2959_v1  ;;  %v7376_v1 = vld [vmem:[#allocation3 + $0x40c] sm:$0xf] }
 0x68f   : > { %5054 = vmatmul.bf16.gmra.mxu2 %v6723_v27  ;;  %v9470_v27 = vpop.f32.mrf.mxu3 }
 0x692   : > { %v5015_v18 = vpop.f32.mrf.mxu2 }
 0x693   : > { %v9461_v6 = vadd.f32 %v5015_v18, %v4927_v51  ;;  %v9874_v51 = vld [vmem:[#allocation28_spill] sm:$0xff] }
 0x694   : > { %v4932_v18 = vadd.f32 %v9874_v51, %v9246_v41  ;;  %v7367_v51 = vld [vmem:[#allocation3 + $0x3c4] sm:$0xf] }
 0x697   : > { %5311 = vmatmul.bf16.gmra.mxu3 %v6663_v47  ;;  %v9476_v21 = vpop.f32.mrf.mxu3  ;;  %v9875_v47 = vld [vmem:[#allocation30_spill] sm:$0xff] }
 0x698   : > { %v4934_v14 = vadd.f32 %v9875_v47, %v9255_v19  ;;  %v6735_v19 = vor.u32 %v7367_v51, %v6732_v46  ;;  %v9877_v47 = vld [vmem:[#allocation33_spill] sm:$0xff] }
 0x69a   : > { %v5017_v36 = vpop.f32.mrf.mxu2 }
 0x69b   : > { %v9468_v16 = vadd.f32 %v5017_v36, %v4929_v52  ;;  %v6794_v36 = vld [vmem:[#allocation3 + $0x448] sm:$0xf] }
 0x69c   : > { %v6795_v7 = vor.u32 %v7388_v53, %v6794_v36  ;;  %v4939_v53 = vadd.f32 %v9877_v47, %v9282_v2 }
 0x69f   : > { %5059 = vmatmul.bf16.gmra.mxu2 %v6759_v55  ;;  %v9482_v41 = vpop.f32.mrf.mxu3  ;;  %v9876_v55 = vld [vmem:[#allocation31_spill] sm:$0xff] }
 0x6a2   : > { %v5020_v10 = vpop.f32.mrf.mxu2 }
 0x6a3   : > { %v9474_v49 = vadd.f32 %v5020_v10, %v4932_v18  ;;  %v4937_v10 = vadd.f32 %v9876_v55, %v9267_v13  ;;  %v6262_v13 = vld [vmem:[#allocation3 + $0x18] sm:$0xf] }
 0x6a7   : > { %5316 = vmatmul.bf16.gmra.mxu3 %v6699_v62  ;;  %v2960_v62 = vld [vmem:[#allocation2 + $0x284] sm:$0xf] }
 0x6a8   : > { %2992 = vst [vmem:[#allocation3 + $0x3c] sm:$0xf] %v2960_v62  ;;  %v6768_v62 = vld [vmem:[#allocation3 + $0x42c] sm:$0xf0] }
 0x6a9   : > { %v6771_v2 = vor.u32 %v7376_v1, %v6768_v62 }
 0x6aa   : > { %v5022_v52 = vpop.f32.mrf.mxu2 }
 0x6ab   : > { %v9480_v40 = vadd.f32 %v5022_v52, %v4934_v14  ;;  %v9490_v14 = vpop.f32.mrf.mxu3 }
 0x6af   : > { %5064 = vmatmul.bf16.gmra.mxu2 %v6795_v7  ;;  %v7254_v7 = vld [vmem:[#allocation3 + $0x38] sm:$0xf0] }
 0x6b0   : > { %v6263_v55 = vor.u32 %v7254_v7, %v6262_v13 }
 0x6b2   : > { %v5025_v18 = vpop.f32.mrf.mxu2 }
 0x6b3   : > { %v9486_v22 = vadd.f32 %v5025_v18, %v4937_v10  ;;  %v9878_v10 = vld [vmem:[#allocation35_spill] sm:$0xff]  ;;  %v9498_v51 = vpop.f32.mrf.mxu3 }
 0x6b4   : > { %v4942_v18 = vadd.f32 %v9878_v10, %v9294_v56  ;;  %v9880_v56 = vld [vmem:[#allocation39_spill] sm:$0xff] }
 0x6b7   : > { %5321 = vmatmul.bf16.gmra.mxu3 %v6735_v19  ;;  %v9879_v19 = vld [vmem:[#allocation37_spill] sm:$0xff] }
 0x6b8   : > { %v4944_v47 = vadd.f32 %v9879_v19, %v9303_v23  ;;  %v9882_v23 = vld [vmem:[#allocation40_spill] sm:$0xff] }
 0x6b9   : > { %v4949_v19 = vadd.f32 %v9882_v23, %v9316_v24 }
 0x6ba   : > { %v5027_v52 = vpop.f32.mrf.mxu2 }
 0x6bb   : > { %v9492_v36 = vadd.f32 %v5027_v52, %v4939_v53  ;;  %v6298_v52 = vld [vmem:[#allocation3 + $0x60] sm:$0xf] }
 0x6bc   : > { %v6299_v7 = vor.u32 %v7263_v28, %v6298_v52  ;;  %v6334_v28 = vld [vmem:[#allocation3 + $0xa8] sm:$0xf] }
 0x6bf   : > { %5167 = vmatmul.bf16.vlgmr.msra.gmra.mxu2 %v6263_v55  ;;  %v9504_v55 = vpop.f32.mrf.mxu3 }
 0x6c2   : > { %v5030_v25 = vpop.f32.mrf.mxu2 }
 0x6c3   : > { %v9496_v46 = vadd.f32 %v5030_v25, %v4942_v18  ;;  %v4947_v25 = vadd.f32 %v9880_v56, %v9307_v32  ;;  %v7385_v18 = vld [vmem:[#allocation3 + $0x454] sm:$0xf] }
 0x6c4   : > { %v6807_v62 = vor.u32 %v7385_v18, %v6804_v17  ;;  %v9883_v32 = vld [vmem:[#allocation42_spill] sm:$0xff]  ;;  %v9884_v17 = vld [vmem:[#allocation43_spill] sm:$0xff] }
 0x6c5   : > { %v4952_v56 = vadd.f32 %v9883_v32, %v9322_v57  ;;  %v2967_v57 = vld [vmem:[#allocation2 + $0x2a8] sm:$0xf] }
 0x6c6   : > { %2999 = vst [vmem:[#allocation3 + $0x138] sm:$0xf] %v2967_v57  ;;  %v6442_v57 = vld [vmem:[#allocation3 + $0x180] sm:$0xf] }
 0x6c7   : > { %5326 = vmatmul.bf16.gmra.mxu3 %v6771_v2  ;;  %v9510_v2 = vpop.f32.mrf.mxu3 }
 0x6ca   : > { %v5032_v53 = vpop.f32.mrf.mxu2 }
 0x6cb   : > { %v9502_v13 = vadd.f32 %v5032_v53, %v4944_v47  ;;  %v7272_v53 = vld [vmem:[#allocation3 + $0xc8] sm:$0xf0] }
 0x6cf   : > { %5172 = vmatmul.bf16.gmra.mxu2 %v6299_v7  ;;  %v6335_v7 = vor.u32 %v7272_v53, %v6334_v28 }
 0x6d2   : > { %v5035_v10 = vpop.f32.mrf.mxu2 }
 0x6d3   : > { %v9508_v1 = vadd.f32 %v5035_v10, %v4947_v25  ;;  %v4954_v10 = vadd.f32 %v9884_v17, %v9328_v4  ;;  %v6406_v17 = vld [vmem:[#allocation3 + $0x138] sm:$0xf] }
 0x6d5   : > { %9881 = vst [vmem:[#allocation22_spill] sm:$0xff] %v9508_v1  ;;  %v7281_v1 = vld [vmem:[#allocation3 + $0x110] sm:$0xf0] }
 0x6d7   : > { %5331 = vmatmul.bf16.gmra.mxu3 %v6807_v62  ;;  %v6370_v62 = vld [vmem:[#allocation3 + $0xf0] sm:$0xf] }
 0x6d8   : > { %v6371_v23 = vor.u32 %v7281_v1, %v6370_v62 }
 0x6da   : > { %v5037_v47 = vpop.f32.mrf.mxu2 }
 0x6db   : > { %v9514_v52 = vadd.f32 %v5037_v47, %v4949_v19  ;;  %v9885_v19 = vld [vmem:[#allocation44_spill] sm:$0xff] }
 0x6dc   : > { %v4957_v47 = vadd.f32 %v9885_v19, %v9334_v8  ;;  %v9888_v19 = vld [vmem:[#allocation47_spill] sm:$0xff] }
 0x6df   : > { %5177 = vmatmul.bf16.gmra.mxu2 %v6335_v7  ;;  %v2968_v7 = vld [vmem:[#allocation2 + $0x2ac] sm:$0xf] }
 0x6e0   : > { %3000 = vst [vmem:[#allocation3 + $0x15c] sm:$0xf] %v2968_v7  ;;  %v7299_v7 = vld [vmem:[#allocation3 + $0x1a0] sm:$0xf0] }
 0x6e2   : > { %v5040_v37 = vpop.f32.mrf.mxu2 }
 0x6e3   : > { %v9518_v25 = vadd.f32 %v5040_v37, %v4952_v56  ;;  %v9886_v37 = vld [vmem:[#allocation45_spill] sm:$0xff] }
 0x6e4   : > { %v4959_v4 = vadd.f32 %v9886_v37, %v9341_v59  ;;  %v6443_v37 = vor.u32 %v7299_v7, %v6442_v57 }
 0x6ea   : > { %v5042_v18 = vpop.f32.mrf.mxu2 }
 0x6eb   : > { %v9522_v24 = vadd.f32 %v5042_v18, %v4954_v10  ;;  %v7290_v10 = vld [vmem:[#allocation3 + $0x158] sm:$0xf0]  ;;  %v9887_v18 = vld [vmem:[#allocation46_spill] sm:$0xff] }
 0x6ec   : > { %v6407_v1 = vor.u32 %v7290_v10, %v6406_v17  ;;  %v4962_v8 = vadd.f32 %v9887_v18, %v9347_v34  ;;  %v9890_v34 = vld [vmem:[#allocation49_spill] sm:$0xff] }
 0x6ef   : > { %5182 = vmatmul.bf16.gmra.mxu2 %v6371_v23 }
 0x6f2   : > { %v5045_v28 = vpop.f32.mrf.mxu2 }
 0x6f3   : > { %v9526_v53 = vadd.f32 %v5045_v28, %v4957_v47  ;;  %v4964_v47 = vadd.f32 %v9888_v19, %v9353_v33 }
 0x6fa   : > { %v5047_v32 = vpop.f32.mrf.mxu2 }
 0x6fb   : > { %v9530_v56 = vadd.f32 %v5047_v32, %v4959_v4  ;;  %v9889_v4 = vld [vmem:[#allocation48_spill] sm:$0xff] }
 0x6fc   : > { %v4967_v32 = vadd.f32 %v9889_v4, %v9359_v35  ;;  %v9891_v35 = vld [vmem:[#allocation50_spill] sm:$0xff] }
 0x6fd   : > { %v4974_v7 = vadd.f32 %v9891_v35, %v9378_v9  ;;  %v6514_v4 = vld [vmem:[#allocation3 + $0x210] sm:$0xf]  ;;  %v9892_v9 = vld [vmem:[#allocation51_spill] sm:$0xff] }
 0x6ff   : > { %5187 = vmatmul.bf16.gmra.mxu2 %v6407_v1  ;;  %v4969_v1 = vadd.f32 %v9890_v34, %v9368_v58  ;;  %v4977_v34 = vadd.f32 %v9187_v42, %v9384_v29  ;;  %v5080_v42 = vadd.f32 %v9198_v11, %v9399_v60 }
 0x702   : > { %v5050_v62 = vpop.f32.mrf.mxu2 }
 0x703   : > { %v9534_v23 = vadd.f32 %v5050_v62, %v4962_v8  ;;  %v6478_v8 = vld [vmem:[#allocation3 + $0x1c8] sm:$0xf]  ;;  %v7308_v62 = vld [vmem:[#allocation3 + $0x1e8] sm:$0xf0] }
 0x704   : > { %v6479_v19 = vor.u32 %v7308_v62, %v6478_v8  ;;  %v4979_v8 = vadd.f32 %v9892_v9, %v9393_v0  ;;  %v9573_v0 = vld [vmem:[%s9776_s5] ss:$0 sm:$0xff] }
 0x70a   : > { %v5052_v28 = vpop.f32.mrf.mxu2 }
 0x70b   : > { %v9538_v59 = vadd.f32 %v5052_v28, %v4964_v47  ;;  %v4972_v47 = vadd.f32 %v9173_v39, %v9372_v15  ;;  %v2975_v39 = vld [vmem:[#allocation2 + $0x2d0] sm:$0xf]  ;;  %v2976_v15 = vld [vmem:[#allocation2 + $0x2d4] sm:$0xf] }
 0x70c   : > { %3007 = vst [vmem:[#allocation3 + $0x258] sm:$0xf] %v2975_v39  ;;  %v6586_v39 = vld [vmem:[#allocation3 + $0x2a0] sm:$0xf] }
 0x70d   : > { %3008 = vst [vmem:[#allocation3 + $0x27c] sm:$0xf] %v2976_v15  ;;  %v7335_v15 = vld [vmem:[#allocation3 + $0x2c0] sm:$0xf0] }
 0x70f   : > { %5192 = vmatmul.bf16.gmra.mxu2 %v6443_v37 }
 0x712   : > { %v5055_v17 = vpop.f32.mrf.mxu2 }
 0x713   : > { %v9542_v10 = vadd.f32 %v5055_v17, %v4967_v32  ;;  %v7317_v32 = vld [vmem:[#allocation3 + $0x230] sm:$0xf0] }
 0x714   : > { %v6515_v17 = vor.u32 %v7317_v32, %v6514_v4  ;;  %v9893_v4 = vld [vmem:[#allocation25_spill] sm:$0xff] }
 0x71a   : > { %v5057_v18 = vpop.f32.mrf.mxu2 }
 0x71b   : > { %v9546_v33 = vadd.f32 %v5057_v18, %v4969_v1 }
 0x71f   : > { %5197 = vmatmul.bf16.gmra.mxu2 %v6479_v19 }
 0x722   : > { %v5060_v28 = vpop.f32.mrf.mxu2 }
 0x723   : > { %v9550_v57 = vadd.f32 %v5060_v28, %v4972_v47  ;;  %v6550_v47 = vld [vmem:[#allocation3 + $0x258] sm:$0xf]  ;;  %v7326_v28 = vld [vmem:[#allocation3 + $0x278] sm:$0xf0] }
 0x724   : > { %v6551_v35 = vor.u32 %v7326_v28, %v6550_v47 }
 0x72a   : > { %v5062_v37 = vpop.f32.mrf.mxu2 }
 0x72b   : > { %v9554_v58 = vadd.f32 %v5062_v37, %v4974_v7 }
 0x72f   : > { %5202 = vmatmul.bf16.gmra.mxu2 %v6515_v17  ;;  %v9894_v17 = vld [vmem:[#allocation52_spill] sm:$0xff] }
 0x732   : > { %v5065_v1 = vpop.f32.mrf.mxu2 }
 0x733   : > { %v9558_v18 = vadd.f32 %v5065_v1, %v4977_v34  ;;  %v5082_v34 = vadd.f32 %v9894_v17, %v9403_v26 }
 0x73a   : > { %v5067_v62 = vpop.f32.mrf.mxu2 }
 0x73b   : > { %v9562_v19 = vadd.f32 %v5067_v62, %v4979_v8  ;;  %v6587_v8 = vor.u32 %v7335_v15, %v6586_v39  ;;  %v9895_v62 = vld [vmem:[#allocation27_spill] sm:$0xff]  ;;  %v6622_v15 = vld [vmem:[#allocation3 + $0x2e8] sm:$0xf] }
 0x73f   : > { %5207 = vmatmul.bf16.gmra.mxu2 %v6551_v35  ;;  %v5085_v35 = vadd.f32 %v9212_v5, %v9409_v61  ;;  %v9896_v5 = vld [vmem:[#allocation29_spill] sm:$0xff] }
 0x742   : > { %v5168_v29 = vpop.f32.mrf.mxu2 }
 0x743   : > { %v5169_v7 = vadd.f32 %v5168_v29, %v5080_v42 }
 0x745   : > { %v5258_v37 = vadd.f32 %v9459_v38, %v5169_v7  ;;  %v9581_v38 = vld [vmem:[%s9777_s6] ss:$0 sm:$0xff] }
 0x747   : > { %v5347_v32 = vadd.f32 %v9893_v4, %v5258_v37 }
 0x749   : > { %v5430_v60 = vmul.f32 %v9573_v0, %v5347_v32  ;;  %v9591_v32 = vpop.f32.mrf.mxu3 }
 0x74a   : > { %v5170_v1 = vpop.f32.mrf.mxu2 }
 0x74b   : > { %v5171_v11 = vadd.f32 %v5170_v1, %v5082_v34  ;;  %v5466_v26 = vadd.f32 %v9581_v38, %v5430_v60  ;;  %v9598_v34 = vpop.f32.mrf.mxu0  ;;  %v5087_v1 = vadd.f32 %v9216_v12, %v9418_v31  ;;  %v5090_v12 = vadd.f32 %v9223_v48, %v9424_v50 }
 0x74d   : > { %v5260_v9 = vadd.f32 %v9470_v27, %v5171_v11  ;;  %v5498_v37 = vmax.f32 %v5466_v26, 0.0 }
 0x74f   : > { %v5349_v47 = vadd.f32 %v9895_v62, %v5260_v9  ;;  %5212 = vmatmul.bf16.gmra.mxu2 %v6587_v8  ;;  %v9897_v62 = vld [vmem:[#allocation32_spill] sm:$0xff] }
 0x751   : > { %v5431_v28 = vmul.f32 %v9573_v0, %v5349_v47  ;;  %v9607_v26 = vpop.f32.mrf.mxu3 }
 0x752   : > { %v5173_v42 = vpop.f32.mrf.mxu2 }
 0x753   : > { %v5467_v29 = vadd.f32 %v9581_v38, %v5431_v28  ;;  %v5174_v7 = vadd.f32 %v5173_v42, %v5085_v35  ;;  %v9613_v31 = vpop.f32.mrf.mxu0 }
 0x755   : > { %v5499_v4 = vmax.f32 %v5467_v29, 0.0  ;;  %v5263_v27 = vadd.f32 %v9476_v21, %v5174_v7  ;;  %v7344_v21 = vld [vmem:[#allocation3 + $0x308] sm:$0xf0] }
 0x756   : > { %v6623_v8 = vor.u32 %v7344_v21, %v6622_v15  ;;  %v2984_v15 = vld [vmem:[#allocation2 + $0x2fc] sm:$0xf]  ;;  %v6658_v21 = vld [vmem:[#allocation3 + $0x330] sm:$0xf] }
 0x757   : > { %v7786_v17 = vpack.c.bf16 %v5499_v4, %v5498_v37  ;;  %v5352_v61 = vadd.f32 %v9896_v5, %v5263_v27  ;;  %3016 = vst [vmem:[#allocation3 + $0x39c] sm:$0xf] %v2984_v15 }
 0x759   : > { %7787 = vst [vmem:[%s9596_s29] sm:$0xff] %v7786_v17   ;;  %v5432_v60 = vmul.f32 %v9573_v0, %v5352_v61  ;;  %v9898_v17 = vld [vmem:[#allocation34_spill] sm:$0xff]  ;;  %v9899_v61 = vld [vmem:[#allocation53_spill] sm:$0xff]  ;;  %v9621_v48 = vpop.f32.mrf.mxu3 }
 0x75a   : > { %v5175_v39 = vpop.f32.mrf.mxu2 }
 0x75b   : > { %v5176_v11 = vadd.f32 %v5175_v39, %v5087_v1  ;;  %v5468_v28 = vadd.f32 %v9581_v38, %v5432_v60  ;;  %v5092_v1 = vadd.f32 %v9899_v61, %v9430_v54  ;;  %v2983_v39 = vld [vmem:[#allocation2 + $0x2f8] sm:$0xf] }
 0x75c   : > { %3015 = vst [vmem:[#allocation3 + $0x378] sm:$0xf] %v2983_v39  ;;  %v9902_v39 = vld [vmem:[#allocation38_spill] sm:$0xff] }
 0x75d   : > { %v5265_v9 = vadd.f32 %v9482_v41, %v5176_v11  ;;  %v5500_v7 = vmax.f32 %v5468_v28, 0.0  ;;  %v7353_v11 = vld [vmem:[#allocation3 + $0x350] sm:$0xf0] }
 0x75f   : > { %v5354_v47 = vadd.f32 %v9897_v62, %v5265_v9  ;;  %5217 = vmatmul.bf16.gmra.mxu2 %v6623_v8  ;;  %v9623_v9 = vpop.f32.mrf.mxu0  ;;  %v6659_v62 = vor.u32 %v7353_v11, %v6658_v21 }
 0x761   : > { %v5433_v35 = vmul.f32 %v9573_v0, %v5354_v47  ;;  %v9900_v47 = vld [vmem:[#allocation36_spill] sm:$0xff] }
 0x762   : > { %v5178_v42 = vpop.f32.mrf.mxu2 }
 0x763   : > { %v5469_v29 = vadd.f32 %v9581_v38, %v5433_v35  ;;  %v5179_v41 = vadd.f32 %v5178_v42, %v5090_v12  ;;  %v9901_v12 = vld [vmem:[#allocation54_spill] sm:$0xff]  ;;  %v6694_v61 = vld [vmem:[#allocation3 + $0x378] sm:$0xf] }
 0x764   : > { %v5095_v42 = vadd.f32 %v9901_v12, %v9434_v20  ;;  %v9903_v20 = vld [vmem:[#allocation4_spill] sm:$0xff] }
 0x765   : > { %v5501_v37 = vmax.f32 %v5469_v29, 0.0  ;;  %v5268_v4 = vadd.f32 %v9490_v14, %v5179_v41 }
 0x767   : > { %v7791_v27 = vpack.c.bf16 %v5501_v37, %v5500_v7  ;;  %v5357_v5 = vadd.f32 %v9898_v17, %v5268_v4  ;;  %v9633_v37 = vpop.f32.mrf.mxu3  ;;  %v9636_v17 = vpop.f32.mrf.mxu0 }
 0x769   : > { %7926 = vst [vmem:[%s9596_s29 + $0x8] sm:$0xff] %v7791_v27   ;;  %v5434_v14 = vmul.f32 %v9573_v0, %v5357_v5 }
 0x76a   : > { %v5180_v50 = vpop.f32.mrf.mxu2 }
 0x76b   : > { %v5181_v60 = vadd.f32 %v5180_v50, %v5092_v1  ;;  %v5470_v54 = vadd.f32 %v9581_v38, %v5434_v14  ;;  %v7362_v1 = vld [vmem:[#allocation3 + $0x398] sm:$0xf0]  ;;  %v5097_v50 = vadd.f32 %v9903_v20, %v9443_v44  ;;  %v9905_v44 = vld [vmem:[#allocation5_spill] sm:$0xff]  ;;  %v6730_v20 = vld [vmem:[#allocation3 + $0x3c0] sm:$0xf] }
 0x76c   : > { %v5100_v12 = vadd.f32 %v9905_v44, %v9449_v30  ;;  %v7371_v30 = vld [vmem:[#allocation3 + $0x3e0] sm:$0xf0] }
 0x76d   : > { %v5270_v8 = vadd.f32 %v9498_v51, %v5181_v60  ;;  %v5502_v4 = vmax.f32 %v5470_v54, 0.0  ;;  %v6695_v60 = vor.u32 %v7362_v1, %v6694_v61  ;;  %v9906_v61 = vld [vmem:[#allocation6_spill] sm:$0xff] }
 0x76e   : > { %v5102_v1 = vadd.f32 %v9906_v61, %v9455_v3  ;;  %v9907_v3 = vld [vmem:[#allocation7_spill] sm:$0xff] }
 0x76f   : > { %v5359_v28 = vadd.f32 %v9900_v47, %v5270_v8  ;;  %5222 = vmatmul.bf16.gmra.mxu2 %v6659_v62  ;;  %v9904_v62 = vld [vmem:[#allocation41_spill] sm:$0xff] }
 0x771   : > { %v5435_v35 = vmul.f32 %v9573_v0, %v5359_v28  ;;  %v9645_v28 = vpop.f32.mrf.mxu0 }
 0x772   : > { %v5183_v29 = vpop.f32.mrf.mxu2 }
 0x773   : > { %v5471_v41 = vadd.f32 %v9581_v38, %v5435_v35  ;;  %v5184_v7 = vadd.f32 %v5183_v29, %v5095_v42 }
 0x775   : > { %v5503_v51 = vmax.f32 %v5471_v41, 0.0  ;;  %v5273_v27 = vadd.f32 %v9504_v55, %v5184_v7  ;;  %v5287_v55 = vpop.f32.mrf.mxu3 }
 0x777   : > { %v7796_v5 = vpack.c.bf16 %v5503_v51, %v5502_v4  ;;  %v5362_v15 = vadd.f32 %v9902_v39, %v5273_v27 }
 0x779   : > { %7927 = vst [vmem:[%s9596_s29 + $0x10] sm:$0xff] %v7796_v5   ;;  %v5436_v14 = vmul.f32 %v9573_v0, %v5362_v15  ;;  %v5378_v39 = vpop.f32.mrf.mxu0 }
 0x77a   : > { %v5185_v21 = vpop.f32.mrf.mxu2 }
 0x77b   : > { %v5186_v11 = vadd.f32 %v5185_v21, %v5097_v50  ;;  %v5472_v54 = vadd.f32 %v9581_v38, %v5436_v14 }
 0x77d   : > { %v5275_v8 = vadd.f32 %v9510_v2, %v5186_v11  ;;  %v5504_v7 = vmax.f32 %v5472_v54, 0.0  ;;  %v5289_v27 = vpop.f32.mrf.mxu3 }
 0x77f   : > { %v5364_v47 = vadd.f32 %v9904_v62, %v5275_v8  ;;  %5227 = vmatmul.bf16.gmra.mxu2 %v6695_v60  ;;  %v6731_v60 = vor.u32 %v7371_v30, %v6730_v20  ;;  %v5105_v8 = vadd.f32 %v9907_v3, %v9461_v6  ;;  %v7380_v6 = vld [vmem:[#allocation3 + $0x428] sm:$0xf0] }
 0x781   : > { %v5437_v35 = vmul.f32 %v9573_v0, %v5364_v47  ;;  %v5381_v44 = vpop.f32.mrf.mxu0 }
 0x782   : > { %v5188_v42 = vpop.f32.mrf.mxu2 }
 0x783   : > { %v5473_v29 = vadd.f32 %v9581_v38, %v5437_v35  ;;  %v5189_v41 = vadd.f32 %v5188_v42, %v5100_v12 }
 0x785   : > { %v5505_v2 = vmax.f32 %v5473_v29, 0.0  ;;  %v5278_v4 = vadd.f32 %v9591_v32, %v5189_v41  ;;  %v5292_v62 = vpop.f32.mrf.mxu3  ;;  %v9908_v41 = vld [vmem:[#allocation8_spill] sm:$0xff] }
 0x787   : > { %v7801_v51 = vpack.c.bf16 %v5505_v2, %v5504_v7  ;;  %v5367_v5 = vadd.f32 %v9598_v34, %v5278_v4  ;;  %v5107_v7 = vadd.f32 %v9908_v41, %v9468_v16  ;;  %v6766_v4 = vld [vmem:[#allocation3 + $0x408] sm:$0xf] }
 0x788   : > { %v9909_v16 = vld [vmem:[#allocation9_spill] sm:$0xff] }
 0x789   : > { %7928 = vst [vmem:[%s9596_s29 + $0x18] sm:$0xff] %v7801_v51   ;;  %v5438_v21 = vmul.f32 %v9573_v0, %v5367_v5  ;;  %v5383_v20 = vpop.f32.mrf.mxu0 }
 0x78a   : > { %v5190_v15 = vpop.f32.mrf.mxu2 }
 0x78b   : > { %v5191_v50 = vadd.f32 %v5190_v15, %v5102_v1  ;;  %v5474_v14 = vadd.f32 %v9581_v38, %v5438_v21  ;;  %v6767_v15 = vor.u32 %v7380_v6, %v6766_v4 }
 0x78d   : > { %v5280_v11 = vadd.f32 %v9607_v26, %v5191_v50  ;;  %v5506_v12 = vmax.f32 %v5474_v14, 0.0  ;;  %v5294_v5 = vpop.f32.mrf.mxu3  ;;  %v5110_v50 = vadd.f32 %v9909_v16, %v9474_v49 }
 0x78f   : > { %v5369_v32 = vadd.f32 %v9613_v31, %v5280_v11  ;;  %5232 = vmatmul.bf16.gmra.mxu2 %v6731_v60 }
 0x791   : > { %v5439_v34 = vmul.f32 %v9573_v0, %v5369_v32 }
 0x792   : > { %v5193_v47 = vpop.f32.mrf.mxu2 }
 0x793   : > { %v5475_v54 = vadd.f32 %v9581_v38, %v5439_v34  ;;  %v5194_v35 = vadd.f32 %v5193_v47, %v5105_v8  ;;  %v5386_v8 = vpop.f32.mrf.mxu0  ;;  %v9910_v47 = vld [vmem:[#allocation10_spill] sm:$0xff] }
 0x795   : > { %v5507_v26 = vmax.f32 %v5475_v54, 0.0  ;;  %v5283_v42 = vadd.f32 %v9621_v48, %v5194_v35  ;;  %v5297_v34 = vpop.f32.mrf.mxu3  ;;  %v5112_v54 = vadd.f32 %v9910_v47, %v9480_v40 }
 0x797   : > { %v7806_v29 = vpack.c.bf16 %v5507_v26, %v5506_v12  ;;  %v5372_v31 = vadd.f32 %v9623_v9, %v5283_v42  ;;  %v6802_v12 = vld [vmem:[#allocation3 + $0x450] sm:$0xf]  ;;  %v7389_v26 = vld [vmem:[#allocation3 + $0x470] sm:$0xf0] }
 0x799   : > { %7929 = vst [vmem:[%s9596_s29 + $0x20] sm:$0xff] %v7806_v29   ;;  %v5440_v61 = vmul.f32 %v9573_v0, %v5372_v31  ;;  %v6803_v31 = vor.u32 %v7389_v26, %v6802_v12 }
 0x79a   : > { %v5195_v2 = vpop.f32.mrf.mxu2 }
 0x79b   : > { %v5196_v51 = vadd.f32 %v5195_v2, %v5107_v7  ;;  %v5476_v9 = vadd.f32 %v9581_v38, %v5440_v61  ;;  %v5388_v40 = vpop.f32.mrf.mxu0 }
 0x79d   : > { %v5285_v1 = vadd.f32 %v9633_v37, %v5196_v51  ;;  %v5508_v32 = vmax.f32 %v5476_v9, 0.0 }
 0x79f   : > { %v5374_v48 = vadd.f32 %v9636_v17, %v5285_v1  ;;  %5237 = vmatmul.bf16.gmra.mxu2 %v6767_v15 }
 0x7a1   : > { %v5441_v30 = vmul.f32 %v9573_v0, %v5374_v48  ;;  %v5117_v48 = vadd.f32 %v9324_v63, %v9492_v36 }
 0x7a2   : > { %v5198_v21 = vpop.f32.mrf.mxu2 }
 0x7a3   : > { %v5477_v11 = vadd.f32 %v9581_v38, %v5441_v30  ;;  %v5199_v60 = vadd.f32 %v5198_v21, %v5110_v50  ;;  %v5391_v50 = vpop.f32.mrf.mxu0 }
 0x7a5   : > { %v5509_v14 = vmax.f32 %v5477_v11, 0.0  ;;  %v5288_v37 = vadd.f32 %v5287_v55, %v5199_v60  ;;  %v5299_v55 = vpop.f32.mrf.mxu3 }
 0x7a7   : > { %v7811_v3 = vpack.c.bf16 %v5509_v14, %v5508_v32  ;;  %v5377_v17 = vadd.f32 %v9645_v28, %v5288_v37  ;;  %v5115_v28 = vadd.f32 %v9318_v45, %v9486_v22 }
 0x7a9   : > { %7930 = vst [vmem:[%s9596_s29 + $0x28] sm:$0xff] %v7811_v3   ;;  %v5442_v42 = vmul.f32 %v9573_v0, %v5377_v17 }
 0x7aa   : > { %v5200_v35 = vpop.f32.mrf.mxu2 }
 0x7ab   : > { %v5201_v49 = vadd.f32 %v5200_v35, %v5112_v54  ;;  %v5478_v7 = vadd.f32 %v9581_v38, %v5442_v42  ;;  %v5393_v17 = vpop.f32.mrf.mxu0 }
 0x7ad   : > { %v5290_v29 = vadd.f32 %v5289_v27, %v5201_v49  ;;  %v5510_v61 = vmax.f32 %v5478_v7, 0.0  ;;  %v5302_v9 = vpop.f32.mrf.mxu3 }
 0x7af   : > { %v5379_v41 = vadd.f32 %v5378_v39, %v5290_v29  ;;  %5242 = vmatmul.bf16.gmra.mxu2 %v6803_v31  ;;  %v9912_v31 = vld [vmem:[#allocation22_spill] sm:$0xff] }
 0x7b1   : > { %v5443_v2 = vmul.f32 %v9573_v0, %v5379_v41  ;;  %v9913_v41 = vld [vmem:[#allocation12_spill] sm:$0xff] }
 0x7b2   : > { %v5203_v4 = vpop.f32.mrf.mxu2  ;;  %v5125_v7 = vadd.f32 %v9913_v41, %v9912_v31 }
 0x7b3   : > { %v5479_v6 = vadd.f32 %v9581_v38, %v5443_v2  ;;  %v5204_v51 = vadd.f32 %v5203_v4, %v5115_v28  ;;  %v5396_v42 = vpop.f32.mrf.mxu0 }
 0x7b5   : > { %v5511_v1 = vmax.f32 %v5479_v6, 0.0  ;;  %v5293_v27 = vadd.f32 %v5292_v62, %v5204_v51  ;;  %v5120_v62 = vadd.f32 %v9332_v43, %v9496_v46  ;;  %v5304_v36 = vpop.f32.mrf.mxu3 }
 0x7b7   : > { %v7816_v15 = vpack.c.bf16 %v5511_v1, %v5510_v61  ;;  %v5382_v39 = vadd.f32 %v5381_v44, %v5293_v27 }
 0x7b9   : > { %7931 = vst [vmem:[%s9596_s29 + $0x30] sm:$0xff] %v7816_v15   ;;  %v5444_v45 = vmul.f32 %v9573_v0, %v5382_v39 }
 0x7ba   : > { %v5205_v30 = vpop.f32.mrf.mxu2 }
 0x7bb   : > { %v5206_v16 = vadd.f32 %v5205_v30, %v5117_v48  ;;  %v5480_v11 = vadd.f32 %v9581_v38, %v5444_v45  ;;  %v5398_v27 = vpop.f32.mrf.mxu0 }
 0x7bd   : > { %v5295_v22 = vadd.f32 %v5294_v5, %v5206_v16  ;;  %v5512_v14 = vmax.f32 %v5480_v11, 0.0  ;;  %v5307_v46 = vpop.f32.mrf.mxu3 }
 0x7bf   : > { %v5384_v21 = vadd.f32 %v5383_v20, %v5295_v22  ;;  %v9911_v20 = vld [vmem:[#allocation11_spill] sm:$0xff] }
 0x7c0   : > { %v5122_v54 = vadd.f32 %v9911_v20, %v9502_v13 }
 0x7c1   : > { %v5445_v60 = vmul.f32 %v9573_v0, %v5384_v21 }
 0x7c2   : > { %v5208_v44 = vpop.f32.mrf.mxu2 }
 0x7c3   : > { %v5481_v32 = vadd.f32 %v9581_v38, %v5445_v60  ;;  %v5209_v63 = vadd.f32 %v5208_v44, %v5120_v62  ;;  %v5401_v62 = vpop.f32.mrf.mxu0 }
 0x7c5   : > { %v5513_v37 = vmax.f32 %v5481_v32, 0.0  ;;  %v5298_v3 = vadd.f32 %v5297_v34, %v5209_v63  ;;  %v5309_v61 = vpop.f32.mrf.mxu3 }
 0x7c7   : > { %v7821_v47 = vpack.c.bf16 %v5513_v37, %v5512_v14  ;;  %v5387_v5 = vadd.f32 %v5386_v8, %v5298_v3  ;;  %v9916_v37 = vld [vmem:[#allocation56_spill] sm:$0xff] }
 0x7c8   : > { %v5132_v3 = vadd.f32 %v9916_v37, %v9522_v24  ;;  %v9921_v37 = vld [vmem:[#allocation16_spill] sm:$0xff] }
 0x7c9   : > { %7932 = vst [vmem:[%s9596_s29 + $0x38] sm:$0xff] %v7821_v47   ;;  %v5446_v26 = vmul.f32 %v9573_v0, %v5387_v5 }
 0x7ca   : > { %v5210_v35 = vpop.f32.mrf.mxu2 }
 0x7cb   : > { %v5211_v12 = vadd.f32 %v5210_v35, %v5122_v54  ;;  %v5482_v29 = vadd.f32 %v9581_v38, %v5446_v26  ;;  %v5403_v54 = vpop.f32.mrf.mxu0 }
 0x7cd   : > { %v5300_v43 = vadd.f32 %v5299_v55, %v5211_v12  ;;  %v5514_v28 = vmax.f32 %v5482_v29, 0.0  ;;  %v5312_v11 = vpop.f32.mrf.mxu3 }
 0x7cf   : > { %v5389_v49 = vadd.f32 %v5388_v40, %v5300_v43  ;;  %v9914_v40 = vld [vmem:[#allocation13_spill] sm:$0xff]  ;;  %v9917_v43 = vld [vmem:[#allocation14_spill] sm:$0xff] }
 0x7d0   : > { %v5127_v1 = vadd.f32 %v9914_v40, %v9514_v52 }
 0x7d1   : > { %v5447_v34 = vmul.f32 %v9573_v0, %v5389_v49 }
 0x7d2   : > { %v5213_v8 = vpop.f32.mrf.mxu2 }
 0x7d3   : > { %v5483_v2 = vadd.f32 %v9581_v38, %v5447_v34  ;;  %v5214_v13 = vadd.f32 %v5213_v8, %v5125_v7  ;;  %v5406_v8 = vpop.f32.mrf.mxu0 }
 0x7d5   : > { %v5515_v4 = vmax.f32 %v5483_v2, 0.0  ;;  %v5303_v6 = vadd.f32 %v5302_v9, %v5214_v13  ;;  %v9915_v9 = vld [vmem:[#allocation55_spill] sm:$0xff]  ;;  %v5314_v5 = vpop.f32.mrf.mxu3  ;;  %v9918_v13 = vld [vmem:[#allocation57_spill] sm:$0xff] }
 0x7d6   : > { %v5130_v21 = vadd.f32 %v9915_v9, %v9518_v25 }
 0x7d7   : > { %v7826_v51 = vpack.c.bf16 %v5515_v4, %v5514_v28  ;;  %v5392_v55 = vadd.f32 %v5391_v50, %v5303_v6  ;;  %v5137_v28 = vadd.f32 %v9918_v13, %v9530_v56 }
 0x7d9   : > { %7933 = vst [vmem:[%s9596_s29 + $0x40] sm:$0xff] %v7826_v51   ;;  %v5448_v48 = vmul.f32 %v9573_v0, %v5392_v55 }
 0x7da   : > { %v5215_v15 = vpop.f32.mrf.mxu2 }
 0x7db   : > { %v5216_v39 = vadd.f32 %v5215_v15, %v5127_v1  ;;  %v5484_v45 = vadd.f32 %v9581_v38, %v5448_v48 }
 0x7dd   : > { %v5305_v30 = vadd.f32 %v5304_v36, %v5216_v39  ;;  %v5516_v44 = vmax.f32 %v5484_v45, 0.0  ;;  %v5317_v41 = vpop.f32.mrf.mxu3  ;;  %v5408_v39 = vpop.f32.mrf.mxu0 }
 0x7df   : > { %v5394_v16 = vadd.f32 %v5393_v17, %v5305_v30 }
 0x7e1   : > { %v5449_v22 = vmul.f32 %v9573_v0, %v5394_v16 }
 0x7e2   : > { %v5218_v50 = vpop.f32.mrf.mxu2 }
 0x7e3   : > { %v5485_v60 = vadd.f32 %v9581_v38, %v5449_v22  ;;  %v5219_v52 = vadd.f32 %v5218_v50, %v5130_v21 }
 0x7e5   : > { %v5517_v32 = vmax.f32 %v5485_v60, 0.0  ;;  %v5308_v63 = vadd.f32 %v5307_v46, %v5219_v52  ;;  %v5135_v46 = vadd.f32 %v9917_v43, %v9526_v53  ;;  %v5319_v55 = vpop.f32.mrf.mxu3  ;;  %v9922_v43 = vld [vmem:[#allocation17_spill] sm:$0xff] }
 0x7e7   : > { %v7831_v14 = vpack.c.bf16 %v5517_v32, %v5516_v44  ;;  %v5397_v36 = vadd.f32 %v5396_v42, %v5308_v63  ;;  %v5411_v44 = vpop.f32.mrf.mxu0 }
 0x7e9   : > { %7934 = vst [vmem:[%s9596_s29 + $0x48] sm:$0xff] %v7831_v14   ;;  %v5450_v25 = vmul.f32 %v9573_v0, %v5397_v36 }
 0x7ea   : > { %v5220_v17 = vpop.f32.mrf.mxu2 }
 0x7eb   : > { %v5221_v47 = vadd.f32 %v5220_v17, %v5132_v3  ;;  %v5486_v12 = vadd.f32 %v9581_v38, %v5450_v25  ;;  %v5145_v3 = vadd.f32 %v9921_v37, %v9542_v10 }
 0x7ed   : > { %v5310_v20 = vadd.f32 %v5309_v61, %v5221_v47  ;;  %v5518_v29 = vmax.f32 %v5486_v12, 0.0  ;;  %v5322_v60 = vpop.f32.mrf.mxu3 }
 0x7ef   : > { %v5399_v35 = vadd.f32 %v5398_v27, %v5310_v20  ;;  %v9919_v27 = vld [vmem:[#allocation58_spill] sm:$0xff] }
 0x7f0   : > { %v5140_v15 = vadd.f32 %v9919_v27, %v9534_v23 }
 0x7f1   : > { %v5451_v26 = vmul.f32 %v9573_v0, %v5399_v35  ;;  %v5413_v35 = vpop.f32.mrf.mxu0 }
 0x7f2   : > { %v5223_v49 = vpop.f32.mrf.mxu2 }
 0x7f3   : > { %v5487_v42 = vadd.f32 %v9581_v38, %v5451_v26  ;;  %v5224_v24 = vadd.f32 %v5223_v49, %v5135_v46  ;;  %v5147_v46 = vadd.f32 %v9922_v43, %v9546_v33 }
 0x7f5   : > { %v5519_v34 = vmax.f32 %v5487_v42, 0.0  ;;  %v5313_v31 = vadd.f32 %v5312_v11, %v5224_v24  ;;  %v9920_v11 = vld [vmem:[#allocation15_spill] sm:$0xff] }
 0x7f6   : > { %v5142_v50 = vadd.f32 %v9920_v11, %v9538_v59 }
 0x7f7   : > { %v7836_v7 = vpack.c.bf16 %v5519_v34, %v5518_v29  ;;  %v5402_v2 = vadd.f32 %v5401_v62, %v5313_v31 }
 0x7f9   : > { %7935 = vst [vmem:[%s9596_s29 + $0x50] sm:$0xff] %v7836_v7   ;;  %v5452_v53 = vmul.f32 %v9573_v0, %v5402_v2  ;;  %v5416_v31 = vpop.f32.mrf.mxu0 }
 0x7fa   : > { %v5225_v4 = vpop.f32.mrf.mxu2 }
 0x7fb   : > { %v5226_v6 = vadd.f32 %v5225_v4, %v5137_v28  ;;  %v5488_v40 = vadd.f32 %v9581_v38, %v5452_v53 }
 0x7fd   : > { %v5315_v51 = vadd.f32 %v5314_v5, %v5226_v6  ;;  %v5520_v16 = vmax.f32 %v5488_v40, 0.0  ;;  %v5324_v5 = vpop.f32.mrf.mxu3  ;;  %v9924_v40 = vld [vmem:[#allocation19_spill] sm:$0xff] }
 0x7ff   : > { %v5404_v61 = vadd.f32 %v5403_v54, %v5315_v51 }
 0x801   : > { %v5453_v1 = vmul.f32 %v9573_v0, %v5404_v61  ;;  %v5418_v27 = vpop.f32.mrf.mxu0 }
 0x802   : > { %v5228_v48 = vpop.f32.mrf.mxu2 }
 0x803   : > { %v5489_v30 = vadd.f32 %v9581_v38, %v5453_v1  ;;  %v5229_v56 = vadd.f32 %v5228_v48, %v5140_v15  ;;  %v5152_v1 = vadd.f32 %v9924_v40, %v9554_v58 }
 0x805   : > { %v5521_v45 = vmax.f32 %v5489_v30, 0.0  ;;  %v5318_v22 = vadd.f32 %v5317_v41, %v5229_v56  ;;  %v5327_v29 = vpop.f32.mrf.mxu3 }
 0x807   : > { %v7841_v9 = vpack.c.bf16 %v5521_v45, %v5520_v16  ;;  %v5407_v21 = vadd.f32 %v5406_v8, %v5318_v22  ;;  %v9923_v8 = vld [vmem:[#allocation18_spill] sm:$0xff]  ;;  %v9925_v45 = vld [vmem:[#allocation20_spill] sm:$0xff] }
 0x808   : > { %v5150_v2 = vadd.f32 %v9923_v8, %v9550_v57  ;;  %v5155_v22 = vadd.f32 %v9925_v45, %v9558_v18 }
 0x809   : > { %7936 = vst [vmem:[%s9596_s29 + $0x58] sm:$0xff] %v7841_v9   ;;  %v5454_v23 = vmul.f32 %v9573_v0, %v5407_v21 }
 0x80a   : > { %v5230_v52 = vpop.f32.mrf.mxu2 }
 0x80b   : > { %v5231_v62 = vadd.f32 %v5230_v52, %v5142_v50  ;;  %v5490_v14 = vadd.f32 %v9581_v38, %v5454_v23  ;;  %v5421_v50 = vpop.f32.mrf.mxu0 }
 0x80d   : > { %v5320_v32 = vadd.f32 %v5319_v55, %v5231_v62  ;;  %v5522_v25 = vmax.f32 %v5490_v14, 0.0  ;;  %v5329_v61 = vpop.f32.mrf.mxu3 }
 0x80f   : > { %v5409_v63 = vadd.f32 %v5408_v39, %v5320_v32  ;;  %v9926_v32 = vld [vmem:[#allocation21_spill] sm:$0xff] }
 0x811   : > { %v5455_v36 = vmul.f32 %v9573_v0, %v5409_v63  ;;  %v5157_v63 = vadd.f32 %v9926_v32, %v9562_v19 }
 0x812   : > { %v5233_v17 = vpop.f32.mrf.mxu2 }
 0x813   : > { %v5491_v47 = vadd.f32 %v9581_v38, %v5455_v36  ;;  %v5234_v59 = vadd.f32 %v5233_v17, %v5145_v3  ;;  %v5423_v17 = vpop.f32.mrf.mxu0 }
 0x815   : > { %v5523_v20 = vmax.f32 %v5491_v47, 0.0  ;;  %v5323_v54 = vadd.f32 %v5322_v60, %v5234_v59  ;;  %v5332_v9 = vpop.f32.mrf.mxu3 }
 0x817   : > { %v7846_v12 = vpack.c.bf16 %v5523_v20, %v5522_v25  ;;  %v5412_v26 = vadd.f32 %v5411_v44, %v5323_v54 }
 0x819   : > { %7937 = vst [vmem:[%s9596_s29 + $0x60] sm:$0xff] %v7846_v12   ;;  %v5456_v24 = vmul.f32 %v9573_v0, %v5412_v26 }
 0x81a   : > { %v5235_v49 = vpop.f32.mrf.mxu2 }
 0x81b   : > { %v5236_v42 = vadd.f32 %v5235_v49, %v5147_v46  ;;  %v5492_v41 = vadd.f32 %v9581_v38, %v5456_v24 }
 0x81d   : > { %v5325_v10 = vadd.f32 %v5324_v5, %v5236_v42  ;;  %v5524_v4 = vmax.f32 %v5492_v41, 0.0  ;;  %v5334_v37 = vpop.f32.mrf.mxu3 }
 0x81f   : > { %v5414_v34 = vadd.f32 %v5413_v35, %v5325_v10 }
 0x821   : > { %v5457_v7 = vmul.f32 %v9573_v0, %v5414_v34 }
 0x822   : > { %v5238_v13 = vpop.f32.mrf.mxu2 }
 0x823   : > { %v5493_v28 = vadd.f32 %v9581_v38, %v5457_v7  ;;  %v5239_v33 = vadd.f32 %v5238_v13, %v5150_v2 }
 0x825   : > { %v5525_v6 = vmax.f32 %v5493_v28, 0.0  ;;  %v5328_v53 = vadd.f32 %v5327_v29, %v5239_v33 }
 0x827   : > { %v7851_v51 = vpack.c.bf16 %v5525_v6, %v5524_v4  ;;  %v5417_v55 = vadd.f32 %v5416_v31, %v5328_v53 }
 0x829   : > { %7938 = vst [vmem:[%s9596_s29 + $0x68] sm:$0xff] %v7851_v51   ;;  %v5458_v57 = vmul.f32 %v9573_v0, %v5417_v55 }
 0x82a   : > { %v5240_v15 = vpop.f32.mrf.mxu2 }
 0x82b   : > { %v5241_v39 = vadd.f32 %v5240_v15, %v5152_v1  ;;  %v5494_v56 = vadd.f32 %v9581_v38, %v5458_v57 }
 0x82d   : > { %v5330_v48 = vadd.f32 %v5329_v61, %v5241_v39  ;;  %v5526_v60 = vmax.f32 %v5494_v56, 0.0 }
 0x82f   : > { %v5419_v30 = vadd.f32 %v5418_v27, %v5330_v48 }
 0x831   : > { %v5459_v16 = vmul.f32 %v9573_v0, %v5419_v30 }
 0x832   : > { %v5243_v21 = vpop.f32.mrf.mxu2 }
 0x833   : > { %v5495_v11 = vadd.f32 %v9581_v38, %v5459_v16  ;;  %v5244_v58 = vadd.f32 %v5243_v21, %v5155_v22 }
 0x835   : > { %v5527_v52 = vmax.f32 %v5495_v11, 0.0  ;;  %v5333_v62 = vadd.f32 %v5332_v9, %v5244_v58 }
 0x837   : > { %v7856_v44 = vpack.c.bf16 %v5527_v52, %v5526_v60  ;;  %v5422_v23 = vadd.f32 %v5421_v50, %v5333_v62 }
 0x839   : > { %7939 = vst [vmem:[%s9596_s29 + $0x70] sm:$0xff] %v7856_v44   ;;  %v5460_v18 = vmul.f32 %v9573_v0, %v5422_v23 }
 0x83a   : > { %v5245_v14 = vpop.f32.mrf.mxu2 }
 0x83b   : > { %v5246_v36 = vadd.f32 %v5245_v14, %v5157_v63  ;;  %v5496_v59 = vadd.f32 %v9581_v38, %v5460_v18 }
 0x83d   : > { %v5335_v3 = vadd.f32 %v5334_v37, %v5246_v36  ;;  %v5528_v20 = vmax.f32 %v5496_v59, 0.0 }
 0x83f   : > { %v5424_v47 = vadd.f32 %v5423_v17, %v5335_v3 }
 0x841   : > { %v5461_v5 = vmul.f32 %v9573_v0, %v5424_v47 }
 0x843   : > { %v5497_v25 = vadd.f32 %v9581_v38, %v5461_v5 }
 0x845   : > { %v5529_v54 = vmax.f32 %v5497_v25, 0.0 }
 0x847   : > { %v7861_v35 = vpack.c.bf16 %v5529_v54, %v5528_v20 }
 0x849   : > { %7940 = vst [vmem:[%s9596_s29 + $0x78] sm:$0xff] %v7861_v35  }
 0x84a PF: > { %s17_s24 = sadd.s32 1, %s7992_s24  }
 0x84b   : > { %p14_p5 = scmp.ge.s32.totalorder %s17_s24, 4  }
 0x84d   :  { %16 = sbr.rel (!%p14_p5) target bundleno = 1 (0x1), region = 87 }

</bundles_post_ra>
